<compile_context>
chip_gen: v7x
topology: tpu7x:2x2x1
jax: 0.10.0
libtpu: 0.0.40
codegen_flags: <defaults>
</compile_context>

<pallas_src>
import functools

import jax
import jax.numpy as jnp
from jax.experimental import pallas as pl
from jax.experimental.pallas import tpu as pltpu


def _sublane_pack(dtype):
    """Sublane packing factor: 8 for 4-byte, 16 for 2-byte, 32 for 1-byte."""
    return max(8, 32 // jnp.dtype(dtype).itemsize)


def nb1d_kernel(x_hbm, w1_ref, b1_ref, w2_ref, b2_ref, w3_ref, b3_ref,
                w4_ref, b4_ref, o_ref, buf_ref, res_ref, dma_sem,
                *, d, TH, W, HALO_W, Cp, P):
    """One (batch, row-tile) step of non_bottleneck_1d.

    x_hbm  : (N, Hpad + 2*(d+1), W, Cp)  H-zero-padded NHWC input, left in HBM
    w*_ref : (3, Cp, Cp)                 per-tap (Cin, Cout) weights (BN folded)
    b*_ref : (1, Cp) float32             biases (BN folded)
    o_ref  : (TH, W, Cp)                 output row tile
    buf_ref: (TH + 2*(d+1), W + 2*HALO_W, Cp)  VMEM work buffer (column halo = 0)
    res_ref: (TH, W, Cp)                 residual stash
    """
    n = pl.program_id(0)
    h = pl.program_id(1)
    nH = pl.num_programs(1)

    RB = TH + 2 * (d + 1)       # input rows resident for this tile
    M1 = TH + 2 * d             # rows computed by stages 1 & 2 (recompute halo)
    WB = W + 2 * HALO_W
    cdt = buf_ref.dtype

    # ---- fetch the input row tile (+ d+1 halo rows) straight from HBM ------
    r0 = h * TH                 # start row in the H-padded input
    copy_in = pltpu.make_async_copy(
        x_hbm.at[n, pl.ds(r0, RB)],
        buf_ref.at[:, HALO_W:HALO_W + W, :],
        dma_sem)
    copy_in.start()
    # Zero the column-halo strips while the DMA lands (disjoint columns;
    # aligned, full-HALO_W-wide strips cost the same store ops as d-wide ones).
    buf_ref[:, 0:HALO_W, :] = jnp.zeros((RB, HALO_W, Cp), cdt)
    buf_ref[:, HALO_W + W:WB, :] = jnp.zeros((RB, HALO_W, Cp), cdt)
    copy_in.wait()

    # Residual rows (stage 1 overwrites them below).
    res_ref[...] = buf_ref[d + 1:d + 1 + TH, HALO_W:HALO_W + W, :]

    def conv_h(w_ref, b_ref, row0, nrows, off):
        """3-tap conv along rows (leading dim -> aligned slices), f32 acc."""
        M = nrows * W

        def patch(r):
            return buf_ref[r:r + nrows, HALO_W:HALO_W + W, :].reshape(M, Cp)

        acc = jnp.dot(patch(row0 - off), w_ref[0],
                      preferred_element_type=jnp.float32)
        acc = acc + jnp.dot(patch(row0), w_ref[1],
                            preferred_element_type=jnp.float32)
        acc = acc + jnp.dot(patch(row0 + off), w_ref[2],
                            preferred_element_type=jnp.float32)
        return acc + b_ref[...]

    def conv_w(w_ref, b_ref, row0, nrows, off):
        """3-tap conv along columns (shifted reads into the zero halo)."""
        M = nrows * W

        def patch(c):
            return buf_ref[row0:row0 + nrows, c:c + W, :].reshape(M, Cp)

        acc = jnp.dot(patch(HALO_W - off), w_ref[0],
                      preferred_element_type=jnp.float32)
        acc = acc + jnp.dot(patch(HALO_W), w_ref[1],
                            preferred_element_type=jnp.float32)
        acc = acc + jnp.dot(patch(HALO_W + off), w_ref[2],
                            preferred_element_type=jnp.float32)
        return acc + b_ref[...]

    def store_relu(a, row0, nrows):
        buf_ref[row0:row0 + nrows, HALO_W:HALO_W + W, :] = (
            jnp.maximum(a, 0.0).reshape(nrows, W, Cp).astype(cdt))

    # conv3x1_1 + ReLU  and  conv1x3_1 + BN1 + ReLU, on TH + 2d rows
    store_relu(conv_h(w1_ref, b1_ref, 1, M1, 1), 1, M1)
    store_relu(conv_w(w2_ref, b2_ref, 1, M1, 1), 1, M1)

    # Rows of the stage-2 activation that fall outside the real image must be
    # zero before the dilated H-conv reads them (matches conv zero padding).
    @pl.when(h == 0)
    def _():
        buf_ref[1:1 + d, HALO_W:HALO_W + W, :] = jnp.zeros((d, W, Cp), cdt)

    @pl.when(h == nH - 1)
    def _():
        buf_ref[1 + TH + d - P:1 + M1, HALO_W:HALO_W + W, :] = (
            jnp.zeros((d + P, W, Cp), cdt))

    # conv3x1_2 (dilated along H) + ReLU, on the TH output rows
    store_relu(conv_h(w3_ref, b3_ref, d + 1, TH, d), d + 1, TH)

    # conv1x3_2 (dilated along W) + BN2 + residual + ReLU
    a = conv_w(w4_ref, b4_ref, d + 1, TH, d)
    a = a + res_ref[...].reshape(TH * W, Cp).astype(jnp.float32)
    o_ref[...] = jnp.maximum(a, 0.0).reshape(TH, W, Cp).astype(o_ref.dtype)


def non_bottleneck_1d(x_nchw, params, dilated, *, row_tile=64):
    """Wrapper: NCHW in / NCHW out.  BN folded, channels padded to 128 lanes,
    rows tiled (H-tiling) with the input left in HBM."""
    d = int(dilated)
    assert d >= 1
    N, C, H, W = x_nchw.shape
    cdt = x_nchw.dtype
    esz = jnp.dtype(cdt).itemsize
    pack = _sublane_pack(cdt)
    eps = 1e-3

    Cp = max(128, ((C + 127) // 128) * 128)          # lane-dense channel pad
    HALO_W = ((d + pack - 1) // pack) * pack         # dtype-aware column halo
    TH = H if H <= row_tile else row_tile            # row tile
    nH = -(-H // TH)
    Hpad = nH * TH
    P = Hpad - H                                     # ragged last tile (static)
    RB = TH + 2 * (d + 1)
    WB = W + 2 * HALO_W

    # NCHW -> NHWC; pad channels to Cp and rows by d+1 (+P at bottom) so every
    # per-tile DMA window is in-bounds and already carries zero row halo.
    x = jnp.transpose(x_nchw, (0, 2, 3, 1))
    x = jnp.pad(x, ((0, 0), (d + 1, d + 1 + P), (0, 0), (0, Cp - C)))

    # Fold inference BatchNorm into the following conv's weights / bias.
    s1 = params["g1"] / jnp.sqrt(params["v1"] + eps)
    t1 = params["be1"] - params["m1"] * s1
    s2 = params["g2"] / jnp.sqrt(params["v2"] + eps)
    t2 = params["be2"] - params["m2"] * s2

    def taps_h(w):  # (Cout, Cin, 3, 1) -> (3, Cin, Cout)
        return jnp.transpose(w[:, :, :, 0], (2, 1, 0))

    def taps_w(w):  # (Cout, Cin, 1, 3) -> (3, Cin, Cout)
        return jnp.transpose(w[:, :, 0, :], (2, 1, 0))

    w1 = taps_h(params["w31_1"])
    w2 = taps_w(params["w13_1"]) * s1[None, None, :]
    w3 = taps_h(params["w31_2"])
    w4 = taps_w(params["w13_2"]) * s2[None, None, :]
    b1 = params["b31_1"]
    b2 = params["b13_1"] * s1 + t1
    b3 = params["b31_2"]
    b4 = params["b13_2"] * s2 + t2

    def pad_w(w):   # zero-pad channels, pre-cast to the matmul (input) dtype
        return jnp.pad(w, ((0, 0), (0, Cp - C), (0, Cp - C))).astype(cdt)

    def pad_b(b):   # biases stay f32 (added to the f32 accumulator)
        return jnp.pad(b, (0, Cp - C)).reshape(1, Cp).astype(jnp.float32)

    # Explicit VMEM budget from the actual block shapes (+ generous temporaries),
    # with headroom under physical VMEM (64 MiB on v7x, 128 MiB on v5e/v6e).
    needed = (RB * WB * Cp * esz                      # halo/activation buffer
              + TH * W * Cp * esz                     # residual stash
              + 2 * TH * W * Cp * esz                 # double-buffered out block
              + 2 * (4 * 3 * Cp * Cp * esz + 4 * Cp * 4)   # weights / biases
              + 8 * (TH + 2 * d) * W * Cp * 4         # f32 stage temporaries
              + (4 << 20))
    try:
        phys = int(pltpu.get_tpu_info().vmem_capacity_bytes)
    except Exception:
        phys = 64 << 20
    vmem_limit = int(min(max(needed, 32 << 20), int(phys * 0.85)))

    kernel = functools.partial(nb1d_kernel, d=d, TH=TH, W=W,
                               HALO_W=HALO_W, Cp=Cp, P=P)

    out_nhwc = pl.pallas_call(
        kernel,
        out_shape=jax.ShapeDtypeStruct((N, Hpad, W, Cp), cdt),
        grid_spec=pltpu.PrefetchScalarGridSpec(
            num_scalar_prefetch=0,
            grid=(N, nH),
            in_specs=[
                pl.BlockSpec(memory_space=pl.ANY),                     # x (HBM)
                pl.BlockSpec((3, Cp, Cp), lambda n, h: (0, 0, 0)),     # w1
                pl.BlockSpec((1, Cp), lambda n, h: (0, 0)),            # b1
                pl.BlockSpec((3, Cp, Cp), lambda n, h: (0, 0, 0)),     # w2
                pl.BlockSpec((1, Cp), lambda n, h: (0, 0)),            # b2
                pl.BlockSpec((3, Cp, Cp), lambda n, h: (0, 0, 0)),     # w3
                pl.BlockSpec((1, Cp), lambda n, h: (0, 0)),            # b3
                pl.BlockSpec((3, Cp, Cp), lambda n, h: (0, 0, 0)),     # w4
                pl.BlockSpec((1, Cp), lambda n, h: (0, 0)),            # b4
            ],
            out_specs=pl.BlockSpec((pl.Squeezed(), TH, W, Cp),
                                   lambda n, h: (n, h, 0, 0)),
            scratch_shapes=[
                pltpu.VMEM((RB, WB, Cp), cdt),     # halo / activation buffer
                pltpu.VMEM((TH, W, Cp), cdt),      # residual stash
                pltpu.SemaphoreType.DMA,           # input DMA semaphore
            ]),
        compiler_params=pltpu.CompilerParams(
            dimension_semantics=("parallel", "parallel"),
            vmem_limit_bytes=vmem_limit),
    )(x, pad_w(w1), pad_b(b1), pad_w(w2), pad_b(b2),
      pad_w(w3), pad_b(b3), pad_w(w4), pad_b(b4))

    out_nhwc = out_nhwc[:, :H, :, :C]
    return jnp.transpose(out_nhwc, (0, 3, 1, 2))


# ---------------------------------------------------------------------------
# Pure-JAX reference (mirrors the PyTorch module, inference mode) for validation.
# ---------------------------------------------------------------------------
def _conv2d(x, w, b, padding, dilation):
    y = jax.lax.conv_general_dilated(
        x, w, window_strides=(1, 1), padding=padding, rhs_dilation=dilation,
        dimension_numbers=("NCHW", "OIHW", "NCHW"),
        precision=jax.lax.Precision.HIGHEST)
    return y + b[None, :, None, None]


def _bn(x, gamma, beta, mean, var, eps=1e-3):
    scale = gamma / jnp.sqrt(var + eps)
    shift = beta - mean * scale
    return x * scale[None, :, None, None] + shift[None, :, None, None]


def non_bottleneck_1d_reference(x, p, dilated):
    out = _conv2d(x, p["w31_1"], p["b31_1"], ((1, 1), (0, 0)), (1, 1))
    out = jax.nn.relu(out)
    out = _conv2d(out, p["w13_1"], p["b13_1"], ((0, 0), (1, 1)), (1, 1))
    out = _bn(out, p["g1"], p["be1"], p["m1"], p["v1"])
    out = jax.nn.relu(out)
    out = _conv2d(out, p["w31_2"], p["b31_2"], ((dilated, dilated), (0, 0)),
                  (dilated, 1))
    out = jax.nn.relu(out)
    out = _conv2d(out, p["w13_2"], p["b13_2"], ((0, 0), (dilated, dilated)),
                  (1, dilated))
    out = _bn(out, p["g2"], p["be2"], p["m2"], p["v2"])
    # dropout: identity in inference
    return jax.nn.relu(out + x)


if __name__ == "__main__":
    N, C, H, W = 2, 4, 16, 16
    dilated = 2

    key = jax.random.PRNGKey(0)
    ks = jax.random.split(key, 17)

    def rnd(k, shape, scale=0.1):
        return jax.random.normal(k, shape, jnp.float32) * scale

    x = jax.random.normal(ks[0], (N, C, H, W), jnp.float32)
    params = {
        "w31_1": rnd(ks[1], (C, C, 3, 1)), "b31_1": rnd(ks[2], (C,)),
        "w13_1": rnd(ks[3], (C, C, 1, 3)), "b13_1": rnd(ks[4], (C,)),
        "g1": 1.0 + rnd(ks[5], (C,)), "be1": rnd(ks[6], (C,)),
        "m1": rnd(ks[7], (C,)), "v1": jnp.abs(rnd(ks[8], (C,))) + 1.0,
        "w31_2": rnd(ks[9], (C, C, 3, 1)), "b31_2": rnd(ks[10], (C,)),
        "w13_2": rnd(ks[11], (C, C, 1, 3)), "b13_2": rnd(ks[12], (C,)),
        "g2": 1.0 + rnd(ks[13], (C,)), "be2": rnd(ks[14], (C,)),
        "m2": rnd(ks[15], (C,)), "v2": jnp.abs(rnd(ks[16], (C,))) + 1.0,
    }

    ref = non_bottleneck_1d_reference(x, params, dilated)

    # (a) single row tile per image (nH == 1)
    fn = jax.jit(functools.partial(non_bottleneck_1d, dilated=dilated))
    out = jax.block_until_ready(fn(x, params))
    assert out.shape == (N, C, H, W), out.shape
    err = float(jnp.max(jnp.abs(out - ref)))
    assert jnp.allclose(out, ref, atol=1e-3, rtol=1e-3), err

    # (b) multi-tile H path (3 tiles, ragged last tile) exercises the H-tiling
    fn2 = jax.jit(functools.partial(non_bottleneck_1d, dilated=dilated,
                                    row_tile=6))
    out2 = jax.block_until_ready(fn2(x, params))
    err2 = float(jnp.max(jnp.abs(out2 - ref)))
    assert jnp.allclose(out2, ref, atol=1e-3, rtol=1e-3), err2

    print("KERNEL_OK")
</pallas_src>

<mosaic_0001>
module attributes {stable_mosaic.version = 11 : i64} {
  func.func @nb1d_kernel(%arg0: i32, %arg1: i32, %arg2: memref<2x22x16x128xf32, #tpu.memory_space<any>>, %arg3: memref<3x128x128xf32, #tpu.memory_space<vmem>>, %arg4: memref<1x128xf32, #tpu.memory_space<vmem>>, %arg5: memref<3x128x128xf32, #tpu.memory_space<vmem>>, %arg6: memref<1x128xf32, #tpu.memory_space<vmem>>, %arg7: memref<3x128x128xf32, #tpu.memory_space<vmem>>, %arg8: memref<1x128xf32, #tpu.memory_space<vmem>>, %arg9: memref<3x128x128xf32, #tpu.memory_space<vmem>>, %arg10: memref<1x128xf32, #tpu.memory_space<vmem>>, %arg11: memref<1x16x16x128xf32, #tpu.memory_space<vmem>>, %arg12: memref<22x32x128xf32, #tpu.memory_space<vmem>>, %arg13: memref<16x16x128xf32, #tpu.memory_space<vmem>>, %arg14: memref<!tpu.dma_semaphore, #tpu.memory_space<semaphore_mem>>) attributes {dimension_semantics = [#tpu.dimension_semantics<parallel>, #tpu.dimension_semantics<parallel>], iteration_bounds = array<i64: 2, 1>, scalar_prefetch = 0 : i64, scratch_operands = 3 : i64, tpu.core_type = #tpu.core_type<tc>, window_params = [{}, {pipeline_mode = #tpu.pipeline_mode<synchronous>, transform_indices = @transform_1, window_bounds = array<i64: 3, 128, 128>}, {pipeline_mode = #tpu.pipeline_mode<synchronous>, transform_indices = @transform_2, window_bounds = array<i64: 1, 128>}, {pipeline_mode = #tpu.pipeline_mode<synchronous>, transform_indices = @transform_3, window_bounds = array<i64: 3, 128, 128>}, {pipeline_mode = #tpu.pipeline_mode<synchronous>, transform_indices = @transform_4, window_bounds = array<i64: 1, 128>}, {pipeline_mode = #tpu.pipeline_mode<synchronous>, transform_indices = @transform_5, window_bounds = array<i64: 3, 128, 128>}, {pipeline_mode = #tpu.pipeline_mode<synchronous>, transform_indices = @transform_6, window_bounds = array<i64: 1, 128>}, {pipeline_mode = #tpu.pipeline_mode<synchronous>, transform_indices = @transform_7, window_bounds = array<i64: 3, 128, 128>}, {pipeline_mode = #tpu.pipeline_mode<synchronous>, transform_indices = @transform_8, window_bounds = array<i64: 1, 128>}, {transform_indices = @transform_9, window_bounds = array<i64: 1, 16, 16, 128>}]} {
    %c16_i32 = arith.constant 16 : i32
    %0 = arith.muli %arg1, %c16_i32 : i32
    %c0_i32 = arith.constant 0 : i32
    %c0_i32_0 = arith.constant 0 : i32
    %1 = tpu.memref_slice %arg2[%arg0, %0, %c0_i32, %c0_i32_0] : memref<2x22x16x128xf32, #tpu.memory_space<any>> -> memref<1x22x16x128xf32, #tpu.memory_space<any>>
    %2 = tpu.memref_squeeze %1 : memref<1x22x16x128xf32, #tpu.memory_space<any>> -> memref<22x16x128xf32, #tpu.memory_space<any>>
    %c0_i32_1 = arith.constant 0 : i32
    %c8_i32 = arith.constant 8 : i32
    %c0_i32_2 = arith.constant 0 : i32
    %3 = tpu.memref_slice %arg12[%c0_i32_1, %c8_i32, %c0_i32_2] : memref<22x32x128xf32, #tpu.memory_space<vmem>> -> memref<22x16x128xf32, #tpu.memory_space<vmem>>
    tpu.enqueue_dma source(%2 : memref<22x16x128xf32, #tpu.memory_space<any>>) target(%3 : memref<22x16x128xf32, #tpu.memory_space<vmem>>) target_semaphore(%arg14 : memref<!tpu.dma_semaphore, #tpu.memory_space<semaphore_mem>>)
    %cst = arith.constant 0.000000e+00 : f32
    %4 = vector.broadcast %cst : f32 to vector<22x8x128xf32>
    %c0 = arith.constant 0 : index
    %c0_3 = arith.constant 0 : index
    %c0_4 = arith.constant 0 : index
    %5 = vector.load %arg12[%c0, %c0_3, %c0_4] : memref<22x32x128xf32, #tpu.memory_space<vmem>>, vector<22x8x128xf32>
    tpu.vector_store %arg12[%c0, %c0_3, %c0_4], %4 {strides = array<i32>} : memref<22x32x128xf32, #tpu.memory_space<vmem>>, vector<22x8x128xf32>,
    %cst_5 = arith.constant 0.000000e+00 : f32
    %6 = vector.broadcast %cst_5 : f32 to vector<22x8x128xf32>
    %c0_6 = arith.constant 0 : index
    %c24 = arith.constant 24 : index
    %c0_7 = arith.constant 0 : index
    %7 = vector.load %arg12[%c0_6, %c24, %c0_7] : memref<22x32x128xf32, #tpu.memory_space<vmem>>, vector<22x8x128xf32>
    tpu.vector_store %arg12[%c0_6, %c24, %c0_7], %6 {strides = array<i32>} : memref<22x32x128xf32, #tpu.memory_space<vmem>>, vector<22x8x128xf32>,
    %c0_i32_8 = arith.constant 0 : i32
    %c0_i32_9 = arith.constant 0 : i32
    %8 = tpu.memref_slice %arg2[%arg0, %0, %c0_i32_8, %c0_i32_9] : memref<2x22x16x128xf32, #tpu.memory_space<any>> -> memref<1x22x16x128xf32, #tpu.memory_space<any>>
    %9 = tpu.memref_squeeze %8 : memref<1x22x16x128xf32, #tpu.memory_space<any>> -> memref<22x16x128xf32, #tpu.memory_space<any>>
    %c0_i32_10 = arith.constant 0 : i32
    %c8_i32_11 = arith.constant 8 : i32
    %c0_i32_12 = arith.constant 0 : i32
    %10 = tpu.memref_slice %arg12[%c0_i32_10, %c8_i32_11, %c0_i32_12] : memref<22x32x128xf32, #tpu.memory_space<vmem>> -> memref<22x16x128xf32, #tpu.memory_space<vmem>>
    tpu.wait_dma2 semaphore(%arg14 : memref<!tpu.dma_semaphore, #tpu.memory_space<semaphore_mem>>) src(%9 : memref<22x16x128xf32, #tpu.memory_space<any>>) dst(%10 : memref<22x16x128xf32, #tpu.memory_space<vmem>>)
    %c3 = arith.constant 3 : index
    %c8 = arith.constant 8 : index
    %c0_13 = arith.constant 0 : index
    %11 = vector.load %arg12[%c3, %c8, %c0_13] : memref<22x32x128xf32, #tpu.memory_space<vmem>>, vector<16x16x128xf32>
    %c0_14 = arith.constant 0 : index
    %c0_15 = arith.constant 0 : index
    %c0_16 = arith.constant 0 : index
    %12 = vector.load %arg13[%c0_14, %c0_15, %c0_16] : memref<16x16x128xf32, #tpu.memory_space<vmem>>, vector<16x16x128xf32>
    tpu.vector_store %arg13[%c0_14, %c0_15, %c0_16], %11 {strides = array<i32>} : memref<16x16x128xf32, #tpu.memory_space<vmem>>, vector<16x16x128xf32>,
    %c0_17 = arith.constant 0 : index
    %c8_18 = arith.constant 8 : index
    %c0_19 = arith.constant 0 : index
    %13 = vector.load %arg12[%c0_17, %c8_18, %c0_19] : memref<22x32x128xf32, #tpu.memory_space<vmem>>, vector<20x16x128xf32>
    %14 = vector.shape_cast %13 : vector<20x16x128xf32> to vector<320x128xf32>
    %c0_20 = arith.constant 0 : index
    %c0_21 = arith.constant 0 : index
    %c0_22 = arith.constant 0 : index
    %15 = vector.load %arg3[%c0_20, %c0_21, %c0_22] : memref<3x128x128xf32, #tpu.memory_space<vmem>>, vector<1x128x128xf32>
    %16 = vector.shape_cast %15 : vector<1x128x128xf32> to vector<128x128xf32>
    %cst_23 = arith.constant dense<0.000000e+00> : vector<320x128xf32>
    %17 = tpu.matmul %14, %16, %cst_23 {dimension_numbers = #tpu.dot_dimension_numbers<[1], [0], [0], [1], [0, 0, 1, 1], [], []>} : vector<320x128xf32>, vector<128x128xf32>, vector<320x128xf32> -> vector<320x128xf32>
    %c1 = arith.constant 1 : index
    %c8_24 = arith.constant 8 : index
    %c0_25 = arith.constant 0 : index
    %18 = vector.load %arg12[%c1, %c8_24, %c0_25] : memref<22x32x128xf32, #tpu.memory_space<vmem>>, vector<20x16x128xf32>
    %19 = vector.shape_cast %18 : vector<20x16x128xf32> to vector<320x128xf32>
    %c1_26 = arith.constant 1 : index
    %c0_27 = arith.constant 0 : index
    %c0_28 = arith.constant 0 : index
    %20 = vector.load %arg3[%c1_26, %c0_27, %c0_28] : memref<3x128x128xf32, #tpu.memory_space<vmem>>, vector<1x128x128xf32>
    %21 = vector.shape_cast %20 : vector<1x128x128xf32> to vector<128x128xf32>
    %cst_29 = arith.constant dense<0.000000e+00> : vector<320x128xf32>
    %22 = tpu.matmul %19, %21, %cst_29 {dimension_numbers = #tpu.dot_dimension_numbers<[1], [0], [0], [1], [0, 0, 1, 1], [], []>} : vector<320x128xf32>, vector<128x128xf32>, vector<320x128xf32> -> vector<320x128xf32>
    %23 = arith.addf %17, %22 : vector<320x128xf32>
    %c2 = arith.constant 2 : index
    %c8_30 = arith.constant 8 : index
    %c0_31 = arith.constant 0 : index
    %24 = vector.load %arg12[%c2, %c8_30, %c0_31] : memref<22x32x128xf32, #tpu.memory_space<vmem>>, vector<20x16x128xf32>
    %25 = vector.shape_cast %24 : vector<20x16x128xf32> to vector<320x128xf32>
    %c2_32 = arith.constant 2 : index
    %c0_33 = arith.constant 0 : index
    %c0_34 = arith.constant 0 : index
    %26 = vector.load %arg3[%c2_32, %c0_33, %c0_34] : memref<3x128x128xf32, #tpu.memory_space<vmem>>, vector<1x128x128xf32>
    %27 = vector.shape_cast %26 : vector<1x128x128xf32> to vector<128x128xf32>
    %cst_35 = arith.constant dense<0.000000e+00> : vector<320x128xf32>
    %28 = tpu.matmul %25, %27, %cst_35 {dimension_numbers = #tpu.dot_dimension_numbers<[1], [0], [0], [1], [0, 0, 1, 1], [], []>} : vector<320x128xf32>, vector<128x128xf32>, vector<320x128xf32> -> vector<320x128xf32>
    %29 = arith.addf %23, %28 : vector<320x128xf32>
    %c0_36 = arith.constant 0 : index
    %c0_37 = arith.constant 0 : index
    %30 = vector.load %arg4[%c0_36, %c0_37] : memref<1x128xf32, #tpu.memory_space<vmem>>, vector<1x128xf32>
    %31 = vector.broadcast %30 : vector<1x128xf32> to vector<320x128xf32>
    %32 = arith.addf %29, %31 : vector<320x128xf32>
    %cst_38 = arith.constant 0.000000e+00 : f32
    %33 = vector.broadcast %cst_38 : f32 to vector<320x128xf32>
    %34 = arith.maximumf %32, %33 : vector<320x128xf32>
    %35 = vector.shape_cast %34 : vector<320x128xf32> to vector<20x16x128xf32>
    %c1_39 = arith.constant 1 : index
    %c8_40 = arith.constant 8 : index
    %c0_41 = arith.constant 0 : index
    %36 = vector.load %arg12[%c1_39, %c8_40, %c0_41] : memref<22x32x128xf32, #tpu.memory_space<vmem>>, vector<20x16x128xf32>
    tpu.vector_store %arg12[%c1_39, %c8_40, %c0_41], %35 {strides = array<i32>} : memref<22x32x128xf32, #tpu.memory_space<vmem>>, vector<20x16x128xf32>,
    %c1_42 = arith.constant 1 : index
    %c7 = arith.constant 7 : index
    %c0_43 = arith.constant 0 : index
    %37 = vector.load %arg12[%c1_42, %c7, %c0_43] : memref<22x32x128xf32, #tpu.memory_space<vmem>>, vector<20x16x128xf32>
    %38 = vector.shape_cast %37 : vector<20x16x128xf32> to vector<320x128xf32>
    %c0_44 = arith.constant 0 : index
    %c0_45 = arith.constant 0 : index
    %c0_46 = arith.constant 0 : index
    %39 = vector.load %arg5[%c0_44, %c0_45, %c0_46] : memref<3x128x128xf32, #tpu.memory_space<vmem>>, vector<1x128x128xf32>
    %40 = vector.shape_cast %39 : vector<1x128x128xf32> to vector<128x128xf32>
    %cst_47 = arith.constant dense<0.000000e+00> : vector<320x128xf32>
    %41 = tpu.matmul %38, %40, %cst_47 {dimension_numbers = #tpu.dot_dimension_numbers<[1], [0], [0], [1], [0, 0, 1, 1], [], []>} : vector<320x128xf32>, vector<128x128xf32>, vector<320x128xf32> -> vector<320x128xf32>
    %c1_48 = arith.constant 1 : index
    %c8_49 = arith.constant 8 : index
    %c0_50 = arith.constant 0 : index
    %42 = vector.load %arg12[%c1_48, %c8_49, %c0_50] : memref<22x32x128xf32, #tpu.memory_space<vmem>>, vector<20x16x128xf32>
    %43 = vector.shape_cast %42 : vector<20x16x128xf32> to vector<320x128xf32>
    %c1_51 = arith.constant 1 : index
    %c0_52 = arith.constant 0 : index
    %c0_53 = arith.constant 0 : index
    %44 = vector.load %arg5[%c1_51, %c0_52, %c0_53] : memref<3x128x128xf32, #tpu.memory_space<vmem>>, vector<1x128x128xf32>
    %45 = vector.shape_cast %44 : vector<1x128x128xf32> to vector<128x128xf32>
    %cst_54 = arith.constant dense<0.000000e+00> : vector<320x128xf32>
    %46 = tpu.matmul %43, %45, %cst_54 {dimension_numbers = #tpu.dot_dimension_numbers<[1], [0], [0], [1], [0, 0, 1, 1], [], []>} : vector<320x128xf32>, vector<128x128xf32>, vector<320x128xf32> -> vector<320x128xf32>
    %47 = arith.addf %41, %46 : vector<320x128xf32>
    %c1_55 = arith.constant 1 : index
    %c9 = arith.constant 9 : index
    %c0_56 = arith.constant 0 : index
    %48 = vector.load %arg12[%c1_55, %c9, %c0_56] : memref<22x32x128xf32, #tpu.memory_space<vmem>>, vector<20x16x128xf32>
    %49 = vector.shape_cast %48 : vector<20x16x128xf32> to vector<320x128xf32>
    %c2_57 = arith.constant 2 : index
    %c0_58 = arith.constant 0 : index
    %c0_59 = arith.constant 0 : index
    %50 = vector.load %arg5[%c2_57, %c0_58, %c0_59] : memref<3x128x128xf32, #tpu.memory_space<vmem>>, vector<1x128x128xf32>
    %51 = vector.shape_cast %50 : vector<1x128x128xf32> to vector<128x128xf32>
    %cst_60 = arith.constant dense<0.000000e+00> : vector<320x128xf32>
    %52 = tpu.matmul %49, %51, %cst_60 {dimension_numbers = #tpu.dot_dimension_numbers<[1], [0], [0], [1], [0, 0, 1, 1], [], []>} : vector<320x128xf32>, vector<128x128xf32>, vector<320x128xf32> -> vector<320x128xf32>
    %53 = arith.addf %47, %52 : vector<320x128xf32>
    %c0_61 = arith.constant 0 : index
    %c0_62 = arith.constant 0 : index
    %54 = vector.load %arg6[%c0_61, %c0_62] : memref<1x128xf32, #tpu.memory_space<vmem>>, vector<1x128xf32>
    %55 = vector.broadcast %54 : vector<1x128xf32> to vector<320x128xf32>
    %56 = arith.addf %53, %55 : vector<320x128xf32>
    %cst_63 = arith.constant 0.000000e+00 : f32
    %57 = vector.broadcast %cst_63 : f32 to vector<320x128xf32>
    %58 = arith.maximumf %56, %57 : vector<320x128xf32>
    %59 = vector.shape_cast %58 : vector<320x128xf32> to vector<20x16x128xf32>
    %c1_64 = arith.constant 1 : index
    %c8_65 = arith.constant 8 : index
    %c0_66 = arith.constant 0 : index
    %60 = vector.load %arg12[%c1_64, %c8_65, %c0_66] : memref<22x32x128xf32, #tpu.memory_space<vmem>>, vector<20x16x128xf32>
    tpu.vector_store %arg12[%c1_64, %c8_65, %c0_66], %59 {strides = array<i32>} : memref<22x32x128xf32, #tpu.memory_space<vmem>>, vector<20x16x128xf32>,
    %c0_i32_67 = arith.constant 0 : i32
    %61 = arith.cmpi eq, %arg1, %c0_i32_67 : i32
    %62 = arith.extui %61 : i1 to i32
    %c0_i32_68 = arith.constant 0 : i32
    %63 = arith.cmpi ne, %62, %c0_i32_68 : i32
    scf.if %63 {
      %cst_126 = arith.constant 0.000000e+00 : f32
      %120 = vector.broadcast %cst_126 : f32 to vector<2x16x128xf32>
      %c1_127 = arith.constant 1 : index
      %c8_128 = arith.constant 8 : index
      %c0_129 = arith.constant 0 : index
      %121 = vector.load %arg12[%c1_127, %c8_128, %c0_129] : memref<22x32x128xf32, #tpu.memory_space<vmem>>, vector<2x16x128xf32>
      tpu.vector_store %arg12[%c1_127, %c8_128, %c0_129], %120 {strides = array<i32>} : memref<22x32x128xf32, #tpu.memory_space<vmem>>, vector<2x16x128xf32>,
    } else {
    }
    %c0_i32_69 = arith.constant 0 : i32
    %64 = arith.cmpi eq, %arg1, %c0_i32_69 : i32
    %65 = arith.extui %64 : i1 to i32
    %c0_i32_70 = arith.constant 0 : i32
    %66 = arith.cmpi ne, %65, %c0_i32_70 : i32
    scf.if %66 {
      %cst_126 = arith.constant 0.000000e+00 : f32
      %120 = vector.broadcast %cst_126 : f32 to vector<2x16x128xf32>
      %c19 = arith.constant 19 : index
      %c8_127 = arith.constant 8 : index
      %c0_128 = arith.constant 0 : index
      %121 = vector.load %arg12[%c19, %c8_127, %c0_128] : memref<22x32x128xf32, #tpu.memory_space<vmem>>, vector<2x16x128xf32>
      tpu.vector_store %arg12[%c19, %c8_127, %c0_128], %120 {strides = array<i32>} : memref<22x32x128xf32, #tpu.memory_space<vmem>>, vector<2x16x128xf32>,
    } else {
    }
    %c1_71 = arith.constant 1 : index
    %c8_72 = arith.constant 8 : index
    %c0_73 = arith.constant 0 : index
    %67 = vector.load %arg12[%c1_71, %c8_72, %c0_73] : memref<22x32x128xf32, #tpu.memory_space<vmem>>, vector<16x16x128xf32>
    %68 = vector.shape_cast %67 : vector<16x16x128xf32> to vector<256x128xf32>
    %c0_74 = arith.constant 0 : index
    %c0_75 = arith.constant 0 : index
    %c0_76 = arith.constant 0 : index
    %69 = vector.load %arg7[%c0_74, %c0_75, %c0_76] : memref<3x128x128xf32, #tpu.memory_space<vmem>>, vector<1x128x128xf32>
    %70 = vector.shape_cast %69 : vector<1x128x128xf32> to vector<128x128xf32>
    %cst_77 = arith.constant dense<0.000000e+00> : vector<256x128xf32>
    %71 = tpu.matmul %68, %70, %cst_77 {dimension_numbers = #tpu.dot_dimension_numbers<[1], [0], [0], [1], [0, 0, 1, 1], [], []>} : vector<256x128xf32>, vector<128x128xf32>, vector<256x128xf32> -> vector<256x128xf32>
    %c3_78 = arith.constant 3 : index
    %c8_79 = arith.constant 8 : index
    %c0_80 = arith.constant 0 : index
    %72 = vector.load %arg12[%c3_78, %c8_79, %c0_80] : memref<22x32x128xf32, #tpu.memory_space<vmem>>, vector<16x16x128xf32>
    %73 = vector.shape_cast %72 : vector<16x16x128xf32> to vector<256x128xf32>
    %c1_81 = arith.constant 1 : index
    %c0_82 = arith.constant 0 : index
    %c0_83 = arith.constant 0 : index
    %74 = vector.load %arg7[%c1_81, %c0_82, %c0_83] : memref<3x128x128xf32, #tpu.memory_space<vmem>>, vector<1x128x128xf32>
    %75 = vector.shape_cast %74 : vector<1x128x128xf32> to vector<128x128xf32>
    %cst_84 = arith.constant dense<0.000000e+00> : vector<256x128xf32>
    %76 = tpu.matmul %73, %75, %cst_84 {dimension_numbers = #tpu.dot_dimension_numbers<[1], [0], [0], [1], [0, 0, 1, 1], [], []>} : vector<256x128xf32>, vector<128x128xf32>, vector<256x128xf32> -> vector<256x128xf32>
    %77 = arith.addf %71, %76 : vector<256x128xf32>
    %c5 = arith.constant 5 : index
    %c8_85 = arith.constant 8 : index
    %c0_86 = arith.constant 0 : index
    %78 = vector.load %arg12[%c5, %c8_85, %c0_86] : memref<22x32x128xf32, #tpu.memory_space<vmem>>, vector<16x16x128xf32>
    %79 = vector.shape_cast %78 : vector<16x16x128xf32> to vector<256x128xf32>
    %c2_87 = arith.constant 2 : index
    %c0_88 = arith.constant 0 : index
    %c0_89 = arith.constant 0 : index
    %80 = vector.load %arg7[%c2_87, %c0_88, %c0_89] : memref<3x128x128xf32, #tpu.memory_space<vmem>>, vector<1x128x128xf32>
    %81 = vector.shape_cast %80 : vector<1x128x128xf32> to vector<128x128xf32>
    %cst_90 = arith.constant dense<0.000000e+00> : vector<256x128xf32>
    %82 = tpu.matmul %79, %81, %cst_90 {dimension_numbers = #tpu.dot_dimension_numbers<[1], [0], [0], [1], [0, 0, 1, 1], [], []>} : vector<256x128xf32>, vector<128x128xf32>, vector<256x128xf32> -> vector<256x128xf32>
    %83 = arith.addf %77, %82 : vector<256x128xf32>
    %c0_91 = arith.constant 0 : index
    %c0_92 = arith.constant 0 : index
    %84 = vector.load %arg8[%c0_91, %c0_92] : memref<1x128xf32, #tpu.memory_space<vmem>>, vector<1x128xf32>
    %85 = vector.broadcast %84 : vector<1x128xf32> to vector<256x128xf32>
    %86 = arith.addf %83, %85 : vector<256x128xf32>
    %cst_93 = arith.constant 0.000000e+00 : f32
    %87 = vector.broadcast %cst_93 : f32 to vector<256x128xf32>
    %88 = arith.maximumf %86, %87 : vector<256x128xf32>
    %89 = vector.shape_cast %88 : vector<256x128xf32> to vector<16x16x128xf32>
    %c3_94 = arith.constant 3 : index
    %c8_95 = arith.constant 8 : index
    %c0_96 = arith.constant 0 : index
    %90 = vector.load %arg12[%c3_94, %c8_95, %c0_96] : memref<22x32x128xf32, #tpu.memory_space<vmem>>, vector<16x16x128xf32>
    tpu.vector_store %arg12[%c3_94, %c8_95, %c0_96], %89 {strides = array<i32>} : memref<22x32x128xf32, #tpu.memory_space<vmem>>, vector<16x16x128xf32>,
    %c3_97 = arith.constant 3 : index
    %c6 = arith.constant 6 : index
    %c0_98 = arith.constant 0 : index
    %91 = vector.load %arg12[%c3_97, %c6, %c0_98] : memref<22x32x128xf32, #tpu.memory_space<vmem>>, vector<16x16x128xf32>
    %92 = vector.shape_cast %91 : vector<16x16x128xf32> to vector<256x128xf32>
    %c0_99 = arith.constant 0 : index
    %c0_100 = arith.constant 0 : index
    %c0_101 = arith.constant 0 : index
    %93 = vector.load %arg9[%c0_99, %c0_100, %c0_101] : memref<3x128x128xf32, #tpu.memory_space<vmem>>, vector<1x128x128xf32>
    %94 = vector.shape_cast %93 : vector<1x128x128xf32> to vector<128x128xf32>
    %cst_102 = arith.constant dense<0.000000e+00> : vector<256x128xf32>
    %95 = tpu.matmul %92, %94, %cst_102 {dimension_numbers = #tpu.dot_dimension_numbers<[1], [0], [0], [1], [0, 0, 1, 1], [], []>} : vector<256x128xf32>, vector<128x128xf32>, vector<256x128xf32> -> vector<256x128xf32>
    %c3_103 = arith.constant 3 : index
    %c8_104 = arith.constant 8 : index
    %c0_105 = arith.constant 0 : index
    %96 = vector.load %arg12[%c3_103, %c8_104, %c0_105] : memref<22x32x128xf32, #tpu.memory_space<vmem>>, vector<16x16x128xf32>
    %97 = vector.shape_cast %96 : vector<16x16x128xf32> to vector<256x128xf32>
    %c1_106 = arith.constant 1 : index
    %c0_107 = arith.constant 0 : index
    %c0_108 = arith.constant 0 : index
    %98 = vector.load %arg9[%c1_106, %c0_107, %c0_108] : memref<3x128x128xf32, #tpu.memory_space<vmem>>, vector<1x128x128xf32>
    %99 = vector.shape_cast %98 : vector<1x128x128xf32> to vector<128x128xf32>
    %cst_109 = arith.constant dense<0.000000e+00> : vector<256x128xf32>
    %100 = tpu.matmul %97, %99, %cst_109 {dimension_numbers = #tpu.dot_dimension_numbers<[1], [0], [0], [1], [0, 0, 1, 1], [], []>} : vector<256x128xf32>, vector<128x128xf32>, vector<256x128xf32> -> vector<256x128xf32>
    %101 = arith.addf %95, %100 : vector<256x128xf32>
    %c3_110 = arith.constant 3 : index
    %c10 = arith.constant 10 : index
    %c0_111 = arith.constant 0 : index
    %102 = vector.load %arg12[%c3_110, %c10, %c0_111] : memref<22x32x128xf32, #tpu.memory_space<vmem>>, vector<16x16x128xf32>
    %103 = vector.shape_cast %102 : vector<16x16x128xf32> to vector<256x128xf32>
    %c2_112 = arith.constant 2 : index
    %c0_113 = arith.constant 0 : index
    %c0_114 = arith.constant 0 : index
    %104 = vector.load %arg9[%c2_112, %c0_113, %c0_114] : memref<3x128x128xf32, #tpu.memory_space<vmem>>, vector<1x128x128xf32>
    %105 = vector.shape_cast %104 : vector<1x128x128xf32> to vector<128x128xf32>
    %cst_115 = arith.constant dense<0.000000e+00> : vector<256x128xf32>
    %106 = tpu.matmul %103, %105, %cst_115 {dimension_numbers = #tpu.dot_dimension_numbers<[1], [0], [0], [1], [0, 0, 1, 1], [], []>} : vector<256x128xf32>, vector<128x128xf32>, vector<256x128xf32> -> vector<256x128xf32>
    %107 = arith.addf %101, %106 : vector<256x128xf32>
    %c0_116 = arith.constant 0 : index
    %c0_117 = arith.constant 0 : index
    %108 = vector.load %arg10[%c0_116, %c0_117] : memref<1x128xf32, #tpu.memory_space<vmem>>, vector<1x128xf32>
    %109 = vector.broadcast %108 : vector<1x128xf32> to vector<256x128xf32>
    %110 = arith.addf %107, %109 : vector<256x128xf32>
    %c0_118 = arith.constant 0 : index
    %c0_119 = arith.constant 0 : index
    %c0_120 = arith.constant 0 : index
    %111 = vector.load %arg13[%c0_118, %c0_119, %c0_120] : memref<16x16x128xf32, #tpu.memory_space<vmem>>, vector<16x16x128xf32>
    %112 = vector.shape_cast %111 : vector<16x16x128xf32> to vector<256x128xf32>
    %113 = arith.addf %110, %112 : vector<256x128xf32>
    %cst_121 = arith.constant 0.000000e+00 : f32
    %114 = vector.broadcast %cst_121 : f32 to vector<256x128xf32>
    %115 = arith.maximumf %113, %114 : vector<256x128xf32>
    %116 = vector.shape_cast %115 : vector<256x128xf32> to vector<16x16x128xf32>
    %c0_122 = arith.constant 0 : index
    %c0_123 = arith.constant 0 : index
    %c0_124 = arith.constant 0 : index
    %c0_125 = arith.constant 0 : index
    %117 = vector.load %arg11[%c0_122, %c0_123, %c0_124, %c0_125] : memref<1x16x16x128xf32, #tpu.memory_space<vmem>>, vector<1x16x16x128xf32>
    %118 = vector.shape_cast %117 : vector<1x16x16x128xf32> to vector<16x16x128xf32>
    %119 = vector.shape_cast %116 : vector<16x16x128xf32> to vector<1x16x16x128xf32>
    tpu.vector_store %arg11[%c0_122, %c0_123, %c0_124, %c0_125], %119 {strides = array<i32>} : memref<1x16x16x128xf32, #tpu.memory_space<vmem>>, vector<1x16x16x128xf32>,
    return
  }
  func.func @transform_1(%arg0: i32, %arg1: i32) -> (i32, i32, i32) {
    %c0_i32 = arith.constant 0 : i32
    %c0_i32_0 = arith.constant 0 : i32
    %c0_i32_1 = arith.constant 0 : i32
    %c0_i32_2 = arith.constant 0 : i32
    return %c0_i32, %c0_i32_0, %c0_i32_1 : i32, i32, i32
  }
  func.func @transform_2(%arg0: i32, %arg1: i32) -> (i32, i32) {
    %c0_i32 = arith.constant 0 : i32
    %c0_i32_0 = arith.constant 0 : i32
    %c0_i32_1 = arith.constant 0 : i32
    return %c0_i32, %c0_i32_0 : i32, i32
  }
  func.func @transform_3(%arg0: i32, %arg1: i32) -> (i32, i32, i32) {
    %c0_i32 = arith.constant 0 : i32
    %c0_i32_0 = arith.constant 0 : i32
    %c0_i32_1 = arith.constant 0 : i32
    %c0_i32_2 = arith.constant 0 : i32
    return %c0_i32, %c0_i32_0, %c0_i32_1 : i32, i32, i32
  }
  func.func @transform_4(%arg0: i32, %arg1: i32) -> (i32, i32) {
    %c0_i32 = arith.constant 0 : i32
    %c0_i32_0 = arith.constant 0 : i32
    %c0_i32_1 = arith.constant 0 : i32
    return %c0_i32, %c0_i32_0 : i32, i32
  }
  func.func @transform_5(%arg0: i32, %arg1: i32) -> (i32, i32, i32) {
    %c0_i32 = arith.constant 0 : i32
    %c0_i32_0 = arith.constant 0 : i32
    %c0_i32_1 = arith.constant 0 : i32
    %c0_i32_2 = arith.constant 0 : i32
    return %c0_i32, %c0_i32_0, %c0_i32_1 : i32, i32, i32
  }
  func.func @transform_6(%arg0: i32, %arg1: i32) -> (i32, i32) {
    %c0_i32 = arith.constant 0 : i32
    %c0_i32_0 = arith.constant 0 : i32
    %c0_i32_1 = arith.constant 0 : i32
    return %c0_i32, %c0_i32_0 : i32, i32
  }
  func.func @transform_7(%arg0: i32, %arg1: i32) -> (i32, i32, i32) {
    %c0_i32 = arith.constant 0 : i32
    %c0_i32_0 = arith.constant 0 : i32
    %c0_i32_1 = arith.constant 0 : i32
    %c0_i32_2 = arith.constant 0 : i32
    return %c0_i32, %c0_i32_0, %c0_i32_1 : i32, i32, i32
  }
  func.func @transform_8(%arg0: i32, %arg1: i32) -> (i32, i32) {
    %c0_i32 = arith.constant 0 : i32
    %c0_i32_0 = arith.constant 0 : i32
    %c0_i32_1 = arith.constant 0 : i32
    return %c0_i32, %c0_i32_0 : i32, i32
  }
  func.func @transform_9(%arg0: i32, %arg1: i32) -> (i32, i32, i32, i32) {
    %c0_i32 = arith.constant 0 : i32
    %c0_i32_0 = arith.constant 0 : i32
    %c0_i32_1 = arith.constant 0 : i32
    return %arg0, %arg1, %c0_i32, %c0_i32_0 : i32, i32, i32, i32
  }
}

</mosaic_0001>

<bundles_post_ra>
// kernel: non_bottleneck_1d.1
= control target key start
LH: loop header
LB: loop body
LE: loop exit
PB: predicated region body
PF: predicated region fallthrough
CT: control target
= control target key end

     0   :  { %s7523_s30 = smov 0   ;;  %s7525_s10 = smov 0   ;;  %s8892_s0 = inlined_call_operand.vmem [shape: f32[2,22,16,128], index: 0, kind: input, shape index: {}]   ;;  %s8893_s1 = inlined_call_operand.vmem [shape: f32[3,128,128], index: 1, kind: input, shape index: {}]   ;;  %s8894_s2 = inlined_call_operand.vmem [shape: f32[1,128], index: 2, kind: input, shape index: {}]   ;;  %s8895_s3 = inlined_call_operand.vmem [shape: f32[3,128,128], index: 3, kind: input, shape index: {}]   ;;  %s8896_s4 = inlined_call_operand.vmem [shape: f32[1,128], index: 4, kind: input, shape index: {}]   ;;  %s8897_s5 = inlined_call_operand.vmem [shape: f32[3,128,128], index: 5, kind: input, shape index: {}]   ;;  %s8898_s6 = inlined_call_operand.vmem [shape: f32[1,128], index: 6, kind: input, shape index: {}]   ;;  %s8899_s7 = inlined_call_operand.vmem [shape: f32[3,128,128], index: 7, kind: input, shape index: {}]   ;;  %s8900_s8 = inlined_call_operand.vmem [shape: f32[1,128], index: 8, kind: input, shape index: {}]   ;;  %s8901_s9 = inlined_call_operand.vmem [shape: f32[2,16,16,128], index: 9, kind: output, shape index: {}]  }
   0x1   :  { %s7527_s11 = smov 0  }
   0x2 LB: > { %s31_s12 = sadd.s32 1, %s7466_s10  ;;  %p4953_p0 = scmp.ge.s32.totalorder %s7470_s11, 1  ;;  %s7470_s11 = sphi %s7527_s11, %s19_s11   ;;  %s7466_s10 = sphi %s7525_s10, %s8960_s10   ;;  %s7462_s30 = sphi %s7523_s30, %s8959_s30  }
   0x3   : > { %p33_p1 = scmp.ge.s32.totalorder %s31_s12, 2  ;;  %p267_p2 = scmp.lt.s32.totalorder %s7470_s11, 3 }
   0x5   : > { %s8962_s12 = smov (%p33_p1, %s31_s12), 0  ;;  %p268_p3 = pnand %p4953_p0, %p267_p2 }
   0x7   : > { %271 = sbr.rel (%p268_p3) target bundleno = 1615 (0x64f), region = 52 }
   0xe   : > { %p302_p4 = scmp.lt.s32.totalorder %s7462_s30, 1  ;;  %s314_s13 = smul.u32 352, %s7462_s30 }
  0x10   : > { %s8964_s30 = smov (!%p302_p4, %s7462_s30), 1  ;;  %s7544_s16 = scalar_lea.vmem %s8892_s0, %s314_s13 }
  0x11   : > { %s5091_s17 = sshll.u32 %s8964_s30, 8  ;;  %v392_v0 = vld [vmem:[%s7544_s16] sm:$0xff]  ;;  %v394_v1 = vld [vmem:[%s7544_s16 + $0x8] sm:$0xff]  ;;  %v396_v2 = vld [vmem:[%s7544_s16 + $0x10] sm:$0xff] }
  0x12   : > { %s7552_s20 = scalar_lea.vmem %s8901_s9, %s5091_s17  ;;  %393 = vst [vmem:[#allocation2 + $0x8] sm:$0xff] %v392_v0  ;;  %395 = vst [vmem:[#allocation2 + $0x10] sm:$0xff] %v394_v1  ;;  %v398_v3 = vld [vmem:[%s7544_s16 + $0x18] sm:$0xff]  ;;  %v400_v4 = vld [vmem:[%s7544_s16 + $0x20] sm:$0xff] }
  0x13   : > { %397 = vst [vmem:[#allocation2 + $0x28] sm:$0xff] %v396_v2  ;;  %v402_v5 = vld [vmem:[%s7544_s16 + $0x28] sm:$0xff]  ;;  %399 = vst [vmem:[#allocation2 + $0x30] sm:$0xff] %v398_v3  ;;  %v404_v6 = vld [vmem:[%s7544_s16 + $0x30] sm:$0xff] }
  0x14   : > { %401 = vst [vmem:[#allocation2 + $0x48] sm:$0xff] %v400_v4  ;;  %403 = vst [vmem:[#allocation2 + $0x50] sm:$0xff] %v402_v5  ;;  %v406_v7 = vld [vmem:[%s7544_s16 + $0x38] sm:$0xff]  ;;  %v408_v8 = vld [vmem:[%s7544_s16 + $0x40] sm:$0xff] }
  0x15   : > { %405 = vst [vmem:[#allocation2 + $0x68] sm:$0xff] %v404_v6  ;;  %407 = vst [vmem:[#allocation2 + $0x70] sm:$0xff] %v406_v7  ;;  %v410_v9 = vld [vmem:[%s7544_s16 + $0x48] sm:$0xff]  ;;  %v412_v10 = vld [vmem:[%s7544_s16 + $0x50] sm:$0xff] }
  0x16   : > { %409 = vst [vmem:[#allocation2 + $0x88] sm:$0xff] %v408_v8  ;;  %v414_v11 = vld [vmem:[%s7544_s16 + $0x58] sm:$0xff]  ;;  %411 = vst [vmem:[#allocation2 + $0x90] sm:$0xff] %v410_v9  ;;  %v416_v12 = vld [vmem:[%s7544_s16 + $0x60] sm:$0xff] }
  0x17   : > { %413 = vst [vmem:[#allocation2 + $0xa8] sm:$0xff] %v412_v10  ;;  %415 = vst [vmem:[#allocation2 + $0xb0] sm:$0xff] %v414_v11  ;;  %v418_v13 = vld [vmem:[%s7544_s16 + $0x68] sm:$0xff]  ;;  %v420_v14 = vld [vmem:[%s7544_s16 + $0x70] sm:$0xff] }
  0x18   : > { %417 = vst [vmem:[#allocation2 + $0xc8] sm:$0xff] %v416_v12  ;;  %419 = vst [vmem:[#allocation2 + $0xd0] sm:$0xff] %v418_v13  ;;  %v422_v15 = vld [vmem:[%s7544_s16 + $0x78] sm:$0xff]  ;;  %v424_v16 = vld [vmem:[%s7544_s16 + $0x80] sm:$0xff] }
  0x19   : > { %421 = vst [vmem:[#allocation2 + $0xe8] sm:$0xff] %v420_v14  ;;  %v426_v17 = vld [vmem:[%s7544_s16 + $0x88] sm:$0xff]  ;;  %423 = vst [vmem:[#allocation2 + $0xf0] sm:$0xff] %v422_v15  ;;  %v428_v18 = vld [vmem:[%s7544_s16 + $0x90] sm:$0xff] }
  0x1a   : > { %425 = vst [vmem:[#allocation2 + $0x108] sm:$0xff] %v424_v16  ;;  %427 = vst [vmem:[#allocation2 + $0x110] sm:$0xff] %v426_v17  ;;  %v430_v19 = vld [vmem:[%s7544_s16 + $0x98] sm:$0xff]  ;;  %v432_v20 = vld [vmem:[%s7544_s16 + $0xa0] sm:$0xff] }
  0x1b   : > { %429 = vst [vmem:[#allocation2 + $0x128] sm:$0xff] %v428_v18  ;;  %431 = vst [vmem:[#allocation2 + $0x130] sm:$0xff] %v430_v19  ;;  %v434_v21 = vld [vmem:[%s7544_s16 + $0xa8] sm:$0xff]  ;;  %v436_v22 = vld [vmem:[%s7544_s16 + $0xb0] sm:$0xff] }
  0x1c   : > { %433 = vst [vmem:[#allocation2 + $0x148] sm:$0xff] %v432_v20  ;;  %v438_v23 = vld [vmem:[%s7544_s16 + $0xb8] sm:$0xff]  ;;  %435 = vst [vmem:[#allocation2 + $0x150] sm:$0xff] %v434_v21  ;;  %v440_v24 = vld [vmem:[%s7544_s16 + $0xc0] sm:$0xff] }
  0x1d   : > { %437 = vst [vmem:[#allocation2 + $0x168] sm:$0xff] %v436_v22  ;;  %439 = vst [vmem:[#allocation2 + $0x170] sm:$0xff] %v438_v23  ;;  %v442_v25 = vld [vmem:[%s7544_s16 + $0xc8] sm:$0xff]  ;;  %v444_v26 = vld [vmem:[%s7544_s16 + $0xd0] sm:$0xff] }
  0x1e   : > { %441 = vst [vmem:[#allocation2 + $0x188] sm:$0xff] %v440_v24  ;;  %443 = vst [vmem:[#allocation2 + $0x190] sm:$0xff] %v442_v25  ;;  %v446_v27 = vld [vmem:[%s7544_s16 + $0xd8] sm:$0xff]  ;;  %v448_v28 = vld [vmem:[%s7544_s16 + $0xe0] sm:$0xff] }
  0x1f   : > { %445 = vst [vmem:[#allocation2 + $0x1a8] sm:$0xff] %v444_v26  ;;  %v450_v29 = vld [vmem:[%s7544_s16 + $0xe8] sm:$0xff]  ;;  %447 = vst [vmem:[#allocation2 + $0x1b0] sm:$0xff] %v446_v27  ;;  %v452_v30 = vld [vmem:[%s7544_s16 + $0xf0] sm:$0xff] }
  0x20   : > { %449 = vst [vmem:[#allocation2 + $0x1c8] sm:$0xff] %v448_v28  ;;  %451 = vst [vmem:[#allocation2 + $0x1d0] sm:$0xff] %v450_v29  ;;  %v454_v31 = vld [vmem:[%s7544_s16 + $0xf8] sm:$0xff]  ;;  %v456_v32 = vld [vmem:[%s7544_s16 + $0x100] sm:$0xff] }
  0x21   : > { %453 = vst [vmem:[#allocation2 + $0x1e8] sm:$0xff] %v452_v30  ;;  %455 = vst [vmem:[#allocation2 + $0x1f0] sm:$0xff] %v454_v31  ;;  %v458_v33 = vld [vmem:[%s7544_s16 + $0x108] sm:$0xff]  ;;  %v460_v34 = vld [vmem:[%s7544_s16 + $0x110] sm:$0xff] }
  0x22   : > { %457 = vst [vmem:[#allocation2 + $0x208] sm:$0xff] %v456_v32  ;;  %v462_v35 = vld [vmem:[%s7544_s16 + $0x118] sm:$0xff]  ;;  %459 = vst [vmem:[#allocation2 + $0x210] sm:$0xff] %v458_v33  ;;  %v464_v36 = vld [vmem:[%s7544_s16 + $0x120] sm:$0xff] }
  0x23   : > { %461 = vst [vmem:[#allocation2 + $0x228] sm:$0xff] %v460_v34  ;;  %463 = vst [vmem:[#allocation2 + $0x230] sm:$0xff] %v462_v35  ;;  %v466_v37 = vld [vmem:[%s7544_s16 + $0x128] sm:$0xff]  ;;  %v468_v38 = vld [vmem:[%s7544_s16 + $0x130] sm:$0xff] }
  0x24   : > { %465 = vst [vmem:[#allocation2 + $0x248] sm:$0xff] %v464_v36  ;;  %467 = vst [vmem:[#allocation2 + $0x250] sm:$0xff] %v466_v37  ;;  %v470_v39 = vld [vmem:[%s7544_s16 + $0x138] sm:$0xff]  ;;  %v472_v40 = vld [vmem:[%s7544_s16 + $0x140] sm:$0xff] }
  0x25   : > { %469 = vst [vmem:[#allocation2 + $0x268] sm:$0xff] %v468_v38  ;;  %v474_v41 = vld [vmem:[%s7544_s16 + $0x148] sm:$0xff]  ;;  %471 = vst [vmem:[#allocation2 + $0x270] sm:$0xff] %v470_v39  ;;  %v476_v42 = vld [vmem:[%s7544_s16 + $0x150] sm:$0xff] }
  0x26   : > { %473 = vst [vmem:[#allocation2 + $0x288] sm:$0xff] %v472_v40  ;;  %475 = vst [vmem:[#allocation2 + $0x290] sm:$0xff] %v474_v41  ;;  %v478_v43 = vld [vmem:[%s7544_s16 + $0x158] sm:$0xff] }
  0x27   : > { %477 = vst [vmem:[#allocation2 + $0x2a8] sm:$0xff] %v476_v42  ;;  %479 = vst [vmem:[#allocation2 + $0x2b0] sm:$0xff] %v478_v43 }
  0x28   : > { %487 = vsyncadd [#allocation4], 5632  ;;  %v7472_v44 = vmov 0.0  }
  0x29   : > { %489 = vst [vmem:[#allocation2 + $0x20] sm:$0xff] %v7472_v44  ;;  %490 = vst [vmem:[#allocation2 + $0x40] sm:$0xff] %v7472_v44 }
  0x2a   : > { %491 = vst [vmem:[#allocation2 + $0x60] sm:$0xff] %v7472_v44  ;;  %492 = vst [vmem:[#allocation2 + $0x80] sm:$0xff] %v7472_v44 }
  0x2b   : > { %493 = vst [vmem:[#allocation2 + $0xa0] sm:$0xff] %v7472_v44  ;;  %494 = vst [vmem:[#allocation2 + $0xc0] sm:$0xff] %v7472_v44 }
  0x2c   : > { %495 = vst [vmem:[#allocation2 + $0xe0] sm:$0xff] %v7472_v44  ;;  %496 = vst [vmem:[#allocation2 + $0x100] sm:$0xff] %v7472_v44 }
  0x2d   : > { %497 = vst [vmem:[#allocation2 + $0x120] sm:$0xff] %v7472_v44  ;;  %498 = vst [vmem:[#allocation2 + $0x140] sm:$0xff] %v7472_v44 }
  0x2e   : > { %499 = vst [vmem:[#allocation2 + $0x160] sm:$0xff] %v7472_v44  ;;  %500 = vst [vmem:[#allocation2 + $0x180] sm:$0xff] %v7472_v44 }
  0x2f   : > { %501 = vst [vmem:[#allocation2 + $0x1a0] sm:$0xff] %v7472_v44  ;;  %502 = vst [vmem:[#allocation2 + $0x1c0] sm:$0xff] %v7472_v44 }
  0x30   : > { %503 = vst [vmem:[#allocation2 + $0x1e0] sm:$0xff] %v7472_v44  ;;  %504 = vst [vmem:[#allocation2 + $0x200] sm:$0xff] %v7472_v44 }
  0x31   : > { %505 = vst [vmem:[#allocation2 + $0x220] sm:$0xff] %v7472_v44  ;;  %506 = vst [vmem:[#allocation2 + $0x240] sm:$0xff] %v7472_v44 }
  0x32   : > { %507 = vst [vmem:[#allocation2 + $0x260] sm:$0xff] %v7472_v44  ;;  %508 = vst [vmem:[#allocation2 + $0x280] sm:$0xff] %v7472_v44 }
  0x33   : > { %511 = vst [vmem:[#allocation2 + $0x38] sm:$0xff] %v7472_v44  ;;  %512 = vst [vmem:[#allocation2 + $0x58] sm:$0xff] %v7472_v44 }
  0x34   : > { %513 = vst [vmem:[#allocation2 + $0x78] sm:$0xff] %v7472_v44  ;;  %514 = vst [vmem:[#allocation2 + $0x98] sm:$0xff] %v7472_v44 }
  0x35   : > { %515 = vst [vmem:[#allocation2 + $0xb8] sm:$0xff] %v7472_v44  ;;  %516 = vst [vmem:[#allocation2 + $0xd8] sm:$0xff] %v7472_v44 }
  0x36   : > { %517 = vst [vmem:[#allocation2 + $0xf8] sm:$0xff] %v7472_v44  ;;  %518 = vst [vmem:[#allocation2 + $0x118] sm:$0xff] %v7472_v44 }
  0x37   : > { %519 = vst [vmem:[#allocation2 + $0x138] sm:$0xff] %v7472_v44  ;;  %520 = vst [vmem:[#allocation2 + $0x158] sm:$0xff] %v7472_v44 }
  0x38   : > { %521 = vst [vmem:[#allocation2 + $0x178] sm:$0xff] %v7472_v44  ;;  %522 = vst [vmem:[#allocation2 + $0x198] sm:$0xff] %v7472_v44 }
  0x39   : > { %523 = vst [vmem:[#allocation2 + $0x1b8] sm:$0xff] %v7472_v44  ;;  %524 = vst [vmem:[#allocation2 + $0x1d8] sm:$0xff] %v7472_v44 }
  0x3a   : > { %525 = vst [vmem:[#allocation2 + $0x1f8] sm:$0xff] %v7472_v44  ;;  %526 = vst [vmem:[#allocation2 + $0x218] sm:$0xff] %v7472_v44 }
  0x3b   : > { %527 = vst [vmem:[#allocation2 + $0x238] sm:$0xff] %v7472_v44  ;;  %528 = vst [vmem:[#allocation2 + $0x258] sm:$0xff] %v7472_v44 }
  0x3c   : > { %529 = vst [vmem:[#allocation2 + $0x278] sm:$0xff] %v7472_v44  ;;  %530 = vst [vmem:[#allocation2 + $0x298] sm:$0xff] %v7472_v44 }
  0x3d   : > { %7458 = dma.done.wait [#allocation4], 5632 }
  0x3e   : > { %7459 = vsyncadd [#allocation4], 4294961664  ;;  %v4956_v45 = vld [vmem:[%s8893_s1 + $0x80] sm:$0xff]  ;;  %v4957_v46 = vld [vmem:[%s8893_s1 + $0x88] sm:$0xff] }
  0x3f   : > { %v4958_v47 = vld [vmem:[%s8893_s1 + $0x90] sm:$0xff]  ;;  %v6748_v48 = vpack.c.bf16 %v4957_v46, %v4956_v45  ;;  %v4959_v49 = vld [vmem:[%s8893_s1 + $0x98] sm:$0xff]  ;;  %v4960_v51 = vld [vmem:[%s8893_s1 + $0xa0] sm:$0xff] }
  0x40   : > { %v6752_v50 = vpack.c.bf16 %v4959_v49, %v4958_v47  ;;  %v4961_v52 = vld [vmem:[%s8893_s1 + $0xa8] sm:$0xff]  ;;  %v4962_v55 = vld [vmem:[%s8893_s1 + $0xb0] sm:$0xff]  ;;  %v4963_v56 = vld [vmem:[%s8893_s1 + $0xb8] sm:$0xff] }
  0x41   : > { %6749 = vmatprep.subr.bf16.mxu0 %v6748_v48  ;;  %v6756_v53 = vpack.c.bf16 %v4961_v52, %v4960_v51  ;;  %v7653_v54 = vld [vmem:[#allocation2 + $0x28] sm:$0xff]  ;;  %v6760_v57 = vpack.c.bf16 %v4963_v56, %v4962_v55  ;;  %v4964_v58 = vld [vmem:[%s8893_s1 + $0xc0] sm:$0xff]  ;;  %v4966_v61 = vld [vmem:[%s8893_s1 + $0xd0] sm:$0xff] }
  0x42   : > { %6751 = vmatpush3.bf16.msra.mxu0 %v6748_v48  ;;  %5748 = vmatprep.mubr.f32.mxu0 %v7653_v54  ;;  %v4965_v59 = vld [vmem:[%s8893_s1 + $0xc8] sm:$0xff]  ;;  %v4967_v62 = vld [vmem:[%s8893_s1 + $0xd8] sm:$0xff]  ;;  %v4968_v0 = vld [vmem:[%s8893_s1 + $0xe0] sm:$0xff] }
  0x43   : > { %6753 = vmatprep.subr.bf16.mxu0 %v6752_v50  ;;  %v6764_v60 = vpack.c.bf16 %v4965_v59, %v4964_v58  ;;  %v6768_v63 = vpack.c.bf16 %v4967_v62, %v4966_v61  ;;  %v4969_v1 = vld [vmem:[%s8893_s1 + $0xe8] sm:$0xff]  ;;  %v4970_v3 = vld [vmem:[%s8893_s1 + $0xf0] sm:$0xff]  ;;  %v4971_v4 = vld [vmem:[%s8893_s1 + $0xf8] sm:$0xff] }
  0x44   : > { %v6772_v2 = vpack.c.bf16 %v4969_v1, %v4968_v0  ;;  %v6776_v5 = vpack.c.bf16 %v4971_v4, %v4970_v3  ;;  %v641_v6 = vld [vmem:[%s8893_s1] sm:$0xff]  ;;  %v642_v7 = vld [vmem:[%s8893_s1 + $0x8] sm:$0xff]  ;;  %v643_v9 = vld [vmem:[%s8893_s1 + $0x10] sm:$0xff] }
  0x45   : > { %v6780_v8 = vpack.c.bf16 %v642_v7, %v641_v6  ;;  %v644_v10 = vld [vmem:[%s8893_s1 + $0x18] sm:$0xff]  ;;  %v7698_v11 = vld [vmem:[#allocation2 + $0x30] sm:$0xff]  ;;  %v7700_v12 = vld [vmem:[#allocation2 + $0x48] sm:$0xff] }
  0x46   : > { %6755 = vmatpush3.bf16.msra.mxu0 %v6752_v50  ;;  %v6784_v13 = vpack.c.bf16 %v644_v10, %v643_v9  ;;  %v645_v14 = vld [vmem:[%s8893_s1 + $0x20] sm:$0xff]  ;;  %v646_v15 = vld [vmem:[%s8893_s1 + $0x28] sm:$0xff]  ;;  %v7710_v16 = vld [vmem:[#allocation2 + $0x50] sm:$0xff] }
  0x47   : > { %6757 = vmatprep.subr.bf16.mxu0 %v6756_v53  ;;  %v7712_v17 = vld [vmem:[#allocation2 + $0x68] sm:$0xff]  ;;  %v6788_v18 = vpack.c.bf16 %v646_v15, %v645_v14  ;;  %v647_v19 = vld [vmem:[%s8893_s1 + $0x30] sm:$0xff]  ;;  %v648_v20 = vld [vmem:[%s8893_s1 + $0x38] sm:$0xff] }
  0x48   : > { %v7722_v21 = vld [vmem:[#allocation2 + $0x70] sm:$0xff]  ;;  %v7724_v22 = vld [vmem:[#allocation2 + $0x88] sm:$0xff]  ;;  %v6792_v23 = vpack.c.bf16 %v648_v20, %v647_v19  ;;  %v649_v24 = vld [vmem:[%s8893_s1 + $0x40] sm:$0xff] }
  0x49   : > { %v650_v25 = vld [vmem:[%s8893_s1 + $0x48] sm:$0xff]  ;;  %v7734_v26 = vld [vmem:[#allocation2 + $0x90] sm:$0xff]  ;;  %v652_v30 = vld [vmem:[%s8893_s1 + $0x58] sm:$0xff] }
  0x4a   : > { %6759 = vmatpush3.bf16.msra.mxu0 %v6756_v53  ;;  %v7736_v27 = vld [vmem:[#allocation2 + $0xa8] sm:$0xff]  ;;  %v6796_v28 = vpack.c.bf16 %v650_v25, %v649_v24  ;;  %v651_v29 = vld [vmem:[%s8893_s1 + $0x50] sm:$0xff]  ;;  %v653_v34 = vld [vmem:[%s8893_s1 + $0x60] sm:$0xff] }
  0x4b   : > { %6761 = vmatprep.subr.bf16.mxu0 %v6760_v57  ;;  %v7746_v31 = vld [vmem:[#allocation2 + $0xb0] sm:$0xff]  ;;  %v7748_v32 = vld [vmem:[#allocation2 + $0xc8] sm:$0xff]  ;;  %v6800_v33 = vpack.c.bf16 %v652_v30, %v651_v29  ;;  %v656_v40 = vld [vmem:[%s8893_s1 + $0x78] sm:$0xff] }
  0x4c   : > { %v654_v35 = vld [vmem:[%s8893_s1 + $0x68] sm:$0xff]  ;;  %v7758_v36 = vld [vmem:[#allocation2 + $0xd0] sm:$0xff]  ;;  %v4972_v45 = vld [vmem:[%s8893_s1 + $0x100] sm:$0xff] }
  0x4d   : > { %v7760_v37 = vld [vmem:[#allocation2 + $0xe8] sm:$0xff]  ;;  %v6804_v38 = vpack.c.bf16 %v654_v35, %v653_v34  ;;  %v655_v39 = vld [vmem:[%s8893_s1 + $0x70] sm:$0xff]  ;;  %v4975_v14 = vld [vmem:[%s8893_s1 + $0x118] sm:$0xff] }
  0x4e   : > { %6763 = vmatpush3.bf16.msra.mxu0 %v6760_v57  ;;  %v7770_v41 = vld [vmem:[#allocation2 + $0xf0] sm:$0xff]  ;;  %v7772_v42 = vld [vmem:[#allocation2 + $0x108] sm:$0xff]  ;;  %v6808_v43 = vpack.c.bf16 %v656_v40, %v655_v39  ;;  %v4976_v19 = vld [vmem:[%s8893_s1 + $0x120] sm:$0xff] }
  0x4f   : > { %6765 = vmatprep.subr.bf16.mxu0 %v6764_v60  ;;  %v4973_v46 = vld [vmem:[%s8893_s1 + $0x108] sm:$0xff]  ;;  %v7782_v47 = vld [vmem:[#allocation2 + $0x110] sm:$0xff]  ;;  %v4979_v25 = vld [vmem:[%s8893_s1 + $0x138] sm:$0xff] }
  0x50   : > { %v7784_v48 = vld [vmem:[#allocation2 + $0x128] sm:$0xff]  ;;  %v6812_v49 = vpack.c.bf16 %v4973_v46, %v4972_v45  ;;  %v7788_v50 = vld [vmem:[#allocation2 + $0x130] sm:$0xff]  ;;  %v4984_v35 = vld [vmem:[%s8893_s1 + $0x160] sm:$0xff] }
  0x51   : > { %v7790_v51 = vld [vmem:[#allocation2 + $0x148] sm:$0xff]  ;;  %v7794_v52 = vld [vmem:[#allocation2 + $0x150] sm:$0xff]  ;;  %v4989_v46 = vld [vmem:[%s8895_s3 + $0x80] sm:$0xff] }
  0x52   : > { %6767 = vmatpush3.bf16.msra.mxu0 %v6764_v60  ;;  %v7796_v53 = vld [vmem:[#allocation2 + $0x168] sm:$0xff]  ;;  %v7800_v55 = vld [vmem:[#allocation2 + $0x170] sm:$0xff] }
  0x53   : > { %6769 = vmatprep.subr.bf16.mxu0 %v6768_v63  ;;  %v7802_v56 = vld [vmem:[#allocation2 + $0x188] sm:$0xff]  ;;  %v7806_v57 = vld [vmem:[#allocation2 + $0x190] sm:$0xff] }
  0x54   : > { %8923 = vst [vmem:[#allocation7_spill] sm:$0xff] %v7802_v56  ;;  %8924 = vst [vmem:[#allocation8_spill] sm:$0xff] %v7806_v57  ;;  %v7808_v58 = vld [vmem:[#allocation2 + $0x1a8] sm:$0xff]  ;;  %v7812_v59 = vld [vmem:[#allocation2 + $0x1b0] sm:$0xff] }
  0x55   : > { %8925 = vst [vmem:[#allocation9_spill] sm:$0xff] %v7808_v58  ;;  %8926 = vst [vmem:[#allocation10_spill] sm:$0xff] %v7812_v59  ;;  %v7814_v60 = vld [vmem:[#allocation2 + $0x1c8] sm:$0xff]  ;;  %v7818_v61 = vld [vmem:[#allocation2 + $0x1d0] sm:$0xff] }
  0x56   : > { %6771 = vmatpush3.bf16.msra.mxu0 %v6768_v63  ;;  %8927 = vst [vmem:[#allocation11_spill] sm:$0xff] %v7814_v60  ;;  %8928 = vst [vmem:[#allocation12_spill] sm:$0xff] %v7818_v61  ;;  %v7820_v62 = vld [vmem:[#allocation2 + $0x1e8] sm:$0xff]  ;;  %v7824_v63 = vld [vmem:[#allocation2 + $0x1f0] sm:$0xff] }
  0x57   : > { %6773 = vmatprep.subr.bf16.mxu0 %v6772_v2  ;;  %8929 = vst [vmem:[#allocation13_spill] sm:$0xff] %v7820_v62  ;;  %8930 = vst [vmem:[#allocation14_spill] sm:$0xff] %v7824_v63  ;;  %v7826_v0 = vld [vmem:[#allocation2 + $0x208] sm:$0xff]  ;;  %v7830_v1 = vld [vmem:[#allocation2 + $0x210] sm:$0xff] }
  0x58   : > { %8931 = vst [vmem:[#allocation15_spill] sm:$0xff] %v7826_v0  ;;  %8932 = vst [vmem:[#allocation16_spill] sm:$0xff] %v7830_v1  ;;  %v7836_v3 = vld [vmem:[#allocation2 + $0x230] sm:$0xff]  ;;  %v7838_v4 = vld [vmem:[#allocation2 + $0x248] sm:$0xff] }
  0x59   : > { %8934 = vst [vmem:[#allocation18_spill] sm:$0xff] %v7836_v3  ;;  %v7844_v6 = vld [vmem:[#allocation2 + $0x268] sm:$0xff]  ;;  %v7848_v7 = vld [vmem:[#allocation2 + $0x270] sm:$0xff] }
  0x5a   : > { %6775 = vmatpush3.bf16.msra.mxu0 %v6772_v2  ;;  %v7832_v2 = vld [vmem:[#allocation2 + $0x228] sm:$0xff]  ;;  %v7854_v9 = vld [vmem:[#allocation2 + $0x290] sm:$0xff] }
  0x5b   : > { %6777 = vmatprep.subr.bf16.mxu0 %v6776_v5  ;;  %8933 = vst [vmem:[#allocation17_spill] sm:$0xff] %v7832_v2  ;;  %v601_v10 = vld [vmem:[#allocation2 + $0x8] sm:$0xff]  ;;  %v602_v15 = vld [vmem:[#allocation2 + $0x10] sm:$0xff] }
  0x5c   : > { %v4977_v20 = vld [vmem:[%s8893_s1 + $0x128] sm:$0xff]  ;;  %v4978_v24 = vld [vmem:[%s8893_s1 + $0x130] sm:$0xff] }
  0x5d   : > { %v4981_v29 = vld [vmem:[%s8893_s1 + $0x148] sm:$0xff]  ;;  %v4982_v30 = vld [vmem:[%s8893_s1 + $0x150] sm:$0xff] }
  0x5e   : > { %6779 = vmatpush3.bf16.msra.mxu0 %v6776_v5  ;;  %v7842_v5 = vld [vmem:[#allocation2 + $0x250] sm:$0xff] }
  0x5f   : > { %6781 = vmatprep.subr.bf16.mxu0 %v6780_v8  ;;  %8935 = vst [vmem:[#allocation19_spill] sm:$0xff] %v7842_v5  ;;  %v4986_v40 = vld [vmem:[%s8893_s1 + $0x170] sm:$0xff] }
  0x61   : > { %5749 = vmatmul.mubr.f32.vlgmr.msra.gmra.mrb[0].mxu0 %v7698_v11 }
  0x62   : > { %6783 = vmatpush3.bf16.msra.mxu0 %v6780_v8  ;;  %5751 = vmatprep.mubr.f32.mxu0 %v7700_v12  ;;  %v7850_v8 = vld [vmem:[#allocation2 + $0x288] sm:$0xff] }
  0x63   : > { %6785 = vmatprep.subr.bf16.mxu0 %v6784_v13 }
  0x65   : > { %5752 = vmatmul.mubr.f32.gmra.mrb[2].mxu0 %v7710_v16 }
  0x66   : > { %5754 = vmatprep.mubr.f32.mxu0 %v7712_v17  ;;  %6787 = vmatpush3.bf16.msra.mxu0 %v6784_v13  ;;  %v4974_v13 = vld [vmem:[%s8893_s1 + $0x110] sm:$0xff] }
  0x67   : > { %6789 = vmatprep.subr.bf16.mxu0 %v6788_v18 }
  0x69   : > { %5755 = vmatmul.mubr.f32.gmra.mrb[4].mxu0 %v7722_v21 }
  0x6a   : > { %5757 = vmatprep.mubr.f32.mxu0 %v7724_v22  ;;  %6791 = vmatpush3.bf16.msra.mxu0 %v6788_v18  ;;  %v6816_v18 = vpack.c.bf16 %v4975_v14, %v4974_v13  ;;  %v4992_v14 = vld [vmem:[%s8895_s3 + $0x98] sm:$0xff] }
  0x6b   : > { %6793 = vmatprep.subr.bf16.mxu0 %v6792_v23 }
  0x6d   : > { %5758 = vmatmul.mubr.f32.gmra.mrb[6].mxu0 %v7734_v26 }
  0x6e   : > { %5760 = vmatprep.mubr.f32.mxu0 %v7736_v27  ;;  %6795 = vmatpush3.bf16.msra.mxu0 %v6792_v23  ;;  %v6820_v23 = vpack.c.bf16 %v4977_v20, %v4976_v19  ;;  %v4994_v19 = vld [vmem:[%s8895_s3 + $0xa8] sm:$0xff] }
  0x6f   : > { %6797 = vmatprep.subr.bf16.mxu0 %v6796_v28 }
  0x71   : > { %5761 = vmatmul.mubr.f32.gmra.mrb[8].mxu0 %v7746_v31 }
  0x72   : > { %5763 = vmatprep.mubr.f32.mxu0 %v7748_v32  ;;  %6799 = vmatpush3.bf16.msra.mxu0 %v6796_v28  ;;  %v6824_v28 = vpack.c.bf16 %v4979_v25, %v4978_v24  ;;  %v4996_v24 = vld [vmem:[%s8895_s3 + $0xb8] sm:$0xff] }
  0x73   : > { %6801 = vmatprep.subr.bf16.mxu0 %v6800_v33 }
  0x75   : > { %5764 = vmatmul.mubr.f32.gmra.mrb[10].mxu0 %v7758_v36 }
  0x76   : > { %5766 = vmatprep.mubr.f32.mxu0 %v7760_v37  ;;  %6803 = vmatpush3.bf16.msra.mxu0 %v6800_v33  ;;  %v4983_v33 = vld [vmem:[%s8893_s1 + $0x158] sm:$0xff] }
  0x77   : > { %6805 = vmatprep.subr.bf16.mxu0 %v6804_v38  ;;  %v6832_v34 = vpack.c.bf16 %v4983_v33, %v4982_v30  ;;  %v5004_v33 = vld [vmem:[%s8895_s3 + $0xf8] sm:$0xff] }
  0x79   : > { %5767 = vmatmul.mubr.f32.gmra.mrb[12].mxu0 %v7770_v41 }
  0x7a   : > { %5769 = vmatprep.mubr.f32.mxu0 %v7772_v42  ;;  %6807 = vmatpush3.bf16.msra.mxu0 %v6804_v38  ;;  %v4985_v38 = vld [vmem:[%s8893_s1 + $0x168] sm:$0xff] }
  0x7b   : > { %6809 = vmatprep.subr.bf16.mxu0 %v6808_v43  ;;  %v6836_v39 = vpack.c.bf16 %v4985_v38, %v4984_v35  ;;  %v1775_v35 = vld [vmem:[%s8895_s3] sm:$0xff]  ;;  %v1776_v38 = vld [vmem:[%s8895_s3 + $0x8] sm:$0xff] }
  0x7d   : > { %5770 = vmatmul.mubr.f32.gmra.mrb[14].mxu0 %v7782_v47 }
  0x7e   : > { %5772 = vmatprep.mubr.f32.mxu0 %v7784_v48  ;;  %6811 = vmatpush3.bf16.msra.mxu0 %v6808_v43  ;;  %v4987_v43 = vld [vmem:[%s8893_s1 + $0x178] sm:$0xff] }
  0x7f   : > { %6813 = vmatprep.subr.bf16.mxu0 %v6812_v49  ;;  %v6840_v45 = vpack.c.bf16 %v4987_v43, %v4986_v40  ;;  %v8032_v40 = vld [vmem:[%s8894_s2] ss:$0 sm:$0xff] }
  0x81   : > { %5773 = vmatmul.mubr.f32.gmra.mrb[16].mxu0 %v7788_v50 }
  0x82   : > { %5775 = vmatprep.mubr.f32.mxu0 %v7790_v51 }
  0x85   : > { %5776 = vmatmul.mubr.f32.gmra.mrb[18].mxu0 %v7794_v52 }
  0x86   : > { %5778 = vmatprep.mubr.f32.mxu0 %v7796_v53 }
  0x89   : > { %5779 = vmatmul.mubr.f32.gmra.mrb[20].mxu0 %v7800_v55 }
  0x8a   : > { %5781 = vmatprep.mubr.f32.mxu0 %v7802_v56 }
  0x8d   : > { %5782 = vmatmul.mubr.f32.gmra.mrb[22].mxu0 %v7806_v57 }
  0x8e   : > { %5784 = vmatprep.mubr.f32.mxu0 %v7808_v58 }
  0x91   : > { %5785 = vmatmul.mubr.f32.gmra.mrb[24].mxu0 %v7812_v59 }
  0x92   : > { %5787 = vmatprep.mubr.f32.mxu0 %v7814_v60 }
  0x95   : > { %5788 = vmatmul.mubr.f32.gmra.mrb[26].mxu0 %v7818_v61 }
  0x96   : > { %5790 = vmatprep.mubr.f32.mxu0 %v7820_v62 }
  0x99   : > { %5791 = vmatmul.mubr.f32.gmra.mrb[28].mxu0 %v7824_v63 }
  0x9a   : > { %5793 = vmatprep.mubr.f32.mxu0 %v7826_v0 }
  0x9d   : > { %5794 = vmatmul.mubr.f32.gmra.mrb[30].mxu0 %v7830_v1 }
  0x9e   : > { %5796 = vmatprep.mubr.f32.mxu0 %v7832_v2 }
  0xa1   : > { %5797 = vmatmul.mubr.f32.gmra.mrb[32].mxu0 %v7836_v3 }
  0xa2   : > { %5799 = vmatprep.mubr.f32.mxu0 %v7838_v4 }
  0xa5   : > { %5800 = vmatmul.mubr.f32.gmra.mrb[34].mxu0 %v7842_v5 }
  0xa6   : > { %5802 = vmatprep.mubr.f32.mxu0 %v7844_v6 }
  0xa9   : > { %5803 = vmatmul.mubr.f32.gmra.mrb[36].mxu0 %v7848_v7 }
  0xaa   : > { %5805 = vmatprep.mubr.f32.mxu0 %v7850_v8 }
  0xad   : > { %5806 = vmatmul.mubr.f32.gmra.mrb[38].mxu0 %v7854_v9 }
  0xae   : > { %5840 = vmatprep.mubr.f32.mxu0 %v601_v10  ;;  %v4991_v10 = vld [vmem:[%s8895_s3 + $0x90] sm:$0xff] }
  0xb1   : > { %5841 = vmatmul.mubr.f32.vlgmr.msra.gmra.mrb[0].mxu0 %v602_v15  ;;  %v6848_v15 = vpack.c.bf16 %v4992_v14, %v4991_v10  ;;  %v1777_v10 = vld [vmem:[%s8895_s3 + $0x10] sm:$0xff] }
  0xb2   : > { %6815 = vmatpush3.bf16.msra.mxu0 %v6812_v49  ;;  %5843 = vmatprep.mubr.f32.mxu0 %v7653_v54  ;;  %v4980_v54 = vld [vmem:[%s8893_s1 + $0x140] sm:$0xff]  ;;  %v4990_v49 = vld [vmem:[%s8895_s3 + $0x88] sm:$0xff] }
  0xb3   : > { %6817 = vmatprep.subr.bf16.mxu0 %v6816_v18  ;;  %v6844_v13 = vpack.c.bf16 %v4990_v49, %v4989_v46 }
  0xb5   : > { %5844 = vmatmul.mubr.f32.gmra.mrb[2].mxu0 %v7698_v11  ;;  %v6828_v11 = vpack.c.bf16 %v4981_v29, %v4980_v54  ;;  %6845 = vmatprep.subr.bf16.mxu1 %v6844_v13  ;;  %v4998_v54 = vld [vmem:[%s8895_s3 + $0xc8] sm:$0xff] }
  0xb6   : > { %5846 = vmatprep.mubr.f32.mxu0 %v7700_v12  ;;  %6819 = vmatpush3.bf16.msra.mxu0 %v6816_v18  ;;  %v4993_v18 = vld [vmem:[%s8895_s3 + $0xa0] sm:$0xff] }
  0xb7   : > { %6821 = vmatprep.subr.bf16.mxu0 %v6820_v23  ;;  %6847 = vmatpush3.bf16.msra.mxu1 %v6844_v13  ;;  %v6852_v20 = vpack.c.bf16 %v4994_v19, %v4993_v18  ;;  %v1778_v13 = vld [vmem:[%s8895_s3 + $0x18] sm:$0xff] }
  0xb8   : > { %6849 = vmatprep.subr.bf16.mxu1 %v6848_v15 }
  0xb9   : > { %5847 = vmatmul.mubr.f32.gmra.mrb[4].mxu0 %v7710_v16 }
  0xba   : > { %5849 = vmatprep.mubr.f32.mxu0 %v7712_v17  ;;  %6823 = vmatpush3.bf16.msra.mxu0 %v6820_v23  ;;  %v4995_v23 = vld [vmem:[%s8895_s3 + $0xb0] sm:$0xff] }
  0xbb   : > { %6825 = vmatprep.subr.bf16.mxu0 %v6824_v28  ;;  %6851 = vmatpush3.bf16.msra.mxu1 %v6848_v15  ;;  %v6856_v25 = vpack.c.bf16 %v4996_v24, %v4995_v23  ;;  %v6880_v23 = vpack.c.bf16 %v1778_v13, %v1777_v10  ;;  %v1783_v10 = vld [vmem:[%s8895_s3 + $0x40] sm:$0xff]  ;;  %v1784_v13 = vld [vmem:[%s8895_s3 + $0x48] sm:$0xff] }
  0xbc   : > { %6853 = vmatprep.subr.bf16.mxu1 %v6852_v20 }
  0xbd   : > { %5850 = vmatmul.mubr.f32.gmra.mrb[6].mxu0 %v7722_v21 }
  0xbe   : > { %5852 = vmatprep.mubr.f32.mxu0 %v7724_v22  ;;  %6827 = vmatpush3.bf16.msra.mxu0 %v6824_v28  ;;  %v4997_v28 = vld [vmem:[%s8895_s3 + $0xc0] sm:$0xff] }
  0xbf   : > { %6829 = vmatprep.subr.bf16.mxu0 %v6828_v11  ;;  %6855 = vmatpush3.bf16.msra.mxu1 %v6852_v20  ;;  %v6860_v29 = vpack.c.bf16 %v4998_v54, %v4997_v28  ;;  %v1780_v28 = vld [vmem:[%s8895_s3 + $0x28] sm:$0xff] }
  0xc0   : > { %6857 = vmatprep.subr.bf16.mxu1 %v6856_v25 }
  0xc1   : > { %5853 = vmatmul.mubr.f32.gmra.mrb[8].mxu0 %v7734_v26 }
  0xc2   : > { %5855 = vmatprep.mubr.f32.mxu0 %v7736_v27  ;;  %6831 = vmatpush3.bf16.msra.mxu0 %v6828_v11  ;;  %v4999_v11 = vld [vmem:[%s8895_s3 + $0xd0] sm:$0xff] }
  0xc3   : > { %6833 = vmatprep.subr.bf16.mxu0 %v6832_v34  ;;  %6859 = vmatpush3.bf16.msra.mxu1 %v6856_v25  ;;  %v1779_v25 = vld [vmem:[%s8895_s3 + $0x20] sm:$0xff] }
  0xc4   : > { %6861 = vmatprep.subr.bf16.mxu1 %v6860_v29 }
  0xc5   : > { %5856 = vmatmul.mubr.f32.gmra.mrb[10].mxu0 %v7746_v31 }
  0xc6   : > { %5858 = vmatprep.mubr.f32.mxu0 %v7748_v32  ;;  %6835 = vmatpush3.bf16.msra.mxu0 %v6832_v34 }
  0xc7   : > { %6837 = vmatprep.subr.bf16.mxu0 %v6836_v39  ;;  %6863 = vmatpush3.bf16.msra.mxu1 %v6860_v29 }
  0xc9   : > { %5859 = vmatmul.mubr.f32.gmra.mrb[12].mxu0 %v7758_v36 }
  0xca   : > { %5861 = vmatprep.mubr.f32.mxu0 %v7760_v37  ;;  %6839 = vmatpush3.bf16.msra.mxu0 %v6836_v39  ;;  %v6876_v39 = vpack.c.bf16 %v1776_v38, %v1775_v35 }
  0xcb   : > { %6841 = vmatprep.subr.bf16.mxu0 %v6840_v45 }
  0xcd   : > { %5862 = vmatmul.mubr.f32.gmra.mrb[14].mxu0 %v7770_v41 }
  0xce   : > { %5864 = vmatprep.mubr.f32.mxu0 %v7772_v42  ;;  %6843 = vmatpush3.bf16.msra.mxu0 %v6840_v45 }
  0xd1   : > { %5865 = vmatmul.mubr.f32.gmra.mrb[16].mxu0 %v7782_v47 }
  0xd2   : > { %5867 = vmatprep.mubr.f32.mxu0 %v7784_v48 }
  0xd5   : > { %5868 = vmatmul.mubr.f32.gmra.mrb[18].mxu0 %v7788_v50 }
  0xd6   : > { %5870 = vmatprep.mubr.f32.mxu0 %v7790_v51 }
  0xd9   : > { %5871 = vmatmul.mubr.f32.gmra.mrb[20].mxu0 %v7794_v52 }
  0xda   : > { %5873 = vmatprep.mubr.f32.mxu0 %v7796_v53 }
  0xdd   : > { %5874 = vmatmul.mubr.f32.gmra.mrb[22].mxu0 %v7800_v55 }
  0xde   : > { %5876 = vmatprep.mubr.f32.mxu0 %v7802_v56 }
  0xe1   : > { %5877 = vmatmul.mubr.f32.gmra.mrb[24].mxu0 %v7806_v57 }
  0xe2   : > { %5879 = vmatprep.mubr.f32.mxu0 %v7808_v58 }
  0xe5   : > { %5880 = vmatmul.mubr.f32.gmra.mrb[26].mxu0 %v7812_v59 }
  0xe6   : > { %5882 = vmatprep.mubr.f32.mxu0 %v7814_v60 }
  0xe9   : > { %5883 = vmatmul.mubr.f32.gmra.mrb[28].mxu0 %v7818_v61 }
  0xea   : > { %5885 = vmatprep.mubr.f32.mxu0 %v7820_v62 }
  0xed   : > { %5886 = vmatmul.mubr.f32.gmra.mrb[30].mxu0 %v7824_v63 }
  0xee   : > { %5888 = vmatprep.mubr.f32.mxu0 %v7826_v0 }
  0xf1   : > { %5889 = vmatmul.mubr.f32.gmra.mrb[32].mxu0 %v7830_v1 }
  0xf2   : > { %5891 = vmatprep.mubr.f32.mxu0 %v7832_v2 }
  0xf5   : > { %5892 = vmatmul.mubr.f32.gmra.mrb[34].mxu0 %v7836_v3 }
  0xf6   : > { %5894 = vmatprep.mubr.f32.mxu0 %v7838_v4 }
  0xf9   : > { %5895 = vmatmul.mubr.f32.gmra.mrb[36].mxu0 %v7842_v5 }
  0xfa   : > { %5897 = vmatprep.mubr.f32.mxu0 %v7844_v6 }
  0xfd   : > { %5898 = vmatmul.mubr.f32.gmra.mrb[38].mxu0 %v7848_v7 }
  0xfe   : > { %5932 = vmatprep.mubr.f32.mxu0 %v7700_v12  ;;  %v1284_v12 = vld [vmem:[#allocation2 + $0x2a8] sm:$0xff] }
 0x101   : > { %5933 = vmatmul.mubr.f32.vlgmr.msra.gmra.mrb[0].mxu0 %v7710_v16  ;;  %v1285_v16 = vld [vmem:[#allocation2 + $0x2b0] sm:$0xff] }
 0x102   : > { %5935 = vmatprep.mubr.f32.mxu0 %v7712_v17 }
 0x105   : > { %5936 = vmatmul.mubr.f32.gmra.mrb[2].mxu0 %v7722_v21 }
 0x106   : > { %5938 = vmatprep.mubr.f32.mxu0 %v7724_v22 }
 0x109   : > { %5939 = vmatmul.mubr.f32.gmra.mrb[4].mxu0 %v7734_v26 }
 0x10a   : > { %5941 = vmatprep.mubr.f32.mxu0 %v7736_v27 }
 0x10d   : > { %5942 = vmatmul.mubr.f32.gmra.mrb[6].mxu0 %v7746_v31 }
 0x10e   : > { %5944 = vmatprep.mubr.f32.mxu0 %v7748_v32 }
 0x111   : > { %5945 = vmatmul.mubr.f32.gmra.mrb[8].mxu0 %v7758_v36 }
 0x112   : > { %5947 = vmatprep.mubr.f32.mxu0 %v7760_v37 }
 0x115   : > { %5948 = vmatmul.mubr.f32.gmra.mrb[10].mxu0 %v7770_v41 }
 0x116   : > { %5950 = vmatprep.mubr.f32.mxu0 %v7772_v42 }
 0x119   : > { %5951 = vmatmul.mubr.f32.gmra.mrb[12].mxu0 %v7782_v47 }
 0x11a   : > { %5953 = vmatprep.mubr.f32.mxu0 %v7784_v48 }
 0x11d   : > { %5954 = vmatmul.mubr.f32.gmra.mrb[14].mxu0 %v7788_v50 }
 0x11e   : > { %5956 = vmatprep.mubr.f32.mxu0 %v7790_v51 }
 0x121   : > { %5957 = vmatmul.mubr.f32.gmra.mrb[16].mxu0 %v7794_v52 }
 0x122   : > { %5959 = vmatprep.mubr.f32.mxu0 %v7796_v53 }
 0x125   : > { %5960 = vmatmul.mubr.f32.gmra.mrb[18].mxu0 %v7800_v55 }
 0x126   : > { %5962 = vmatprep.mubr.f32.mxu0 %v7802_v56  ;;  %v5042_v56 = vld [vmem:[%s8897_s5 + $0x120] sm:$0xff] }
 0x129   : > { %5963 = vmatmul.mubr.f32.gmra.mrb[20].mxu0 %v7806_v57 }
 0x12a   : > { %5965 = vmatprep.mubr.f32.mxu0 %v7808_v58 }
 0x12d   : > { %5966 = vmatmul.mubr.f32.gmra.mrb[22].mxu0 %v7812_v59 }
 0x12e   : > { %5968 = vmatprep.mubr.f32.mxu0 %v7814_v60 }
 0x131   : > { %5969 = vmatmul.mubr.f32.gmra.mrb[24].mxu0 %v7818_v61 }
 0x132   : > { %5971 = vmatprep.mubr.f32.mxu0 %v7820_v62 }
 0x135   : > { %5972 = vmatmul.mubr.f32.gmra.mrb[26].mxu0 %v7824_v63 }
 0x136   : > { %5974 = vmatprep.mubr.f32.mxu0 %v7826_v0 }
 0x139   : > { %5975 = vmatmul.mubr.f32.gmra.mrb[28].mxu0 %v7830_v1 }
 0x13a   : > { %5977 = vmatprep.mubr.f32.mxu0 %v7832_v2 }
 0x13d   : > { %5978 = vmatmul.mubr.f32.gmra.mrb[30].mxu0 %v7836_v3 }
 0x13e   : > { %5980 = vmatprep.mubr.f32.mxu0 %v7838_v4  ;;  %v5000_v4 = vld [vmem:[%s8895_s3 + $0xd8] sm:$0xff] }
 0x13f   : > { %v6864_v30 = vpack.c.bf16 %v5000_v4, %v4999_v11  ;;  %v6884_v4 = vpack.c.bf16 %v1780_v28, %v1779_v25 }
 0x141   : > { %5981 = vmatmul.mubr.f32.gmra.mrb[32].mxu0 %v7842_v5  ;;  %6865 = vmatprep.subr.bf16.mxu1 %v6864_v30 }
 0x142   : > { %5983 = vmatprep.mubr.f32.mxu0 %v7844_v6  ;;  %6867 = vmatpush3.bf16.msra.mxu1 %v6864_v30  ;;  %v5001_v6 = vld [vmem:[%s8895_s3 + $0xe0] sm:$0xff] }
 0x145   : > { %5984 = vmatmul.mubr.f32.gmra.mrb[34].mxu0 %v7848_v7  ;;  %v5002_v7 = vld [vmem:[%s8895_s3 + $0xe8] sm:$0xff] }
 0x146   : > { %5986 = vmatprep.mubr.f32.mxu0 %v7850_v8  ;;  %v6868_v8 = vpack.c.bf16 %v5002_v7, %v5001_v6  ;;  %v1781_v6 = vld [vmem:[%s8895_s3 + $0x30] sm:$0xff]  ;;  %v1782_v7 = vld [vmem:[%s8895_s3 + $0x38] sm:$0xff] }
 0x148   : > { %6869 = vmatprep.subr.bf16.mxu1 %v6868_v8 }
 0x149   : > { %5987 = vmatmul.mubr.f32.gmra.mrb[36].mxu0 %v7854_v9  ;;  %6871 = vmatpush3.bf16.msra.mxu1 %v6868_v8  ;;  %v5003_v9 = vld [vmem:[%s8895_s3 + $0xf0] sm:$0xff] }
 0x14a   : > { %5989 = vmatprep.mubr.f32.mxu0 %v1284_v12  ;;  %v6872_v34 = vpack.c.bf16 %v5004_v33, %v5003_v9 }
 0x14c   : > { %6873 = vmatprep.subr.bf16.mxu1 %v6872_v34 }
 0x14d   : > { %5990 = vmatmul.mubr.f32.gmra.mrb[38].mxu0 %v1285_v16  ;;  %6875 = vmatpush3.bf16.msra.mxu1 %v6872_v34 }
 0x14e   : > { %6877 = vmatprep.subr.bf16.mxu1 %v6876_v39 }
 0x1d4   : > { %v5934_v43 = vpop.f32.mrb[0].mxu0 }
 0x1d5   : > { %v1616_v45 = vadd.f32 %v5934_v43, %v8032_v40  ;;  %v1369_v46 = vpop.f32.mrb[1].mxu0 }
 0x1d6   : > { %v1615_v49 = vadd.f32 %v8032_v40, %v1369_v46 }
 0x1d7   : > { %v1656_v14 = vmax.f32 %v1616_v45, 0.0 }
 0x1d8   : > { %v1655_v15 = vmax.f32 %v1615_v49, 0.0  ;;  %v5937_v18 = vpop.f32.mrb[2].mxu0 }
 0x1d9   : > { %1696 = vst [vmem:[#allocation2 + $0x30] sm:$0xff] %v1656_v14  ;;  %v1618_v19 = vadd.f32 %v5937_v18, %v8032_v40  ;;  %v1379_v20 = vpop.f32.mrb[3].mxu0 }
 0x1da   : > { %1695 = vst [vmem:[#allocation2 + $0x28] sm:$0xff] %v1655_v15  ;;  %v1617_v24 = vadd.f32 %v8032_v40, %v1379_v20  ;;  %6024 = vmatprep.mubr.f32.mxu1 %v1655_v15 }
 0x1db   : > { %v1658_v54 = vmax.f32 %v1618_v19, 0.0  ;;  %6025 = vmatmul.mubr.f32.vlgmr.msra.gmra.mrb[0].mxu1 %v1656_v14 }
 0x1dc   : > { %v1657_v29 = vmax.f32 %v1617_v24, 0.0  ;;  %v5940_v12 = vpop.f32.mrb[4].mxu0  ;;  %6879 = vmatpush3.bf16.msra.mxu1 %v6876_v39  ;;  %v6888_v39 = vpack.c.bf16 %v1782_v7, %v1781_v6  ;;  %v6892_v24 = vpack.c.bf16 %v1784_v13, %v1783_v10 }
 0x1dd   : > { %1698 = vst [vmem:[#allocation2 + $0x50] sm:$0xff] %v1658_v54  ;;  %v1620_v16 = vadd.f32 %v5940_v12, %v8032_v40  ;;  %v1389_v11 = vpop.f32.mrb[5].mxu0  ;;  %6881 = vmatprep.subr.bf16.mxu1 %v6880_v23  ;;  %v1785_v12 = vld [vmem:[%s8895_s3 + $0x50] sm:$0xff] }
 0x1de   : > { %1697 = vst [vmem:[#allocation2 + $0x48] sm:$0xff] %v1657_v29  ;;  %v1619_v30 = vadd.f32 %v8032_v40, %v1389_v11  ;;  %6027 = vmatprep.mubr.f32.mxu1 %v1657_v29 }
 0x1df   : > { %v1660_v8 = vmax.f32 %v1620_v16, 0.0  ;;  %6028 = vmatmul.mubr.f32.gmra.mrb[2].mxu1 %v1658_v54  ;;  %v1786_v16 = vld [vmem:[%s8895_s3 + $0x58] sm:$0xff] }
 0x1e0   : > { %v1659_v9 = vmax.f32 %v1619_v30, 0.0  ;;  %v5943_v33 = vpop.f32.mrb[6].mxu0  ;;  %6883 = vmatpush3.bf16.msra.mxu1 %v6880_v23  ;;  %v8058_v34 = vld [vmem:[#allocation2 + $0x31] sm:$0xff] }
 0x1e1   : > { %1700 = vst [vmem:[#allocation2 + $0x70] sm:$0xff] %v1660_v8  ;;  %v1622_v35 = vadd.f32 %v5943_v33, %v8032_v40  ;;  %v1399_v38 = vpop.f32.mrb[7].mxu0  ;;  %6885 = vmatprep.subr.bf16.mxu1 %v6884_v4  ;;  %v8061_v43 = vld [vmem:[#allocation2 + $0x27] sm:$0xff]  ;;  %v8063_v45 = vld [vmem:[#allocation2 + $0x2f] sm:$0xff] }
 0x1e2   : > { %v8065_v46 = vld [vmem:[#allocation2 + $0x29] sm:$0xff]  ;;  %1699 = vst [vmem:[#allocation2 + $0x68] sm:$0xff] %v1659_v9  ;;  %v1621_v49 = vadd.f32 %v8032_v40, %v1399_v38  ;;  %6030 = vmatprep.mubr.f32.mxu1 %v1659_v9  ;;  %v1787_v33 = vld [vmem:[%s8895_s3 + $0x60] sm:$0xff] }
 0x1e3   : > { %2872 = vst [vmem:[#allocation2 + $0x30] sm:$0xff] %v7472_v44  ;;  %2871 = vst [vmem:[#allocation2 + $0x28] sm:$0xff] %v7472_v44  ;;  %v1662_v14 = vmax.f32 %v1622_v35, 0.0  ;;  %6031 = vmatmul.mubr.f32.gmra.mrb[4].mxu1 %v1660_v8  ;;  %v6896_v8 = vpack.c.bf16 %v1786_v16, %v1785_v12  ;;  %v1788_v35 = vld [vmem:[%s8895_s3 + $0x68] sm:$0xff] }
 0x1e4   : > { %v1661_v15 = vmax.f32 %v1621_v49, 0.0  ;;  %v5946_v18 = vpop.f32.mrb[8].mxu0  ;;  %6887 = vmatpush3.bf16.msra.mxu1 %v6884_v4  ;;  %v8076_v19 = vld [vmem:[#allocation2 + $0x51] sm:$0xff] }
 0x1e5   : > { %1702 = vst [vmem:[#allocation2 + $0x90] sm:$0xff] %v1662_v14  ;;  %v1624_v20 = vadd.f32 %v5946_v18, %v8032_v40  ;;  %v1409_v23 = vpop.f32.mrb[9].mxu0  ;;  %6889 = vmatprep.subr.bf16.mxu1 %v6888_v39  ;;  %v8079_v25 = vld [vmem:[#allocation2 + $0x47] sm:$0xff]  ;;  %v8081_v28 = vld [vmem:[#allocation2 + $0x4f] sm:$0xff] }
 0x1e6   : > { %v8083_v54 = vld [vmem:[#allocation2 + $0x49] sm:$0xff]  ;;  %1701 = vst [vmem:[#allocation2 + $0x88] sm:$0xff] %v1661_v15  ;;  %v1623_v29 = vadd.f32 %v8032_v40, %v1409_v23  ;;  %6033 = vmatprep.mubr.f32.mxu1 %v1661_v15 }
 0x1e7   : > { %2874 = vst [vmem:[#allocation2 + $0x50] sm:$0xff] %v7472_v44  ;;  %2873 = vst [vmem:[#allocation2 + $0x48] sm:$0xff] %v7472_v44  ;;  %v1664_v11 = vmax.f32 %v1624_v20, 0.0  ;;  %6034 = vmatmul.mubr.f32.gmra.mrb[6].mxu1 %v1662_v14  ;;  %v6900_v14 = vpack.c.bf16 %v1788_v35, %v1787_v33  ;;  %v1789_v18 = vld [vmem:[%s8895_s3 + $0x70] sm:$0xff]  ;;  %v1790_v20 = vld [vmem:[%s8895_s3 + $0x78] sm:$0xff] }
 0x1e8   : > { %v1663_v4 = vmax.f32 %v1623_v29, 0.0  ;;  %v5949_v30 = vpop.f32.mrb[10].mxu0  ;;  %6891 = vmatpush3.bf16.msra.mxu1 %v6888_v39 }
 0x1e9   : > { %1704 = vst [vmem:[#allocation2 + $0xb0] sm:$0xff] %v1664_v11  ;;  %v1626_v6 = vadd.f32 %v5949_v30, %v8032_v40  ;;  %v1419_v7 = vpop.f32.mrb[11].mxu0  ;;  %6893 = vmatprep.subr.bf16.mxu1 %v6892_v24  ;;  %v5005_v30 = vld [vmem:[%s8895_s3 + $0x100] sm:$0xff] }
 0x1ea   : > { %1703 = vst [vmem:[#allocation2 + $0xa8] sm:$0xff] %v1663_v4  ;;  %v1625_v9 = vadd.f32 %v8032_v40, %v1419_v7  ;;  %6036 = vmatprep.mubr.f32.mxu1 %v1663_v4 }
 0x1eb   : > { %v1666_v38 = vmax.f32 %v1626_v6, 0.0  ;;  %6037 = vmatmul.mubr.f32.gmra.mrb[8].mxu1 %v1664_v11  ;;  %v6904_v11 = vpack.c.bf16 %v1790_v20, %v1789_v18  ;;  %v5006_v6 = vld [vmem:[%s8895_s3 + $0x108] sm:$0xff] }
 0x1ec   : > { %v1665_v39 = vmax.f32 %v1625_v9, 0.0  ;;  %v5952_v49 = vpop.f32.mrb[12].mxu0  ;;  %6895 = vmatpush3.bf16.msra.mxu1 %v6892_v24 }
 0x1ed   : > { %1706 = vst [vmem:[#allocation2 + $0xd0] sm:$0xff] %v1666_v38  ;;  %v1628_v10 = vadd.f32 %v5952_v49, %v8032_v40  ;;  %v1429_v13 = vpop.f32.mrb[13].mxu0  ;;  %6897 = vmatprep.subr.bf16.mxu1 %v6896_v8 }
 0x1ee   : > { %1705 = vst [vmem:[#allocation2 + $0xc8] sm:$0xff] %v1665_v39  ;;  %v1627_v15 = vadd.f32 %v8032_v40, %v1429_v13  ;;  %6039 = vmatprep.mubr.f32.mxu1 %v1665_v39 }
 0x1ef   : > { %v1668_v23 = vmax.f32 %v1628_v10, 0.0  ;;  %6040 = vmatmul.mubr.f32.gmra.mrb[10].mxu1 %v1666_v38  ;;  %v8119_v38 = vpack.c.bf16 %v5006_v6, %v5005_v30 }
 0x1f0   : > { %v1667_v24 = vmax.f32 %v1627_v15, 0.0  ;;  %v5955_v29 = vpop.f32.mrb[14].mxu0  ;;  %6899 = vmatpush3.bf16.msra.mxu1 %v6896_v8 }
 0x1f1   : > { %1708 = vst [vmem:[#allocation2 + $0xf0] sm:$0xff] %v1668_v23  ;;  %v1630_v12 = vadd.f32 %v5955_v29, %v8032_v40  ;;  %v1439_v16 = vpop.f32.mrb[15].mxu0  ;;  %6901 = vmatprep.subr.bf16.mxu1 %v6900_v14 }
 0x1f2   : > { %1707 = vst [vmem:[#allocation2 + $0xe8] sm:$0xff] %v1667_v24  ;;  %v1629_v4 = vadd.f32 %v8032_v40, %v1439_v16  ;;  %6042 = vmatprep.mubr.f32.mxu1 %v1667_v24 }
 0x1f3   : > { %v1670_v7 = vmax.f32 %v1630_v12, 0.0  ;;  %6043 = vmatmul.mubr.f32.gmra.mrb[12].mxu1 %v1668_v23 }
 0x1f4   : > { %v1669_v8 = vmax.f32 %v1629_v4, 0.0  ;;  %v5958_v9 = vpop.f32.mrb[16].mxu0  ;;  %6903 = vmatpush3.bf16.msra.mxu1 %v6900_v14 }
 0x1f5   : > { %1710 = vst [vmem:[#allocation2 + $0x110] sm:$0xff] %v1670_v7  ;;  %v1632_v33 = vadd.f32 %v5958_v9, %v8032_v40  ;;  %v1449_v35 = vpop.f32.mrb[17].mxu0  ;;  %6905 = vmatprep.subr.bf16.mxu1 %v6904_v11 }
 0x1f6   : > { %1709 = vst [vmem:[#allocation2 + $0x108] sm:$0xff] %v1669_v8  ;;  %v1631_v39 = vadd.f32 %v8032_v40, %v1449_v35  ;;  %6045 = vmatprep.mubr.f32.mxu1 %v1669_v8 }
 0x1f7   : > { %v1672_v49 = vmax.f32 %v1632_v33, 0.0  ;;  %6046 = vmatmul.mubr.f32.gmra.mrb[14].mxu1 %v1670_v7 }
 0x1f8   : > { %v1671_v10 = vmax.f32 %v1631_v39, 0.0  ;;  %v5961_v13 = vpop.f32.mrb[18].mxu0  ;;  %6907 = vmatpush3.bf16.msra.mxu1 %v6904_v11 }
 0x1f9   : > { %1712 = vst [vmem:[#allocation2 + $0x130] sm:$0xff] %v1672_v49  ;;  %v1634_v15 = vadd.f32 %v5961_v13, %v8032_v40  ;;  %v1459_v14 = vpop.f32.mrb[19].mxu0  ;;  %6909 = vmatprep.subr.bf16.mxu1 %v8119_v38 }
 0x1fa   : > { %1711 = vst [vmem:[#allocation2 + $0x128] sm:$0xff] %v1671_v10  ;;  %v1633_v18 = vadd.f32 %v8032_v40, %v1459_v14  ;;  %6048 = vmatprep.mubr.f32.mxu1 %v1671_v10 }
 0x1fb   : > { %v1674_v20 = vmax.f32 %v1634_v15, 0.0  ;;  %6049 = vmatmul.mubr.f32.gmra.mrb[16].mxu1 %v1672_v49 }
 0x1fc   : > { %v1673_v23 = vmax.f32 %v1633_v18, 0.0  ;;  %v5964_v24 = vpop.f32.mrb[20].mxu0 }
 0x1fd   : > { %1714 = vst [vmem:[#allocation2 + $0x150] sm:$0xff] %v1674_v20  ;;  %v1636_v29 = vadd.f32 %v5964_v24, %v8032_v40  ;;  %v1469_v12 = vpop.f32.mrb[21].mxu0 }
 0x1fe   : > { %1713 = vst [vmem:[#allocation2 + $0x148] sm:$0xff] %v1673_v23  ;;  %v1635_v16 = vadd.f32 %v8032_v40, %v1469_v12  ;;  %6051 = vmatprep.mubr.f32.mxu1 %v1673_v23 }
 0x1ff   : > { %v1676_v11 = vmax.f32 %v1636_v29, 0.0  ;;  %6052 = vmatmul.mubr.f32.gmra.mrb[18].mxu1 %v1674_v20 }
 0x200   : > { %v1675_v4 = vmax.f32 %v1635_v16, 0.0  ;;  %v5967_v30 = vpop.f32.mrb[22].mxu0 }
 0x201   : > { %1716 = vst [vmem:[#allocation2 + $0x170] sm:$0xff] %v1676_v11  ;;  %v1638_v6 = vadd.f32 %v5967_v30, %v8032_v40  ;;  %v1479_v7 = vpop.f32.mrb[23].mxu0 }
 0x202   : > { %1715 = vst [vmem:[#allocation2 + $0x168] sm:$0xff] %v1675_v4  ;;  %v1637_v8 = vadd.f32 %v8032_v40, %v1479_v7  ;;  %6054 = vmatprep.mubr.f32.mxu1 %v1675_v4 }
 0x203   : > { %v1678_v9 = vmax.f32 %v1638_v6, 0.0  ;;  %6055 = vmatmul.mubr.f32.gmra.mrb[20].mxu1 %v1676_v11 }
 0x204   : > { %v1677_v33 = vmax.f32 %v1637_v8, 0.0  ;;  %v5970_v35 = vpop.f32.mrb[24].mxu0 }
 0x205   : > { %1718 = vst [vmem:[#allocation2 + $0x190] sm:$0xff] %v1678_v9  ;;  %v1640_v39 = vadd.f32 %v5970_v35, %v8032_v40  ;;  %v1489_v49 = vpop.f32.mrb[25].mxu0 }
 0x206   : > { %1717 = vst [vmem:[#allocation2 + $0x188] sm:$0xff] %v1677_v33  ;;  %v1639_v10 = vadd.f32 %v8032_v40, %v1489_v49  ;;  %6057 = vmatprep.mubr.f32.mxu1 %v1677_v33 }
 0x207   : > { %v1680_v13 = vmax.f32 %v1640_v39, 0.0  ;;  %6058 = vmatmul.mubr.f32.gmra.mrb[22].mxu1 %v1678_v9 }
 0x208   : > { %v1679_v15 = vmax.f32 %v1639_v10, 0.0  ;;  %v5973_v14 = vpop.f32.mrb[26].mxu0 }
 0x209   : > { %1720 = vst [vmem:[#allocation2 + $0x1b0] sm:$0xff] %v1680_v13  ;;  %v1642_v18 = vadd.f32 %v5973_v14, %v8032_v40  ;;  %v1499_v20 = vpop.f32.mrb[27].mxu0 }
 0x20a   : > { %1719 = vst [vmem:[#allocation2 + $0x1a8] sm:$0xff] %v1679_v15  ;;  %v1641_v23 = vadd.f32 %v8032_v40, %v1499_v20  ;;  %6060 = vmatprep.mubr.f32.mxu1 %v1679_v15 }
 0x20b   : > { %v1682_v24 = vmax.f32 %v1642_v18, 0.0  ;;  %6061 = vmatmul.mubr.f32.gmra.mrb[24].mxu1 %v1680_v13 }
 0x20c   : > { %v1681_v29 = vmax.f32 %v1641_v23, 0.0  ;;  %v5976_v12 = vpop.f32.mrb[28].mxu0 }
 0x20d   : > { %1722 = vst [vmem:[#allocation2 + $0x1d0] sm:$0xff] %v1682_v24  ;;  %v1644_v16 = vadd.f32 %v5976_v12, %v8032_v40  ;;  %v1509_v11 = vpop.f32.mrb[29].mxu0 }
 0x20e   : > { %1721 = vst [vmem:[#allocation2 + $0x1c8] sm:$0xff] %v1681_v29  ;;  %v1643_v4 = vadd.f32 %v8032_v40, %v1509_v11  ;;  %6063 = vmatprep.mubr.f32.mxu1 %v1681_v29 }
 0x20f   : > { %v1684_v30 = vmax.f32 %v1644_v16, 0.0  ;;  %6064 = vmatmul.mubr.f32.gmra.mrb[26].mxu1 %v1682_v24  ;;  %v8141_v16 = vld [vmem:[#allocation2 + $0x248] sm:$0xff] }
 0x210   : > { %v1683_v6 = vmax.f32 %v1643_v4, 0.0  ;;  %v5979_v7 = vpop.f32.mrb[30].mxu0  ;;  %8936 = vst [vmem:[#allocation20_spill] sm:$0xff] %v8141_v16 }
 0x211   : > { %1724 = vst [vmem:[#allocation2 + $0x1f0] sm:$0xff] %v1684_v30  ;;  %v1646_v8 = vadd.f32 %v5979_v7, %v8032_v40  ;;  %v1519_v9 = vpop.f32.mrb[31].mxu0 }
 0x212   : > { %1723 = vst [vmem:[#allocation2 + $0x1e8] sm:$0xff] %v1683_v6  ;;  %v1645_v33 = vadd.f32 %v8032_v40, %v1519_v9  ;;  %6066 = vmatprep.mubr.f32.mxu1 %v1683_v6 }
 0x213   : > { %v1686_v35 = vmax.f32 %v1646_v8, 0.0  ;;  %6067 = vmatmul.mubr.f32.gmra.mrb[28].mxu1 %v1684_v30 }
 0x214   : > { %v1685_v39 = vmax.f32 %v1645_v33, 0.0  ;;  %v5982_v49 = vpop.f32.mrb[32].mxu0 }
 0x215   : > { %1726 = vst [vmem:[#allocation2 + $0x210] sm:$0xff] %v1686_v35  ;;  %v1648_v10 = vadd.f32 %v5982_v49, %v8032_v40  ;;  %v1529_v13 = vpop.f32.mrb[33].mxu0 }
 0x216   : > { %1725 = vst [vmem:[#allocation2 + $0x208] sm:$0xff] %v1685_v39  ;;  %v1647_v15 = vadd.f32 %v8032_v40, %v1529_v13  ;;  %6069 = vmatprep.mubr.f32.mxu1 %v1685_v39 }
 0x217   : > { %v1688_v14 = vmax.f32 %v1648_v10, 0.0  ;;  %6070 = vmatmul.mubr.f32.gmra.mrb[30].mxu1 %v1686_v35 }
 0x218   : > { %v1687_v18 = vmax.f32 %v1647_v15, 0.0  ;;  %v5985_v20 = vpop.f32.mrb[34].mxu0  ;;  %v5007_v15 = vld [vmem:[%s8895_s3 + $0x110] sm:$0xff] }
 0x219   : > { %1728 = vst [vmem:[#allocation2 + $0x230] sm:$0xff] %v1688_v14  ;;  %v1650_v23 = vadd.f32 %v5985_v20, %v8032_v40  ;;  %v1539_v24 = vpop.f32.mrb[35].mxu0 }
 0x21a   : > { %1727 = vst [vmem:[#allocation2 + $0x228] sm:$0xff] %v1687_v18  ;;  %v1649_v29 = vadd.f32 %v8032_v40, %v1539_v24  ;;  %6072 = vmatprep.mubr.f32.mxu1 %v1687_v18 }
 0x21b   : > { %v1690_v12 = vmax.f32 %v1650_v23, 0.0  ;;  %6073 = vmatmul.mubr.f32.gmra.mrb[32].mxu1 %v1688_v14  ;;  %v5008_v14 = vld [vmem:[%s8895_s3 + $0x118] sm:$0xff] }
 0x21c   : > { %v1689_v11 = vmax.f32 %v1649_v29, 0.0  ;;  %v5988_v4 = vpop.f32.mrb[36].mxu0  ;;  %v5009_v29 = vld [vmem:[%s8895_s3 + $0x120] sm:$0xff] }
 0x21d   : > { %1730 = vst [vmem:[#allocation2 + $0x250] sm:$0xff] %v1690_v12  ;;  %v1652_v30 = vadd.f32 %v5988_v4, %v8032_v40  ;;  %v1549_v6 = vpop.f32.mrb[37].mxu0 }
 0x21e   : > { %1729 = vst [vmem:[#allocation2 + $0x248] sm:$0xff] %v1689_v11  ;;  %v1651_v7 = vadd.f32 %v8032_v40, %v1549_v6  ;;  %6075 = vmatprep.mubr.f32.mxu1 %v1689_v11 }
 0x21f   : > { %v1692_v8 = vmax.f32 %v1652_v30, 0.0  ;;  %6076 = vmatmul.mubr.f32.gmra.mrb[34].mxu1 %v1690_v12  ;;  %v5010_v12 = vld [vmem:[%s8895_s3 + $0x128] sm:$0xff] }
 0x220   : > { %v1691_v9 = vmax.f32 %v1651_v7, 0.0  ;;  %v5991_v33 = vpop.f32.mrb[38].mxu0  ;;  %v6916_v11 = vpack.c.bf16 %v5010_v12, %v5009_v29  ;;  %v5011_v7 = vld [vmem:[%s8895_s3 + $0x130] sm:$0xff]  ;;  %v1745_v29 = vld [vmem:[#allocation2 + $0xc7] sm:$0xff] }
 0x221   : > { %1732 = vst [vmem:[#allocation2 + $0x270] sm:$0xff] %v1692_v8  ;;  %v1654_v35 = vadd.f32 %v5991_v33, %v8032_v40  ;;  %v1559_v39 = vpop.f32.mrb[39].mxu0  ;;  %v5014_v33 = vld [vmem:[%s8895_s3 + $0x148] sm:$0xff] }
 0x222   : > { %1731 = vst [vmem:[#allocation2 + $0x268] sm:$0xff] %v1691_v9  ;;  %v1653_v49 = vadd.f32 %v8032_v40, %v1559_v39  ;;  %6078 = vmatprep.mubr.f32.mxu1 %v1691_v9  ;;  %v6912_v40 = vpack.c.bf16 %v5008_v14, %v5007_v15  ;;  %v5013_v9 = vld [vmem:[%s8895_s3 + $0x140] sm:$0xff]  ;;  %v5015_v39 = vld [vmem:[%s8895_s3 + $0x150] sm:$0xff] }
 0x223   : > { %v1694_v10 = vmax.f32 %v1654_v35, 0.0  ;;  %6079 = vmatmul.mubr.f32.gmra.mrb[36].mxu1 %v1692_v8  ;;  %v1740_v8 = vld [vmem:[#allocation2 + $0x6f] sm:$0xff]  ;;  %v1741_v35 = vld [vmem:[#allocation2 + $0x87] sm:$0xff] }
 0x224   : > { %v1693_v13 = vmax.f32 %v1653_v49, 0.0  ;;  %v5016_v49 = vld [vmem:[%s8895_s3 + $0x158] sm:$0xff]  ;;  %v1744_v15 = vld [vmem:[#allocation2 + $0xaf] sm:$0xff]  ;;  %v5017_v14 = vld [vmem:[%s8895_s3 + $0x160] sm:$0xff] }
 0x225   : > { %1734 = vst [vmem:[#allocation2 + $0x290] sm:$0xff] %v1694_v10 }
 0x226   : > { %1733 = vst [vmem:[#allocation2 + $0x288] sm:$0xff] %v1693_v13  ;;  %6081 = vmatprep.mubr.f32.mxu1 %v1693_v13  ;;  %v6928_v13 = vpack.c.bf16 %v5016_v49, %v5015_v39  ;;  %v5024_v39 = vld [vmem:[%s8897_s5 + $0x90] sm:$0xff] }
 0x227   : > { %6082 = vmatmul.mubr.f32.gmra.mrb[38].mxu1 %v1694_v10  ;;  %v1743_v10 = vld [vmem:[#allocation2 + $0xa7] sm:$0xff] }
 0x228   : > { %6116 = vmatprep.mubr.f32.mxu1 %v8061_v43  ;;  %v8154_v18 = vld [vmem:[#allocation2 + $0x271] sm:$0xff] }
 0x229   : > { %v8156_v20 = vld [vmem:[#allocation2 + $0x267] sm:$0xff]  ;;  %v8158_v23 = vld [vmem:[#allocation2 + $0x26f] sm:$0xff] }
 0x22a   : > { %v8160_v24 = vld [vmem:[#allocation2 + $0x269] sm:$0xff] }
 0x22b   : > { %2877 = vst [vmem:[#allocation2 + $0x270] sm:$0xff] %v7472_v44  ;;  %2876 = vst [vmem:[#allocation2 + $0x268] sm:$0xff] %v7472_v44  ;;  %6117 = vmatmul.mubr.f32.vlgmr.msra.gmra.mrb[0].mxu1 %v8063_v45  ;;  %v5012_v45 = vld [vmem:[%s8895_s3 + $0x138] sm:$0xff] }
 0x22c   : > { %6119 = vmatprep.mubr.f32.mxu1 %v8079_v25  ;;  %6911 = vmatpush3.bf16.msra.mxu1 %v8119_v38  ;;  %v8173_v43 = vld [vmem:[#allocation2 + $0x291] sm:$0xff]  ;;  %v1739_v25 = vld [vmem:[#allocation2 + $0x67] sm:$0xff]  ;;  %v6920_v38 = vpack.c.bf16 %v5012_v45, %v5011_v7 }
 0x22d   : > { %6913 = vmatprep.subr.bf16.mxu1 %v6912_v40  ;;  %v8175_v4 = vld [vmem:[#allocation2 + $0x287] sm:$0xff]  ;;  %v8177_v30 = vld [vmem:[#allocation2 + $0x28f] sm:$0xff]  ;;  %v5020_v45 = vld [vmem:[%s8895_s3 + $0x178] sm:$0xff] }
 0x22e   : > { %v8179_v6 = vld [vmem:[#allocation2 + $0x289] sm:$0xff] }
 0x22f   : > { %2879 = vst [vmem:[#allocation2 + $0x290] sm:$0xff] %v7472_v44  ;;  %2878 = vst [vmem:[#allocation2 + $0x288] sm:$0xff] %v7472_v44  ;;  %6120 = vmatmul.mubr.f32.gmra.mrb[2].mxu1 %v8081_v28  ;;  %v6924_v44 = vpack.c.bf16 %v5014_v33, %v5013_v9  ;;  %v1742_v28 = vld [vmem:[#allocation2 + $0x8f] sm:$0xff]  ;;  %v1749_v9 = vld [vmem:[#allocation2 + $0x107] sm:$0xff] }
 0x230   : > { %6122 = vmatprep.mubr.f32.mxu1 %v1739_v25  ;;  %6915 = vmatpush3.bf16.msra.mxu1 %v6912_v40  ;;  %v5018_v40 = vld [vmem:[%s8895_s3 + $0x168] sm:$0xff]  ;;  %v5019_v7 = vld [vmem:[%s8895_s3 + $0x170] sm:$0xff] }
 0x231   : > { %6917 = vmatprep.subr.bf16.mxu1 %v6916_v11  ;;  %v6932_v12 = vpack.c.bf16 %v5018_v40, %v5017_v14  ;;  %v1747_v25 = vld [vmem:[#allocation2 + $0xe7] sm:$0xff]  ;;  %v1750_v33 = vld [vmem:[#allocation2 + $0x10f] sm:$0xff] }
 0x232   : > { %v5027_v14 = vld [vmem:[%s8897_s5 + $0xa8] sm:$0xff] }
 0x233   : > { %6123 = vmatmul.mubr.f32.gmra.mrb[4].mxu1 %v1740_v8  ;;  %v1748_v8 = vld [vmem:[#allocation2 + $0xef] sm:$0xff] }
 0x234   : > { %6125 = vmatprep.mubr.f32.mxu1 %v1741_v35  ;;  %6919 = vmatpush3.bf16.msra.mxu1 %v6916_v11  ;;  %v1746_v11 = vld [vmem:[#allocation2 + $0xcf] sm:$0xff]  ;;  %v1751_v35 = vld [vmem:[#allocation2 + $0x127] sm:$0xff] }
 0x235   : > { %6921 = vmatprep.subr.bf16.mxu1 %v6920_v38  ;;  %v1752_v40 = vld [vmem:[#allocation2 + $0x12f] sm:$0xff] }
 0x237   : > { %6126 = vmatmul.mubr.f32.gmra.mrb[6].mxu1 %v1742_v28  ;;  %v5023_v28 = vld [vmem:[%s8897_s5 + $0x88] sm:$0xff] }
 0x238   : > { %6128 = vmatprep.mubr.f32.mxu1 %v1743_v10  ;;  %6923 = vmatpush3.bf16.msra.mxu1 %v6920_v38  ;;  %v6936_v38 = vpack.c.bf16 %v5020_v45, %v5019_v7  ;;  %v5025_v10 = vld [vmem:[%s8897_s5 + $0x98] sm:$0xff]  ;;  %v1754_v45 = vld [vmem:[#allocation2 + $0x14f] sm:$0xff] }
 0x239   : > { %6925 = vmatprep.subr.bf16.mxu1 %v6924_v44  ;;  %v5029_v7 = vld [vmem:[%s8897_s5 + $0xb8] sm:$0xff] }
 0x23b   : > { %6129 = vmatmul.mubr.f32.gmra.mrb[8].mxu1 %v1744_v15  ;;  %v5026_v15 = vld [vmem:[%s8897_s5 + $0xa0] sm:$0xff] }
 0x23c   : > { %6131 = vmatprep.mubr.f32.mxu1 %v1745_v29  ;;  %6927 = vmatpush3.bf16.msra.mxu1 %v6924_v44  ;;  %v5022_v44 = vld [vmem:[%s8897_s5 + $0x80] sm:$0xff] }
 0x23d   : > { %6929 = vmatprep.subr.bf16.mxu1 %v6928_v13  ;;  %v6940_v49 = vpack.c.bf16 %v5023_v28, %v5022_v44  ;;  %v1753_v29 = vld [vmem:[#allocation2 + $0x147] sm:$0xff]  ;;  %v5032_v28 = vld [vmem:[%s8897_s5 + $0xd0] sm:$0xff] }
 0x23f   : > { %6132 = vmatmul.mubr.f32.gmra.mrb[10].mxu1 %v1746_v11  ;;  %6941 = vmatprep.subr.bf16.mxu0 %v6940_v49  ;;  %v5028_v11 = vld [vmem:[%s8897_s5 + $0xb0] sm:$0xff] }
 0x240   : > { %6134 = vmatprep.mubr.f32.mxu1 %v1747_v25  ;;  %6931 = vmatpush3.bf16.msra.mxu1 %v6928_v13  ;;  %v6944_v13 = vpack.c.bf16 %v5025_v10, %v5024_v39  ;;  %v1755_v25 = vld [vmem:[#allocation2 + $0x167] sm:$0xff]  ;;  %v5033_v39 = vld [vmem:[%s8897_s5 + $0xd8] sm:$0xff] }
 0x241   : > { %6933 = vmatprep.subr.bf16.mxu1 %v6932_v12  ;;  %6943 = vmatpush3.bf16.msra.mxu0 %v6940_v49  ;;  %v1758_v49 = vld [vmem:[#allocation2 + $0x18f] sm:$0xff]  ;;  %v1759_v10 = vld [vmem:[#allocation2 + $0x1a7] sm:$0xff] }
 0x242   : > { %6945 = vmatprep.subr.bf16.mxu0 %v6944_v13 }
 0x243   : > { %6135 = vmatmul.mubr.f32.gmra.mrb[12].mxu1 %v1748_v8  ;;  %v5030_v8 = vld [vmem:[%s8897_s5 + $0xc0] sm:$0xff] }
 0x244   : > { %6137 = vmatprep.mubr.f32.mxu1 %v1749_v9  ;;  %6935 = vmatpush3.bf16.msra.mxu1 %v6932_v12  ;;  %v6948_v12 = vpack.c.bf16 %v5027_v14, %v5026_v15  ;;  %v5031_v9 = vld [vmem:[%s8897_s5 + $0xc8] sm:$0xff] }
 0x245   : > { %6937 = vmatprep.subr.bf16.mxu1 %v6936_v38  ;;  %6947 = vmatpush3.bf16.msra.mxu0 %v6944_v13  ;;  %v6956_v44 = vpack.c.bf16 %v5031_v9, %v5030_v8  ;;  %v6960_v13 = vpack.c.bf16 %v5033_v39, %v5032_v28  ;;  %v1760_v15 = vld [vmem:[#allocation2 + $0x1af] sm:$0xff]  ;;  %v1761_v14 = vld [vmem:[#allocation2 + $0x1c7] sm:$0xff] }
 0x246   : > { %6949 = vmatprep.subr.bf16.mxu0 %v6948_v12  ;;  %v1770_v8 = vld [vmem:[#allocation2 + $0x24f] sm:$0xff] }
 0x247   : > { %6138 = vmatmul.mubr.f32.gmra.mrb[14].mxu1 %v1750_v33  ;;  %v1756_v33 = vld [vmem:[#allocation2 + $0x16f] sm:$0xff] }
 0x248   : > { %6140 = vmatprep.mubr.f32.mxu1 %v1751_v35  ;;  %6939 = vmatpush3.bf16.msra.mxu1 %v6936_v38  ;;  %v6952_v38 = vpack.c.bf16 %v5029_v7, %v5028_v11  ;;  %v1757_v35 = vld [vmem:[#allocation2 + $0x187] sm:$0xff]  ;;  %v1766_v7 = vld [vmem:[#allocation2 + $0x20f] sm:$0xff] }
 0x249   : > { %6951 = vmatpush3.bf16.msra.mxu0 %v6948_v12  ;;  %v1764_v12 = vld [vmem:[#allocation2 + $0x1ef] sm:$0xff]  ;;  %v1765_v11 = vld [vmem:[#allocation2 + $0x207] sm:$0xff] }
 0x24a   : > { %6953 = vmatprep.subr.bf16.mxu0 %v6952_v38  ;;  %v2382_v9 = vld [vmem:[#allocation2 + $0x69] sm:$0xff]  ;;  %v2395_v39 = vld [vmem:[#allocation2 + $0x131] sm:$0xff] }
 0x24b   : > { %6141 = vmatmul.mubr.f32.gmra.mrb[16].mxu1 %v1752_v40  ;;  %v1762_v40 = vld [vmem:[#allocation2 + $0x1cf] sm:$0xff] }
 0x24c   : > { %6143 = vmatprep.mubr.f32.mxu1 %v1753_v29  ;;  %v1763_v29 = vld [vmem:[#allocation2 + $0x1e7] sm:$0xff] }
 0x24d   : > { %6955 = vmatpush3.bf16.msra.mxu0 %v6952_v38  ;;  %v1769_v38 = vld [vmem:[#allocation2 + $0x247] sm:$0xff] }
 0x24e   : > { %6957 = vmatprep.subr.bf16.mxu0 %v6956_v44  ;;  %v2394_v28 = vld [vmem:[#allocation2 + $0x129] sm:$0xff] }
 0x24f   : > { %6144 = vmatmul.mubr.f32.gmra.mrb[18].mxu1 %v1754_v45  ;;  %v1767_v45 = vld [vmem:[#allocation2 + $0x227] sm:$0xff] }
 0x250   : > { %6146 = vmatprep.mubr.f32.mxu1 %v1755_v25  ;;  %v1768_v25 = vld [vmem:[#allocation2 + $0x22f] sm:$0xff] }
 0x251   : > { %6959 = vmatpush3.bf16.msra.mxu0 %v6956_v44  ;;  %v2393_v44 = vld [vmem:[#allocation2 + $0x111] sm:$0xff] }
 0x252   : > { %6961 = vmatprep.subr.bf16.mxu0 %v6960_v13 }
 0x253   : > { %6147 = vmatmul.mubr.f32.gmra.mrb[20].mxu1 %v1756_v33  ;;  %v2383_v33 = vld [vmem:[#allocation2 + $0x71] sm:$0xff] }
 0x254   : > { %6149 = vmatprep.mubr.f32.mxu1 %v1757_v35  ;;  %v2384_v35 = vld [vmem:[#allocation2 + $0x89] sm:$0xff] }
 0x255   : > { %6963 = vmatpush3.bf16.msra.mxu0 %v6960_v13  ;;  %v2398_v13 = vld [vmem:[#allocation2 + $0x169] sm:$0xff] }
 0x257   : > { %6150 = vmatmul.mubr.f32.gmra.mrb[22].mxu1 %v1758_v49  ;;  %v2396_v49 = vld [vmem:[#allocation2 + $0x149] sm:$0xff] }
 0x258   : > { %6152 = vmatprep.mubr.f32.mxu1 %v1759_v10  ;;  %v2397_v10 = vld [vmem:[#allocation2 + $0x151] sm:$0xff] }
 0x25b   : > { %6153 = vmatmul.mubr.f32.gmra.mrb[24].mxu1 %v1760_v15  ;;  %v2399_v15 = vld [vmem:[#allocation2 + $0x171] sm:$0xff] }
 0x25c   : > { %6155 = vmatprep.mubr.f32.mxu1 %v1761_v14  ;;  %v2400_v14 = vld [vmem:[#allocation2 + $0x189] sm:$0xff] }
 0x25f   : > { %6156 = vmatmul.mubr.f32.gmra.mrb[26].mxu1 %v1762_v40  ;;  %v2401_v40 = vld [vmem:[#allocation2 + $0x191] sm:$0xff] }
 0x260   : > { %6158 = vmatprep.mubr.f32.mxu1 %v1763_v29  ;;  %v2402_v29 = vld [vmem:[#allocation2 + $0x1a9] sm:$0xff] }
 0x263   : > { %6159 = vmatmul.mubr.f32.gmra.mrb[28].mxu1 %v1764_v12  ;;  %v2403_v12 = vld [vmem:[#allocation2 + $0x1b1] sm:$0xff] }
 0x264   : > { %6161 = vmatprep.mubr.f32.mxu1 %v1765_v11  ;;  %v2404_v11 = vld [vmem:[#allocation2 + $0x1c9] sm:$0xff] }
 0x267   : > { %6162 = vmatmul.mubr.f32.gmra.mrb[30].mxu1 %v1766_v7  ;;  %v2405_v7 = vld [vmem:[#allocation2 + $0x1d1] sm:$0xff] }
 0x268   : > { %6164 = vmatprep.mubr.f32.mxu1 %v1767_v45  ;;  %v2406_v45 = vld [vmem:[#allocation2 + $0x1e9] sm:$0xff] }
 0x26b   : > { %6165 = vmatmul.mubr.f32.gmra.mrb[32].mxu1 %v1768_v25  ;;  %v2407_v25 = vld [vmem:[#allocation2 + $0x1f1] sm:$0xff] }
 0x26c   : > { %6167 = vmatprep.mubr.f32.mxu1 %v1769_v38  ;;  %v2408_v38 = vld [vmem:[#allocation2 + $0x209] sm:$0xff] }
 0x26f   : > { %6168 = vmatmul.mubr.f32.gmra.mrb[34].mxu1 %v1770_v8  ;;  %v2409_v8 = vld [vmem:[#allocation2 + $0x211] sm:$0xff] }
 0x270   : > { %6170 = vmatprep.mubr.f32.mxu1 %v8156_v20  ;;  %v2385_v20 = vld [vmem:[#allocation2 + $0x91] sm:$0xff] }
 0x273   : > { %6171 = vmatmul.mubr.f32.gmra.mrb[36].mxu1 %v8158_v23  ;;  %v2386_v23 = vld [vmem:[#allocation2 + $0xa9] sm:$0xff] }
 0x274   : > { %6173 = vmatprep.mubr.f32.mxu1 %v8175_v4  ;;  %v2387_v4 = vld [vmem:[#allocation2 + $0xb1] sm:$0xff] }
 0x277   : > { %6174 = vmatmul.mubr.f32.gmra.mrb[38].mxu1 %v8177_v30  ;;  %v2388_v30 = vld [vmem:[#allocation2 + $0xc9] sm:$0xff] }
 0x278   : > { %6208 = vmatprep.mubr.f32.mxu1 %v8065_v46  ;;  %v2389_v46 = vld [vmem:[#allocation2 + $0xd1] sm:$0xff] }
 0x27b   : > { %6209 = vmatmul.mubr.f32.vlgmr.msra.gmra.mrb[0].mxu1 %v8058_v34  ;;  %v2390_v34 = vld [vmem:[#allocation2 + $0xe9] sm:$0xff] }
 0x27c   : > { %6211 = vmatprep.mubr.f32.mxu1 %v8083_v54  ;;  %v2391_v54 = vld [vmem:[#allocation2 + $0xf1] sm:$0xff] }
 0x27f   : > { %6212 = vmatmul.mubr.f32.gmra.mrb[2].mxu1 %v8076_v19  ;;  %v2392_v19 = vld [vmem:[#allocation2 + $0x109] sm:$0xff] }
 0x280   : > { %6214 = vmatprep.mubr.f32.mxu1 %v2382_v9  ;;  %v2410_v9 = vld [vmem:[#allocation2 + $0x229] sm:$0xff] }
 0x283   : > { %6215 = vmatmul.mubr.f32.gmra.mrb[4].mxu1 %v2383_v33  ;;  %v2411_v33 = vld [vmem:[#allocation2 + $0x231] sm:$0xff] }
 0x284   : > { %6217 = vmatprep.mubr.f32.mxu1 %v2384_v35  ;;  %v2412_v35 = vld [vmem:[#allocation2 + $0x249] sm:$0xff] }
 0x287   : > { %6218 = vmatmul.mubr.f32.gmra.mrb[6].mxu1 %v2385_v20  ;;  %v2413_v20 = vld [vmem:[#allocation2 + $0x251] sm:$0xff] }
 0x288   : > { %6220 = vmatprep.mubr.f32.mxu1 %v2386_v23  ;;  %v5034_v23 = vld [vmem:[%s8897_s5 + $0xe0] sm:$0xff] }
 0x28b   : > { %6221 = vmatmul.mubr.f32.gmra.mrb[8].mxu1 %v2387_v4  ;;  %v5035_v4 = vld [vmem:[%s8897_s5 + $0xe8] sm:$0xff] }
 0x28c   : > { %6223 = vmatprep.mubr.f32.mxu1 %v2388_v30  ;;  %v6964_v30 = vpack.c.bf16 %v5035_v4, %v5034_v23 }
 0x28e   : > { %6965 = vmatprep.subr.bf16.mxu0 %v6964_v30 }
 0x28f   : > { %6224 = vmatmul.mubr.f32.gmra.mrb[10].mxu1 %v2389_v46  ;;  %6967 = vmatpush3.bf16.msra.mxu0 %v6964_v30  ;;  %v2913_v46 = vld [vmem:[%s8897_s5 + $0x8] sm:$0xff] }
 0x290   : > { %6226 = vmatprep.mubr.f32.mxu1 %v2390_v34 }
 0x293   : > { %6227 = vmatmul.mubr.f32.gmra.mrb[12].mxu1 %v2391_v54 }
 0x294   : > { %6229 = vmatprep.mubr.f32.mxu1 %v2392_v19 }
 0x297   : > { %6230 = vmatmul.mubr.f32.gmra.mrb[14].mxu1 %v2393_v44 }
 0x298   : > { %6232 = vmatprep.mubr.f32.mxu1 %v2394_v28 }
 0x29b   : > { %6233 = vmatmul.mubr.f32.gmra.mrb[16].mxu1 %v2395_v39  ;;  %v8283_v39 = vld [vmem:[%s8896_s4] ss:$0 sm:$0xff] }
 0x29c   : > { %6235 = vmatprep.mubr.f32.mxu1 %v2396_v49 }
 0x29f   : > { %6236 = vmatmul.mubr.f32.gmra.mrb[18].mxu1 %v2397_v10 }
 0x2a0   : > { %6238 = vmatprep.mubr.f32.mxu1 %v2398_v13 }
 0x2a3   : > { %6239 = vmatmul.mubr.f32.gmra.mrb[20].mxu1 %v2399_v15 }
 0x2a4   : > { %6241 = vmatprep.mubr.f32.mxu1 %v2400_v14  ;;  %v2914_v14 = vld [vmem:[%s8897_s5 + $0x10] sm:$0xff] }
 0x2a7   : > { %6242 = vmatmul.mubr.f32.gmra.mrb[22].mxu1 %v2401_v40  ;;  %v2915_v40 = vld [vmem:[%s8897_s5 + $0x18] sm:$0xff] }
 0x2a8   : > { %6244 = vmatprep.mubr.f32.mxu1 %v2402_v29 }
 0x2ab   : > { %6245 = vmatmul.mubr.f32.gmra.mrb[24].mxu1 %v2403_v12 }
 0x2ac   : > { %6247 = vmatprep.mubr.f32.mxu1 %v2404_v11 }
 0x2af   : > { %6248 = vmatmul.mubr.f32.gmra.mrb[26].mxu1 %v2405_v7 }
 0x2b0   : > { %6250 = vmatprep.mubr.f32.mxu1 %v2406_v45 }
 0x2b3   : > { %6251 = vmatmul.mubr.f32.gmra.mrb[28].mxu1 %v2407_v25  ;;  %v6976_v25 = vpack.c.bf16 %v2915_v40, %v2914_v14 }
 0x2b4   : > { %6253 = vmatprep.mubr.f32.mxu1 %v2408_v38 }
 0x2b7   : > { %6254 = vmatmul.mubr.f32.gmra.mrb[30].mxu1 %v2409_v8  ;;  %v2916_v8 = vld [vmem:[%s8897_s5 + $0x20] sm:$0xff] }
 0x2b8   : > { %6256 = vmatprep.mubr.f32.mxu1 %v2410_v9  ;;  %v2917_v9 = vld [vmem:[%s8897_s5 + $0x28] sm:$0xff] }
 0x2b9   : > { %v6980_v30 = vpack.c.bf16 %v2917_v9, %v2916_v8 }
 0x2bb   : > { %6257 = vmatmul.mubr.f32.gmra.mrb[32].mxu1 %v2411_v33 }
 0x2bc   : > { %6259 = vmatprep.mubr.f32.mxu1 %v2412_v35 }
 0x2bf   : > { %6260 = vmatmul.mubr.f32.gmra.mrb[34].mxu1 %v2413_v20 }
 0x2c0   : > { %6262 = vmatprep.mubr.f32.mxu1 %v8160_v24  ;;  %v5036_v24 = vld [vmem:[%s8897_s5 + $0xf0] sm:$0xff] }
 0x2c3   : > { %6263 = vmatmul.mubr.f32.gmra.mrb[36].mxu1 %v8154_v18  ;;  %v5037_v18 = vld [vmem:[%s8897_s5 + $0xf8] sm:$0xff] }
 0x2c4   : > { %6265 = vmatprep.mubr.f32.mxu1 %v8179_v6  ;;  %v2912_v6 = vld [vmem:[%s8897_s5] sm:$0xff] }
 0x2c5   : > { %v6972_v34 = vpack.c.bf16 %v2913_v46, %v2912_v6 }
 0x2c7   : > { %6266 = vmatmul.mubr.f32.gmra.mrb[38].mxu1 %v8173_v43  ;;  %v6968_v43 = vpack.c.bf16 %v5037_v18, %v5036_v24  ;;  %v2918_v18 = vld [vmem:[%s8897_s5 + $0x30] sm:$0xff] }
 0x2c9   : > { %6969 = vmatprep.subr.bf16.mxu0 %v6968_v43 }
 0x2ca   : > { %6971 = vmatpush3.bf16.msra.mxu0 %v6968_v43  ;;  %v2919_v43 = vld [vmem:[%s8897_s5 + $0x38] sm:$0xff] }
 0x2cb   : > { %6973 = vmatprep.subr.bf16.mxu0 %v6972_v34 }
 0x34e   : > { %v6210_v54 = vpop.f32.mrb[0].mxu1 }
 0x34f   : > { %v2501_v19 = vpop.f32.mrb[1].mxu1 }
 0x352   : > { %v6213_v44 = vpop.f32.mrb[2].mxu1 }
 0x353   : > { %v2511_v28 = vpop.f32.mrb[3].mxu1  ;;  %v6984_v44 = vpack.c.bf16 %v2919_v43, %v2918_v18 }
 0x356   : > { %v6216_v49 = vpop.f32.mrb[4].mxu1 }
 0x357   : > { %v8286_v10 = vadd.f32 %v6216_v49, %v8283_v39  ;;  %v2521_v13 = vpop.f32.mrb[5].mxu1  ;;  %v2920_v49 = vld [vmem:[%s8897_s5 + $0x40] sm:$0xff] }
 0x358   : > { %v8289_v15 = vadd.f32 %v8283_v39, %v2521_v13  ;;  %v2921_v13 = vld [vmem:[%s8897_s5 + $0x48] sm:$0xff] }
 0x359   : > { %v8904_v11 = vmax.f32 %v8286_v10, 0.0  ;;  %v6988_v8 = vpack.c.bf16 %v2921_v13, %v2920_v49 }
 0x35a   : > { %v8905_v29 = vmax.f32 %v8289_v15, 0.0  ;;  %v6219_v12 = vpop.f32.mrb[6].mxu1 }
 0x35b   : > { %v8300_v7 = vadd.f32 %v6219_v12, %v8283_v39  ;;  %v2531_v45 = vpop.f32.mrb[7].mxu1 }
 0x35c   : > { %v8303_v38 = vadd.f32 %v8283_v39, %v2531_v45  ;;  %6300 = vmatprep.mubr.f32.mxu0 %v8905_v29 }
 0x35d   : > { %6301 = vmatmul.mubr.f32.vlgmr.msra.gmra.mrb[40].mxu0 %v8904_v11  ;;  %v8902_v20 = vmax.f32 %v8300_v7, 0.0 }
 0x35e   : > { %v8903_v33 = vmax.f32 %v8303_v38, 0.0  ;;  %v6222_v35 = vpop.f32.mrb[8].mxu1  ;;  %6975 = vmatpush3.bf16.msra.mxu0 %v6972_v34 }
 0x35f   : > { %v2756_v23 = vadd.f32 %v6222_v35, %v8283_v39  ;;  %v2541_v4 = vpop.f32.mrb[9].mxu1  ;;  %6977 = vmatprep.subr.bf16.mxu0 %v6976_v25  ;;  %v2922_v35 = vld [vmem:[%s8897_s5 + $0x50] sm:$0xff] }
 0x360   : > { %v2755_v24 = vadd.f32 %v8283_v39, %v2541_v4  ;;  %6303 = vmatprep.mubr.f32.mxu0 %v8903_v33 }
 0x361   : > { %6304 = vmatmul.mubr.f32.gmra.mrb[42].mxu0 %v8902_v20  ;;  %v8331_v34 = vmax.f32 %v2756_v23, 0.0  ;;  %v2923_v23 = vld [vmem:[%s8897_s5 + $0x58] sm:$0xff] }
 0x362   : > { %v8329_v6 = vmax.f32 %v2755_v24, 0.0  ;;  %v6225_v46 = vpop.f32.mrb[10].mxu1  ;;  %6979 = vmatpush3.bf16.msra.mxu0 %v6976_v25 }
 0x363   : > { %v2758_v54 = vadd.f32 %v6225_v46, %v8283_v39  ;;  %v2551_v19 = vpop.f32.mrb[11].mxu1  ;;  %6981 = vmatprep.subr.bf16.mxu0 %v6980_v30  ;;  %v6992_v46 = vpack.c.bf16 %v2923_v23, %v2922_v35  ;;  %v2926_v35 = vld [vmem:[%s8897_s5 + $0x70] sm:$0xff]  ;;  %v2927_v23 = vld [vmem:[%s8897_s5 + $0x78] sm:$0xff] }
 0x364   : > { %v2757_v28 = vadd.f32 %v8283_v39, %v2551_v19  ;;  %6306 = vmatprep.mubr.f32.mxu0 %v8329_v6  ;;  %v2924_v19 = vld [vmem:[%s8897_s5 + $0x60] sm:$0xff] }
 0x365   : > { %6307 = vmatmul.mubr.f32.gmra.mrb[44].mxu0 %v8331_v34  ;;  %v8345_v12 = vmax.f32 %v2758_v54, 0.0 }
 0x366   : > { %v8343_v14 = vmax.f32 %v2757_v28, 0.0  ;;  %v6228_v40 = vpop.f32.mrb[12].mxu1  ;;  %6983 = vmatpush3.bf16.msra.mxu0 %v6980_v30  ;;  %v2925_v28 = vld [vmem:[%s8897_s5 + $0x68] sm:$0xff] }
 0x367   : > { %v2760_v45 = vadd.f32 %v6228_v40, %v8283_v39  ;;  %v2561_v25 = vpop.f32.mrb[13].mxu1  ;;  %6985 = vmatprep.subr.bf16.mxu0 %v6984_v44 }
 0x368   : > { %v2759_v9 = vadd.f32 %v8283_v39, %v2561_v25  ;;  %6309 = vmatprep.mubr.f32.mxu0 %v8343_v14  ;;  %v6996_v25 = vpack.c.bf16 %v2925_v28, %v2924_v19  ;;  %v7000_v19 = vpack.c.bf16 %v2927_v23, %v2926_v35 }
 0x369   : > { %6310 = vmatmul.mubr.f32.gmra.mrb[46].mxu0 %v8345_v12  ;;  %v8359_v24 = vmax.f32 %v2760_v45, 0.0 }
 0x36a   : > { %v8357_v4 = vmax.f32 %v2759_v9, 0.0  ;;  %v6231_v30 = vpop.f32.mrb[14].mxu1  ;;  %6987 = vmatpush3.bf16.msra.mxu0 %v6984_v44 }
 0x36b   : > { %v2762_v18 = vadd.f32 %v6231_v30, %v8283_v39  ;;  %v2571_v43 = vpop.f32.mrb[15].mxu1  ;;  %6989 = vmatprep.subr.bf16.mxu0 %v6988_v8 }
 0x36c   : > { %v2761_v54 = vadd.f32 %v8283_v39, %v2571_v43  ;;  %6312 = vmatprep.mubr.f32.mxu0 %v8357_v4 }
 0x36d   : > { %6313 = vmatmul.mubr.f32.gmra.mrb[48].mxu0 %v8359_v24  ;;  %v8373_v13 = vmax.f32 %v2762_v18, 0.0 }
 0x36e   : > { %v8371_v44 = vmax.f32 %v2761_v54, 0.0  ;;  %v6234_v49 = vpop.f32.mrb[16].mxu1  ;;  %6991 = vmatpush3.bf16.msra.mxu0 %v6988_v8 }
 0x36f   : > { %v2764_v40 = vadd.f32 %v6234_v49, %v8283_v39  ;;  %v2581_v45 = vpop.f32.mrb[17].mxu1  ;;  %6993 = vmatprep.subr.bf16.mxu0 %v6992_v46  ;;  %v5038_v49 = vld [vmem:[%s8897_s5 + $0x100] sm:$0xff] }
 0x370   : > { %v2763_v9 = vadd.f32 %v8283_v39, %v2581_v45  ;;  %6315 = vmatprep.mubr.f32.mxu0 %v8371_v44  ;;  %v5039_v45 = vld [vmem:[%s8897_s5 + $0x108] sm:$0xff] }
 0x371   : > { %6316 = vmatmul.mubr.f32.gmra.mrb[50].mxu0 %v8373_v13  ;;  %v8387_v18 = vmax.f32 %v2764_v40, 0.0 }
 0x372   : > { %v8385_v8 = vmax.f32 %v2763_v9, 0.0  ;;  %v6237_v30 = vpop.f32.mrb[18].mxu1  ;;  %6995 = vmatpush3.bf16.msra.mxu0 %v6992_v46 }
 0x373   : > { %v2766_v43 = vadd.f32 %v6237_v30, %v8283_v39  ;;  %v2591_v54 = vpop.f32.mrb[19].mxu1  ;;  %6997 = vmatprep.subr.bf16.mxu0 %v6996_v25  ;;  %v8404_v30 = vpack.c.bf16 %v5039_v45, %v5038_v49 }
 0x374   : > { %v2765_v28 = vadd.f32 %v8283_v39, %v2591_v54  ;;  %6318 = vmatprep.mubr.f32.mxu0 %v8385_v8 }
 0x375   : > { %6319 = vmatmul.mubr.f32.gmra.mrb[52].mxu0 %v8387_v18  ;;  %v8401_v9 = vmax.f32 %v2766_v43, 0.0 }
 0x376   : > { %v8399_v46 = vmax.f32 %v2765_v28, 0.0  ;;  %v6240_v40 = vpop.f32.mrb[20].mxu1  ;;  %6999 = vmatpush3.bf16.msra.mxu0 %v6996_v25 }
 0x377   : > { %v2768_v35 = vadd.f32 %v6240_v40, %v8283_v39  ;;  %v2601_v23 = vpop.f32.mrb[21].mxu1  ;;  %7001 = vmatprep.subr.bf16.mxu0 %v7000_v19 }
 0x378   : > { %v2767_v54 = vadd.f32 %v8283_v39, %v2601_v23  ;;  %6321 = vmatprep.mubr.f32.mxu0 %v8399_v46 }
 0x379   : > { %6322 = vmatmul.mubr.f32.gmra.mrb[54].mxu0 %v8401_v9  ;;  %v8411_v33 = vmax.f32 %v2768_v35, 0.0 }
 0x37a   : > { %v8409_v20 = vmax.f32 %v2767_v54, 0.0  ;;  %v6243_v28 = vpop.f32.mrb[22].mxu1  ;;  %7003 = vmatpush3.bf16.msra.mxu0 %v7000_v19 }
 0x37b   : > { %v2770_v25 = vadd.f32 %v6243_v28, %v8283_v39  ;;  %v2611_v43 = vpop.f32.mrb[23].mxu1  ;;  %7005 = vmatprep.subr.bf16.mxu0 %v8404_v30 }
 0x37c   : > { %v2769_v49 = vadd.f32 %v8283_v39, %v2611_v43  ;;  %6324 = vmatprep.mubr.f32.mxu0 %v8409_v20 }
 0x37d   : > { %6325 = vmatmul.mubr.f32.gmra.mrb[56].mxu0 %v8411_v33  ;;  %v8420_v23 = vmax.f32 %v2770_v25, 0.0 }
 0x37e   : > { %v8418_v45 = vmax.f32 %v2769_v49, 0.0  ;;  %v6246_v40 = vpop.f32.mrb[24].mxu1 }
 0x37f   : > { %v2772_v19 = vadd.f32 %v6246_v40, %v8283_v39  ;;  %v2621_v35 = vpop.f32.mrb[25].mxu1 }
 0x380   : > { %v2771_v54 = vadd.f32 %v8283_v39, %v2621_v35  ;;  %6327 = vmatprep.mubr.f32.mxu0 %v8418_v45 }
 0x381   : > { %6328 = vmatmul.mubr.f32.gmra.mrb[58].mxu0 %v8420_v23  ;;  %v8428_v11 = vmax.f32 %v2772_v19, 0.0 }
 0x382   : > { %v8426_v28 = vmax.f32 %v2771_v54, 0.0  ;;  %v6249_v43 = vpop.f32.mrb[26].mxu1 }
 0x383   : > { %v2774_v49 = vadd.f32 %v6249_v43, %v8283_v39  ;;  %v2631_v29 = vpop.f32.mrb[27].mxu1 }
 0x384   : > { %v2773_v25 = vadd.f32 %v8283_v39, %v2631_v29  ;;  %6330 = vmatprep.mubr.f32.mxu0 %v8426_v28 }
 0x385   : > { %6331 = vmatmul.mubr.f32.gmra.mrb[60].mxu0 %v8428_v11  ;;  %v8436_v16 = vmax.f32 %v2774_v49, 0.0 }
 0x386   : > { %v8434_v40 = vmax.f32 %v2773_v25, 0.0  ;;  %v6252_v35 = vpop.f32.mrb[28].mxu1 }
 0x387   : > { %v2776_v54 = vadd.f32 %v6252_v35, %v8283_v39  ;;  %v2641_v5 = vpop.f32.mrb[29].mxu1 }
 0x388   : > { %v2775_v19 = vadd.f32 %v8283_v39, %v2641_v5  ;;  %6333 = vmatprep.mubr.f32.mxu0 %v8434_v40 }
 0x389   : > { %6334 = vmatmul.mubr.f32.gmra.mrb[62].mxu0 %v8436_v16  ;;  %v8444_v2 = vmax.f32 %v2776_v54, 0.0 }
 0x38a   : > { %v8442_v43 = vmax.f32 %v2775_v19, 0.0  ;;  %v6255_v29 = vpop.f32.mrb[30].mxu1 }
 0x38b   : > { %v2778_v25 = vadd.f32 %v6255_v29, %v8283_v39  ;;  %v2651_v3 = vpop.f32.mrb[31].mxu1 }
 0x38c   : > { %v2777_v49 = vadd.f32 %v8283_v39, %v2651_v3  ;;  %6336 = vmatprep.mubr.f32.mxu0 %v8442_v43 }
 0x38d   : > { %6337 = vmatmul.mubr.f32.gmra.mrb[64].mxu0 %v8444_v2  ;;  %v8452_v0 = vmax.f32 %v2778_v25, 0.0 }
 0x38e   : > { %v8450_v35 = vmax.f32 %v2777_v49, 0.0  ;;  %v6258_v5 = vpop.f32.mrb[32].mxu1 }
 0x38f   : > { %v8455_v19 = vadd.f32 %v6258_v5, %v8283_v39  ;;  %v2661_v1 = vpop.f32.mrb[33].mxu1 }
 0x390   : > { %v8458_v54 = vadd.f32 %v8283_v39, %v2661_v1  ;;  %6339 = vmatprep.mubr.f32.mxu0 %v8450_v35 }
 0x391   : > { %6340 = vmatmul.mubr.f32.gmra.mrb[66].mxu0 %v8452_v0  ;;  %v8916_v49 = vmax.f32 %v8455_v19, 0.0 }
 0x392   : > { %v8917_v3 = vmax.f32 %v8458_v54, 0.0  ;;  %v6261_v29 = vpop.f32.mrb[34].mxu1 }
 0x393   : > { %v8465_v62 = vadd.f32 %v6261_v29, %v8283_v39  ;;  %v2671_v25 = vpop.f32.mrb[35].mxu1  ;;  %v5041_v29 = vld [vmem:[%s8897_s5 + $0x118] sm:$0xff] }
 0x394   : > { %v8468_v5 = vadd.f32 %v8283_v39, %v2671_v25  ;;  %6342 = vmatprep.mubr.f32.mxu0 %v8917_v3  ;;  %v5040_v39 = vld [vmem:[%s8897_s5 + $0x110] sm:$0xff] }
 0x395   : > { %6343 = vmatmul.mubr.f32.gmra.mrb[68].mxu0 %v8916_v49  ;;  %v8918_v60 = vmax.f32 %v8465_v62, 0.0  ;;  %v5057_v25 = vld [vmem:[%s8899_s7 + $0x90] sm:$0xff]  ;;  %v7008_v59 = vpack.c.bf16 %v5041_v29, %v5040_v39  ;;  %v5045_v29 = vld [vmem:[%s8897_s5 + $0x138] sm:$0xff] }
 0x396   : > { %v8915_v1 = vmax.f32 %v8468_v5, 0.0  ;;  %v6264_v63 = vpop.f32.mrb[36].mxu1  ;;  %v8495_v49 = vld [vmem:[#allocation2 + $0x30] sm:$0xff] }
 0x397   : > { %v2681_v61 = vpop.f32.mrb[37].mxu1  ;;  %v5055_v63 = vld [vmem:[%s8899_s7 + $0x80] sm:$0xff] }
 0x398   : > { %6345 = vmatprep.mubr.f32.mxu0 %v8915_v1  ;;  %v5056_v61 = vld [vmem:[%s8899_s7 + $0x88] sm:$0xff] }
 0x399   : > { %6346 = vmatmul.mubr.f32.gmra.mrb[70].mxu0 %v8918_v60  ;;  %v7036_v3 = vpack.c.bf16 %v5056_v61, %v5055_v63  ;;  %v5058_v60 = vld [vmem:[%s8899_s7 + $0x98] sm:$0xff]  ;;  %v5059_v63 = vld [vmem:[%s8899_s7 + $0xa0] sm:$0xff]  ;;  %v5060_v61 = vld [vmem:[%s8899_s7 + $0xa8] sm:$0xff] }
 0x39a   : > { %v6267_v1 = vpop.f32.mrb[38].mxu1  ;;  %6380 = vmatprep.mubr.f32.mxu0 %v8495_v49  ;;  %v7040_v57 = vpack.c.bf16 %v5058_v60, %v5057_v25  ;;  %v5044_v60 = vld [vmem:[%s8897_s5 + $0x130] sm:$0xff]  ;;  %v7044_v39 = vpack.c.bf16 %v5060_v61, %v5059_v63  ;;  %v5047_v61 = vld [vmem:[%s8897_s5 + $0x148] sm:$0xff] }
 0x39b   : > { %v2691_v58 = vpop.f32.mrb[39].mxu1  ;;  %v5043_v1 = vld [vmem:[%s8897_s5 + $0x128] sm:$0xff]  ;;  %7037 = vmatprep.subr.bf16.mxu1 %v7036_v3  ;;  %v7016_v25 = vpack.c.bf16 %v5045_v29, %v5044_v60  ;;  %v8939_v60 = vmax.f32 %v8303_v38, 0.0  ;;  %v5066_v38 = vld [vmem:[%s8899_s7 + $0xd8] sm:$0xff] }
 0x39c   : > { %7039 = vmatpush3.bf16.msra.mxu1 %v7036_v3  ;;  %v7012_v58 = vpack.c.bf16 %v5043_v1, %v5042_v56  ;;  %v5061_v3 = vld [vmem:[%s8899_s7 + $0xb0] sm:$0xff]  ;;  %v8937_v56 = vmax.f32 %v8289_v15, 0.0  ;;  %v5046_v1 = vld [vmem:[%s8897_s5 + $0x140] sm:$0xff]  ;;  %v8938_v15 = vmax.f32 %v8286_v10, 0.0 }
 0x39d   : > { %6381 = vmatmul.mubr.f32.vlgmr.msra.gmra.mrb[40].mxu0 %v8495_v49  ;;  %7041 = vmatprep.subr.bf16.mxu1 %v7040_v57  ;;  %v7020_v29 = vpack.c.bf16 %v5047_v61, %v5046_v1  ;;  %v5065_v10 = vld [vmem:[%s8899_s7 + $0xd0] sm:$0xff]  ;;  %v5050_v1 = vld [vmem:[%s8897_s5 + $0x160] sm:$0xff] }
 0x39e   : > { %7007 = vmatpush3.bf16.msra.mxu0 %v8404_v30  ;;  %6383 = vmatprep.mubr.f32.mxu0 %v8495_v49  ;;  %v5062_v30 = vld [vmem:[%s8899_s7 + $0xb8] sm:$0xff]  ;;  %v7056_v61 = vpack.c.bf16 %v5066_v38, %v5065_v10  ;;  %v3875_v38 = vld [vmem:[%s8899_s7 + $0x30] sm:$0xff] }
 0x39f   : > { %7009 = vmatprep.subr.bf16.mxu0 %v7008_v59  ;;  %v7048_v63 = vpack.c.bf16 %v5062_v30, %v5061_v3  ;;  %v5048_v3 = vld [vmem:[%s8897_s5 + $0x150] sm:$0xff] }
 0x3a0   : > { %7043 = vmatpush3.bf16.msra.mxu1 %v7040_v57  ;;  %v5063_v57 = vld [vmem:[%s8899_s7 + $0xc0] sm:$0xff] }
 0x3a1   : > { %6384 = vmatmul.mubr.f32.gmra.mrb[42].mxu0 %v8495_v49  ;;  %7045 = vmatprep.subr.bf16.mxu1 %v7044_v39 }
 0x3a2   : > { %6386 = vmatprep.mubr.f32.mxu0 %v8937_v56  ;;  %7011 = vmatpush3.bf16.msra.mxu0 %v7008_v59  ;;  %v5064_v59 = vld [vmem:[%s8899_s7 + $0xc8] sm:$0xff]  ;;  %v5049_v56 = vld [vmem:[%s8897_s5 + $0x158] sm:$0xff] }
 0x3a3   : > { %7013 = vmatprep.subr.bf16.mxu0 %v7012_v58  ;;  %v7052_v30 = vpack.c.bf16 %v5064_v59, %v5063_v57  ;;  %v5051_v57 = vld [vmem:[%s8897_s5 + $0x168] sm:$0xff] }
 0x3a4   : > { %7047 = vmatpush3.bf16.msra.mxu1 %v7044_v39  ;;  %v7024_v39 = vpack.c.bf16 %v5049_v56, %v5048_v3 }
 0x3a5   : > { %6387 = vmatmul.mubr.f32.gmra.mrb[44].mxu0 %v8938_v15  ;;  %7049 = vmatprep.subr.bf16.mxu1 %v7048_v63  ;;  %v5052_v15 = vld [vmem:[%s8897_s5 + $0x170] sm:$0xff] }
 0x3a6   : > { %6389 = vmatprep.mubr.f32.mxu0 %v8939_v60  ;;  %7015 = vmatpush3.bf16.msra.mxu0 %v7012_v58  ;;  %v8940_v58 = vmax.f32 %v8300_v7, 0.0  ;;  %v5067_v7 = vld [vmem:[%s8899_s7 + $0xe0] sm:$0xff]  ;;  %v5053_v60 = vld [vmem:[%s8897_s5 + $0x178] sm:$0xff] }
 0x3a7   : > { %7017 = vmatprep.subr.bf16.mxu0 %v7016_v25 }
 0x3a8   : > { %7051 = vmatpush3.bf16.msra.mxu1 %v7048_v63  ;;  %v7028_v63 = vpack.c.bf16 %v5051_v57, %v5050_v1 }
 0x3a9   : > { %6390 = vmatmul.mubr.f32.gmra.mrb[46].mxu0 %v8940_v58  ;;  %7053 = vmatprep.subr.bf16.mxu1 %v7052_v30  ;;  %v3876_v58 = vld [vmem:[%s8899_s7 + $0x38] sm:$0xff] }
 0x3aa   : > { %6392 = vmatprep.mubr.f32.mxu0 %v8329_v6  ;;  %7019 = vmatpush3.bf16.msra.mxu0 %v7016_v25  ;;  %v5068_v25 = vld [vmem:[%s8899_s7 + $0xe8] sm:$0xff] }
 0x3ab   : > { %7021 = vmatprep.subr.bf16.mxu0 %v7020_v29  ;;  %v7060_v59 = vpack.c.bf16 %v5068_v25, %v5067_v7  ;;  %v7080_v25 = vpack.c.bf16 %v3876_v58, %v3875_v38  ;;  %v5071_v38 = vld [vmem:[%s8899_s7 + $0x100] sm:$0xff]  ;;  %v5072_v58 = vld [vmem:[%s8899_s7 + $0x108] sm:$0xff] }
 0x3ac   : > { %7055 = vmatpush3.bf16.msra.mxu1 %v7052_v30 }
 0x3ad   : > { %6393 = vmatmul.mubr.f32.gmra.mrb[48].mxu0 %v8331_v34  ;;  %7057 = vmatprep.subr.bf16.mxu1 %v7056_v61 }
 0x3ae   : > { %6395 = vmatprep.mubr.f32.mxu0 %v8343_v14  ;;  %7023 = vmatpush3.bf16.msra.mxu0 %v7020_v29  ;;  %v7032_v29 = vpack.c.bf16 %v5053_v60, %v5052_v15  ;;  %v3878_v15 = vld [vmem:[%s8899_s7 + $0x48] sm:$0xff] }
 0x3af   : > { %7025 = vmatprep.subr.bf16.mxu0 %v7024_v39 }
 0x3b0   : > { %7059 = vmatpush3.bf16.msra.mxu1 %v7056_v61 }
 0x3b1   : > { %6396 = vmatmul.mubr.f32.gmra.mrb[50].mxu0 %v8345_v12  ;;  %7061 = vmatprep.subr.bf16.mxu1 %v7060_v59 }
 0x3b2   : > { %6398 = vmatprep.mubr.f32.mxu0 %v8357_v4  ;;  %7027 = vmatpush3.bf16.msra.mxu0 %v7024_v39 }
 0x3b3   : > { %7029 = vmatprep.subr.bf16.mxu0 %v7028_v63 }
 0x3b4   : > { %7063 = vmatpush3.bf16.msra.mxu1 %v7060_v59  ;;  %v3877_v59 = vld [vmem:[%s8899_s7 + $0x40] sm:$0xff] }
 0x3b5   : > { %6399 = vmatmul.mubr.f32.gmra.mrb[52].mxu0 %v8359_v24 }
 0x3b6   : > { %6401 = vmatprep.mubr.f32.mxu0 %v8371_v44  ;;  %7031 = vmatpush3.bf16.msra.mxu0 %v7028_v63 }
 0x3b7   : > { %7033 = vmatprep.subr.bf16.mxu0 %v7032_v29 }
 0x3b9   : > { %6402 = vmatmul.mubr.f32.gmra.mrb[54].mxu0 %v8373_v13 }
 0x3ba   : > { %6404 = vmatprep.mubr.f32.mxu0 %v8385_v8  ;;  %7035 = vmatpush3.bf16.msra.mxu0 %v7032_v29 }
 0x3bd   : > { %6405 = vmatmul.mubr.f32.gmra.mrb[56].mxu0 %v8387_v18 }
 0x3be   : > { %6407 = vmatprep.mubr.f32.mxu0 %v8399_v46 }
 0x3c1   : > { %6408 = vmatmul.mubr.f32.gmra.mrb[58].mxu0 %v8401_v9 }
 0x3c2   : > { %6410 = vmatprep.mubr.f32.mxu0 %v8409_v20 }
 0x3c5   : > { %6411 = vmatmul.mubr.f32.gmra.mrb[60].mxu0 %v8411_v33 }
 0x3c6   : > { %6413 = vmatprep.mubr.f32.mxu0 %v8418_v45 }
 0x3c9   : > { %6414 = vmatmul.mubr.f32.gmra.mrb[62].mxu0 %v8420_v23 }
 0x3ca   : > { %6416 = vmatprep.mubr.f32.mxu0 %v8426_v28 }
 0x3cd   : > { %6417 = vmatmul.mubr.f32.gmra.mrb[64].mxu0 %v8428_v11 }
 0x3ce   : > { %6419 = vmatprep.mubr.f32.mxu0 %v8434_v40 }
 0x3d1   : > { %6420 = vmatmul.mubr.f32.gmra.mrb[66].mxu0 %v8436_v16 }
 0x3d2   : > { %6422 = vmatprep.mubr.f32.mxu0 %v8442_v43 }
 0x3d5   : > { %6423 = vmatmul.mubr.f32.gmra.mrb[68].mxu0 %v8444_v2 }
 0x3d6   : > { %6425 = vmatprep.mubr.f32.mxu0 %v8450_v35 }
 0x3d9   : > { %6426 = vmatmul.mubr.f32.gmra.mrb[70].mxu0 %v8452_v0 }
 0x3da   : > { %6460 = vmatprep.mubr.f32.mxu0 %v8329_v6  ;;  %v8944_v6 = vmax.f32 %v8465_v62, 0.0  ;;  %v3869_v62 = vld [vmem:[%s8899_s7] sm:$0xff] }
 0x3dd   : > { %6461 = vmatmul.mubr.f32.vlgmr.msra.gmra.mrb[40].mxu0 %v8331_v34  ;;  %v3870_v34 = vld [vmem:[%s8899_s7 + $0x8] sm:$0xff] }
 0x3de   : > { %6463 = vmatprep.mubr.f32.mxu0 %v8343_v14  ;;  %v7068_v14 = vpack.c.bf16 %v3870_v34, %v3869_v62 }
 0x3e1   : > { %6464 = vmatmul.mubr.f32.gmra.mrb[42].mxu0 %v8345_v12  ;;  %v8654_v12 = vld [vmem:[%s8898_s6] ss:$0 sm:$0xff] }
 0x3e2   : > { %6466 = vmatprep.mubr.f32.mxu0 %v8357_v4 }
 0x3e5   : > { %6467 = vmatmul.mubr.f32.gmra.mrb[44].mxu0 %v8359_v24 }
 0x3e6   : > { %6469 = vmatprep.mubr.f32.mxu0 %v8371_v44 }
 0x3e9   : > { %6470 = vmatmul.mubr.f32.gmra.mrb[46].mxu0 %v8373_v13 }
 0x3ea   : > { %6472 = vmatprep.mubr.f32.mxu0 %v8385_v8  ;;  %v3871_v8 = vld [vmem:[%s8899_s7 + $0x10] sm:$0xff] }
 0x3ed   : > { %6473 = vmatmul.mubr.f32.gmra.mrb[48].mxu0 %v8387_v18  ;;  %v3872_v18 = vld [vmem:[%s8899_s7 + $0x18] sm:$0xff] }
 0x3ee   : > { %6475 = vmatprep.mubr.f32.mxu0 %v8399_v46 }
 0x3f1   : > { %6476 = vmatmul.mubr.f32.gmra.mrb[50].mxu0 %v8401_v9 }
 0x3f2   : > { %6478 = vmatprep.mubr.f32.mxu0 %v8409_v20  ;;  %v8942_v20 = vmax.f32 %v8455_v19, 0.0  ;;  %v3874_v19 = vld [vmem:[%s8899_s7 + $0x28] sm:$0xff] }
 0x3f5   : > { %6479 = vmatmul.mubr.f32.gmra.mrb[52].mxu0 %v8411_v33  ;;  %v8941_v33 = vmax.f32 %v8458_v54, 0.0 }
 0x3f6   : > { %6481 = vmatprep.mubr.f32.mxu0 %v8418_v45 }
 0x3f9   : > { %6482 = vmatmul.mubr.f32.gmra.mrb[54].mxu0 %v8420_v23 }
 0x3fa   : > { %6484 = vmatprep.mubr.f32.mxu0 %v8426_v28 }
 0x3fd   : > { %6485 = vmatmul.mubr.f32.gmra.mrb[56].mxu0 %v8428_v11  ;;  %v8943_v11 = vmax.f32 %v8468_v5, 0.0 }
 0x3fe   : > { %6487 = vmatprep.mubr.f32.mxu0 %v8434_v40  ;;  %v7072_v40 = vpack.c.bf16 %v3872_v18, %v3871_v8  ;;  %v3881_v8 = vld [vmem:[%s8899_s7 + $0x60] sm:$0xff]  ;;  %v3882_v18 = vld [vmem:[%s8899_s7 + $0x68] sm:$0xff] }
 0x401   : > { %6488 = vmatmul.mubr.f32.gmra.mrb[58].mxu0 %v8436_v16 }
 0x402   : > { %6490 = vmatprep.mubr.f32.mxu0 %v8442_v43 }
 0x405   : > { %6491 = vmatmul.mubr.f32.gmra.mrb[60].mxu0 %v8444_v2  ;;  %v5070_v2 = vld [vmem:[%s8899_s7 + $0xf8] sm:$0xff] }
 0x406   : > { %6493 = vmatprep.mubr.f32.mxu0 %v8450_v35  ;;  %v3873_v35 = vld [vmem:[%s8899_s7 + $0x20] sm:$0xff] }
 0x407   : > { %v7076_v56 = vpack.c.bf16 %v3874_v19, %v3873_v35  ;;  %v3883_v35 = vld [vmem:[%s8899_s7 + $0x70] sm:$0xff]  ;;  %v3884_v19 = vld [vmem:[%s8899_s7 + $0x78] sm:$0xff] }
 0x409   : > { %6494 = vmatmul.mubr.f32.gmra.mrb[62].mxu0 %v8452_v0  ;;  %v5069_v0 = vld [vmem:[%s8899_s7 + $0xf0] sm:$0xff] }
 0x40a   : > { %6496 = vmatprep.mubr.f32.mxu0 %v8941_v33  ;;  %v7064_v16 = vpack.c.bf16 %v5070_v2, %v5069_v0  ;;  %v3879_v2 = vld [vmem:[%s8899_s7 + $0x50] sm:$0xff] }
 0x40c   : > { %7065 = vmatprep.subr.bf16.mxu1 %v7064_v16 }
 0x40d   : > { %6497 = vmatmul.mubr.f32.gmra.mrb[64].mxu0 %v8942_v20  ;;  %7067 = vmatpush3.bf16.msra.mxu1 %v7064_v16  ;;  %v3880_v16 = vld [vmem:[%s8899_s7 + $0x58] sm:$0xff] }
 0x40e   : > { %6499 = vmatprep.mubr.f32.mxu0 %v8943_v11  ;;  %7069 = vmatprep.subr.bf16.mxu1 %v7068_v14 }
 0x411   : > { %6500 = vmatmul.mubr.f32.gmra.mrb[66].mxu0 %v8944_v6  ;;  %v7084_v6 = vpack.c.bf16 %v3878_v15, %v3877_v59 }
 0x412   : > { %6502 = vmatprep.mubr.f32.mxu0 %v8495_v49 }
 0x415   : > { %6503 = vmatmul.mubr.f32.gmra.mrb[68].mxu0 %v8495_v49 }
 0x416   : > { %6505 = vmatprep.mubr.f32.mxu0 %v8495_v49 }
 0x419   : > { %6506 = vmatmul.mubr.f32.gmra.mrb[70].mxu0 %v8495_v49 }
 0x4b0   : > { %v6462_v4 = vpop.f32.mrb[40].mxu0 }
 0x4b1   : > { %v3742_v24 = vadd.f32 %v6462_v4, %v8654_v12  ;;  %v3543_v44 = vpop.f32.mrb[41].mxu0 }
 0x4b2   : > { %v3741_v13 = vadd.f32 %v8654_v12, %v3543_v44  ;;  %v7088_v44 = vpack.c.bf16 %v3880_v16, %v3879_v2 }
 0x4b3   : > { %v3774_v46 = vmax.f32 %v3742_v24, 0.0 }
 0x4b4   : > { %v3773_v9 = vmax.f32 %v3741_v13, 0.0  ;;  %v6465_v45 = vpop.f32.mrb[42].mxu0 }
 0x4b5   : > { %3806 = vst [vmem:[#allocation2 + $0x70] sm:$0xff] %v3774_v46  ;;  %v3744_v23 = vadd.f32 %v6465_v45, %v8654_v12  ;;  %v3553_v28 = vpop.f32.mrb[43].mxu0 }
 0x4b6   : > { %3805 = vst [vmem:[#allocation2 + $0x68] sm:$0xff] %v3773_v9  ;;  %v3743_v43 = vadd.f32 %v8654_v12, %v3553_v28  ;;  %6540 = vmatprep.mubr.f32.mxu1 %v3773_v9 }
 0x4b7   : > { %v3776_v54 = vmax.f32 %v3744_v23, 0.0  ;;  %6541 = vmatmul.mubr.f32.vlgmr.msra.gmra.mrb[40].mxu1 %v3774_v46 }
 0x4b8   : > { %v3775_v49 = vmax.f32 %v3743_v43, 0.0  ;;  %v6468_v5 = vpop.f32.mrb[44].mxu0  ;;  %7071 = vmatpush3.bf16.msra.mxu1 %v7068_v14 }
 0x4b9   : > { %3808 = vst [vmem:[#allocation2 + $0x90] sm:$0xff] %v3776_v54  ;;  %v3746_v3 = vadd.f32 %v6468_v5, %v8654_v12  ;;  %v3563_v30 = vpop.f32.mrb[45].mxu0  ;;  %7073 = vmatprep.subr.bf16.mxu1 %v7072_v40 }
 0x4ba   : > { %3807 = vst [vmem:[#allocation2 + $0x88] sm:$0xff] %v3775_v49  ;;  %v3745_v10 = vadd.f32 %v8654_v12, %v3563_v30  ;;  %6543 = vmatprep.mubr.f32.mxu1 %v3775_v49 }
 0x4bb   : > { %v3778_v39 = vmax.f32 %v3746_v3, 0.0  ;;  %6544 = vmatmul.mubr.f32.gmra.mrb[42].mxu1 %v3776_v54 }
 0x4bc   : > { %v3777_v1 = vmax.f32 %v3745_v10, 0.0  ;;  %v6471_v61 = vpop.f32.mrb[46].mxu0  ;;  %7075 = vmatpush3.bf16.msra.mxu1 %v7072_v40  ;;  %v7092_v40 = vpack.c.bf16 %v3882_v18, %v3881_v8 }
 0x4bd   : > { %3810 = vst [vmem:[#allocation2 + $0xb0] sm:$0xff] %v3778_v39  ;;  %v3748_v57 = vadd.f32 %v6471_v61, %v8654_v12  ;;  %v3573_v7 = vpop.f32.mrb[47].mxu0  ;;  %7077 = vmatprep.subr.bf16.mxu1 %v7076_v56 }
 0x4be   : > { %3809 = vst [vmem:[#allocation2 + $0xa8] sm:$0xff] %v3777_v1  ;;  %v3747_v63 = vadd.f32 %v8654_v12, %v3573_v7  ;;  %6546 = vmatprep.mubr.f32.mxu1 %v3777_v1 }
 0x4bf   : > { %v3780_v60 = vmax.f32 %v3748_v57, 0.0  ;;  %6547 = vmatmul.mubr.f32.gmra.mrb[44].mxu1 %v3778_v39 }
 0x4c0   : > { %v3779_v29 = vmax.f32 %v3747_v63, 0.0  ;;  %v6474_v33 = vpop.f32.mrb[48].mxu0  ;;  %7079 = vmatpush3.bf16.msra.mxu1 %v7076_v56  ;;  %v7096_v56 = vpack.c.bf16 %v3884_v19, %v3883_v35 }
 0x4c1   : > { %3812 = vst [vmem:[#allocation2 + $0xd0] sm:$0xff] %v3780_v60  ;;  %v3750_v20 = vadd.f32 %v6474_v33, %v8654_v12  ;;  %v3583_v11 = vpop.f32.mrb[49].mxu0  ;;  %7081 = vmatprep.subr.bf16.mxu1 %v7080_v25 }
 0x4c2   : > { %3811 = vst [vmem:[#allocation2 + $0xc8] sm:$0xff] %v3779_v29  ;;  %v3749_v0 = vadd.f32 %v8654_v12, %v3583_v11  ;;  %6549 = vmatprep.mubr.f32.mxu1 %v3779_v29 }
 0x4c3   : > { %v3782_v62 = vmax.f32 %v3750_v20, 0.0  ;;  %6550 = vmatmul.mubr.f32.gmra.mrb[46].mxu1 %v3780_v60 }
 0x4c4   : > { %v3781_v34 = vmax.f32 %v3749_v0, 0.0  ;;  %v6477_v14 = vpop.f32.mrb[50].mxu0  ;;  %7083 = vmatpush3.bf16.msra.mxu1 %v7080_v25  ;;  %v8721_v25 = vpack.c.bf16 %v5072_v58, %v5071_v38 }
 0x4c5   : > { %3814 = vst [vmem:[#allocation2 + $0xf0] sm:$0xff] %v3782_v62  ;;  %v3752_v4 = vadd.f32 %v6477_v14, %v8654_v12  ;;  %v3593_v24 = vpop.f32.mrb[51].mxu0  ;;  %7085 = vmatprep.subr.bf16.mxu1 %v7084_v6 }
 0x4c6   : > { %3813 = vst [vmem:[#allocation2 + $0xe8] sm:$0xff] %v3781_v34  ;;  %v3751_v13 = vadd.f32 %v8654_v12, %v3593_v24  ;;  %6552 = vmatprep.mubr.f32.mxu1 %v3781_v34 }
 0x4c7   : > { %v3784_v46 = vmax.f32 %v3752_v4, 0.0  ;;  %6553 = vmatmul.mubr.f32.gmra.mrb[48].mxu1 %v3782_v62 }
 0x4c8   : > { %v3783_v9 = vmax.f32 %v3751_v13, 0.0  ;;  %v6480_v45 = vpop.f32.mrb[52].mxu0  ;;  %7087 = vmatpush3.bf16.msra.mxu1 %v7084_v6 }
 0x4c9   : > { %3816 = vst [vmem:[#allocation2 + $0x110] sm:$0xff] %v3784_v46  ;;  %v3754_v23 = vadd.f32 %v6480_v45, %v8654_v12  ;;  %v3603_v28 = vpop.f32.mrb[53].mxu0  ;;  %7089 = vmatprep.subr.bf16.mxu1 %v7088_v44 }
 0x4ca   : > { %3815 = vst [vmem:[#allocation2 + $0x108] sm:$0xff] %v3783_v9  ;;  %v3753_v43 = vadd.f32 %v8654_v12, %v3603_v28  ;;  %6555 = vmatprep.mubr.f32.mxu1 %v3783_v9 }
 0x4cb   : > { %v3786_v54 = vmax.f32 %v3754_v23, 0.0  ;;  %6556 = vmatmul.mubr.f32.gmra.mrb[50].mxu1 %v3784_v46 }
 0x4cc   : > { %v3785_v49 = vmax.f32 %v3753_v43, 0.0  ;;  %v6483_v5 = vpop.f32.mrb[54].mxu0  ;;  %7091 = vmatpush3.bf16.msra.mxu1 %v7088_v44 }
 0x4cd   : > { %3818 = vst [vmem:[#allocation2 + $0x130] sm:$0xff] %v3786_v54  ;;  %v3756_v3 = vadd.f32 %v6483_v5, %v8654_v12  ;;  %v3613_v30 = vpop.f32.mrb[55].mxu0  ;;  %7093 = vmatprep.subr.bf16.mxu1 %v7092_v40 }
 0x4ce   : > { %3817 = vst [vmem:[#allocation2 + $0x128] sm:$0xff] %v3785_v49  ;;  %v3755_v10 = vadd.f32 %v8654_v12, %v3613_v30  ;;  %6558 = vmatprep.mubr.f32.mxu1 %v3785_v49 }
 0x4cf   : > { %v3788_v39 = vmax.f32 %v3756_v3, 0.0  ;;  %6559 = vmatmul.mubr.f32.gmra.mrb[52].mxu1 %v3786_v54 }
 0x4d0   : > { %v3787_v1 = vmax.f32 %v3755_v10, 0.0  ;;  %v6486_v61 = vpop.f32.mrb[56].mxu0  ;;  %7095 = vmatpush3.bf16.msra.mxu1 %v7092_v40 }
 0x4d1   : > { %3820 = vst [vmem:[#allocation2 + $0x150] sm:$0xff] %v3788_v39  ;;  %v3758_v57 = vadd.f32 %v6486_v61, %v8654_v12  ;;  %v3623_v7 = vpop.f32.mrb[57].mxu0  ;;  %7097 = vmatprep.subr.bf16.mxu1 %v7096_v56 }
 0x4d2   : > { %3819 = vst [vmem:[#allocation2 + $0x148] sm:$0xff] %v3787_v1  ;;  %v3757_v63 = vadd.f32 %v8654_v12, %v3623_v7  ;;  %6561 = vmatprep.mubr.f32.mxu1 %v3787_v1 }
 0x4d3   : > { %v3790_v59 = vmax.f32 %v3758_v57, 0.0  ;;  %6562 = vmatmul.mubr.f32.gmra.mrb[54].mxu1 %v3788_v39 }
 0x4d4   : > { %v3789_v15 = vmax.f32 %v3757_v63, 0.0  ;;  %v6489_v60 = vpop.f32.mrb[58].mxu0  ;;  %7099 = vmatpush3.bf16.msra.mxu1 %v7096_v56 }
 0x4d5   : > { %3822 = vst [vmem:[#allocation2 + $0x170] sm:$0xff] %v3790_v59  ;;  %v3760_v29 = vadd.f32 %v6489_v60, %v8654_v12  ;;  %v3633_v33 = vpop.f32.mrb[59].mxu0  ;;  %7101 = vmatprep.subr.bf16.mxu1 %v8721_v25  ;;  %v3837_v60 = vld [vmem:[#allocation2 + $0x66] sm:$0xff] }
 0x4d6   : > { %3821 = vst [vmem:[#allocation2 + $0x168] sm:$0xff] %v3789_v15  ;;  %v3759_v20 = vadd.f32 %v8654_v12, %v3633_v33  ;;  %6564 = vmatprep.mubr.f32.mxu1 %v3789_v15  ;;  %v5074_v15 = vld [vmem:[%s8899_s7 + $0x118] sm:$0xff]  ;;  %v5075_v33 = vld [vmem:[%s8899_s7 + $0x120] sm:$0xff] }
 0x4d7   : > { %v3792_v11 = vmax.f32 %v3760_v29, 0.0  ;;  %6565 = vmatmul.mubr.f32.gmra.mrb[56].mxu1 %v3790_v59  ;;  %v5073_v59 = vld [vmem:[%s8899_s7 + $0x110] sm:$0xff] }
 0x4d8   : > { %v3791_v6 = vmax.f32 %v3759_v20, 0.0  ;;  %v6492_v0 = vpop.f32.mrb[60].mxu0  ;;  %v7104_v29 = vpack.c.bf16 %v5074_v15, %v5073_v59  ;;  %v5076_v20 = vld [vmem:[%s8899_s7 + $0x128] sm:$0xff] }
 0x4d9   : > { %3824 = vst [vmem:[#allocation2 + $0x190] sm:$0xff] %v3792_v11  ;;  %v3762_v2 = vadd.f32 %v6492_v0, %v8654_v12  ;;  %v3643_v16 = vpop.f32.mrb[61].mxu0  ;;  %v3840_v0 = vld [vmem:[#allocation2 + $0x8e] sm:$0xff] }
 0x4da   : > { %3823 = vst [vmem:[#allocation2 + $0x188] sm:$0xff] %v3791_v6  ;;  %v3761_v62 = vadd.f32 %v8654_v12, %v3643_v16  ;;  %6567 = vmatprep.mubr.f32.mxu1 %v3791_v6  ;;  %v7108_v6 = vpack.c.bf16 %v5076_v20, %v5075_v33  ;;  %v5078_v16 = vld [vmem:[%s8899_s7 + $0x138] sm:$0xff] }
 0x4db   : > { %v3794_v34 = vmax.f32 %v3762_v2, 0.0  ;;  %6568 = vmatmul.mubr.f32.gmra.mrb[58].mxu1 %v3792_v11  ;;  %v3839_v11 = vld [vmem:[#allocation2 + $0x86] sm:$0xff]  ;;  %v5077_v2 = vld [vmem:[%s8899_s7 + $0x130] sm:$0xff] }
 0x4dc   : > { %v3793_v14 = vmax.f32 %v3761_v62, 0.0  ;;  %v6495_v4 = vpop.f32.mrb[62].mxu0  ;;  %v3841_v62 = vld [vmem:[#allocation2 + $0xa6] sm:$0xff] }
 0x4dd   : > { %3826 = vst [vmem:[#allocation2 + $0x1b0] sm:$0xff] %v3794_v34  ;;  %v3764_v24 = vadd.f32 %v6495_v4, %v8654_v12  ;;  %v3653_v44 = vpop.f32.mrb[63].mxu0  ;;  %v5080_v4 = vld [vmem:[%s8899_s7 + $0x148] sm:$0xff] }
 0x4de   : > { %3825 = vst [vmem:[#allocation2 + $0x1a8] sm:$0xff] %v3793_v14  ;;  %v3763_v13 = vadd.f32 %v8654_v12, %v3653_v44  ;;  %6570 = vmatprep.mubr.f32.mxu1 %v3793_v14  ;;  %v3842_v14 = vld [vmem:[#allocation2 + $0xae] sm:$0xff] }
 0x4df   : > { %v3796_v8 = vmax.f32 %v3764_v24, 0.0  ;;  %6571 = vmatmul.mubr.f32.gmra.mrb[60].mxu1 %v3794_v34  ;;  %v7112_v34 = vpack.c.bf16 %v5078_v16, %v5077_v2  ;;  %v3843_v24 = vld [vmem:[#allocation2 + $0xc6] sm:$0xff]  ;;  %v4387_v2 = vld [vmem:[#allocation2 + $0x92] sm:$0xff] }
 0x4e0   : > { %v3795_v18 = vmax.f32 %v3763_v13, 0.0  ;;  %v6498_v46 = vpop.f32.mrb[64].mxu0  ;;  %v3844_v13 = vld [vmem:[#allocation2 + $0xce] sm:$0xff] }
 0x4e1   : > { %3828 = vst [vmem:[#allocation2 + $0x1d0] sm:$0xff] %v3796_v8  ;;  %v3766_v9 = vadd.f32 %v6498_v46, %v8654_v12  ;;  %v3663_v45 = vpop.f32.mrb[65].mxu0  ;;  %v3845_v46 = vld [vmem:[#allocation2 + $0xe6] sm:$0xff] }
 0x4e2   : > { %3827 = vst [vmem:[#allocation2 + $0x1c8] sm:$0xff] %v3795_v18  ;;  %v3765_v23 = vadd.f32 %v8654_v12, %v3663_v45  ;;  %6573 = vmatprep.mubr.f32.mxu1 %v3795_v18  ;;  %v5082_v18 = vld [vmem:[%s8899_s7 + $0x158] sm:$0xff]  ;;  %v3846_v45 = vld [vmem:[#allocation2 + $0xee] sm:$0xff] }
 0x4e3   : > { %v3798_v28 = vmax.f32 %v3766_v9, 0.0  ;;  %6574 = vmatmul.mubr.f32.gmra.mrb[62].mxu1 %v3796_v8  ;;  %v5081_v8 = vld [vmem:[%s8899_s7 + $0x150] sm:$0xff] }
 0x4e4   : > { %v3797_v40 = vmax.f32 %v3765_v23, 0.0  ;;  %v6501_v43 = vpop.f32.mrb[66].mxu0  ;;  %v7120_v9 = vpack.c.bf16 %v5082_v18, %v5081_v8  ;;  %v5083_v23 = vld [vmem:[%s8899_s7 + $0x160] sm:$0xff]  ;;  %v4388_v16 = vld [vmem:[#allocation2 + $0xaa] sm:$0xff]  ;;  %v4397_v8 = vld [vmem:[#allocation2 + $0x132] sm:$0xff] }
 0x4e5   : > { %3830 = vst [vmem:[#allocation2 + $0x1f0] sm:$0xff] %v3798_v28  ;;  %v3768_v35 = vadd.f32 %v6501_v43, %v8654_v12  ;;  %v3673_v19 = vpop.f32.mrb[67].mxu0  ;;  %v4398_v18 = vld [vmem:[#allocation2 + $0x14a] sm:$0xff] }
 0x4e6   : > { %3829 = vst [vmem:[#allocation2 + $0x1e8] sm:$0xff] %v3797_v40  ;;  %v3767_v54 = vadd.f32 %v8654_v12, %v3673_v19  ;;  %6576 = vmatprep.mubr.f32.mxu1 %v3797_v40  ;;  %v3847_v40 = vld [vmem:[#allocation2 + $0x106] sm:$0xff]  ;;  %v5085_v19 = vld [vmem:[%s8899_s7 + $0x170] sm:$0xff] }
 0x4e7   : > { %v3800_v49 = vmax.f32 %v3768_v35, 0.0  ;;  %6577 = vmatmul.mubr.f32.gmra.mrb[64].mxu1 %v3798_v28  ;;  %v5084_v28 = vld [vmem:[%s8899_s7 + $0x168] sm:$0xff] }
 0x4e8   : > { %v3799_v5 = vmax.f32 %v3767_v54, 0.0  ;;  %v6504_v3 = vpop.f32.mrb[68].mxu0  ;;  %v7124_v43 = vpack.c.bf16 %v5084_v28, %v5083_v23  ;;  %v3848_v35 = vld [vmem:[#allocation2 + $0x10e] sm:$0xff]  ;;  %v5086_v54 = vld [vmem:[%s8899_s7 + $0x178] sm:$0xff] }
 0x4e9   : > { %3832 = vst [vmem:[#allocation2 + $0x210] sm:$0xff] %v3800_v49  ;;  %v3770_v30 = vadd.f32 %v6504_v3, %v8654_v12  ;;  %v3683_v56 = vpop.f32.mrb[69].mxu0  ;;  %v3850_v3 = vld [vmem:[#allocation2 + $0x12e] sm:$0xff] }
 0x4ea   : > { %3831 = vst [vmem:[#allocation2 + $0x208] sm:$0xff] %v3799_v5  ;;  %v3769_v10 = vadd.f32 %v8654_v12, %v3683_v56  ;;  %6579 = vmatprep.mubr.f32.mxu1 %v3799_v5  ;;  %v7128_v5 = vpack.c.bf16 %v5086_v54, %v5085_v19  ;;  %v3852_v56 = vld [vmem:[#allocation2 + $0x14e] sm:$0xff] }
 0x4eb   : > { %v3802_v38 = vmax.f32 %v3770_v30, 0.0  ;;  %6580 = vmatmul.mubr.f32.gmra.mrb[66].mxu1 %v3800_v49  ;;  %v3849_v49 = vld [vmem:[#allocation2 + $0x126] sm:$0xff]  ;;  %v4403_v28 = vld [vmem:[#allocation2 + $0x192] sm:$0xff] }
 0x4ec   : > { %v3801_v58 = vmax.f32 %v3769_v10, 0.0  ;;  %v6507_v39 = vpop.f32.mrb[70].mxu0  ;;  %v3851_v30 = vld [vmem:[#allocation2 + $0x146] sm:$0xff]  ;;  %v4407_v19 = vld [vmem:[#allocation2 + $0x1d2] sm:$0xff] }
 0x4ed   : > { %3834 = vst [vmem:[#allocation2 + $0x230] sm:$0xff] %v3802_v38  ;;  %v3772_v1 = vadd.f32 %v6507_v39, %v8654_v12  ;;  %v3693_v61 = vpop.f32.mrb[71].mxu0  ;;  %v3853_v10 = vld [vmem:[#allocation2 + $0x166] sm:$0xff]  ;;  %v3856_v39 = vld [vmem:[#allocation2 + $0x18e] sm:$0xff] }
 0x4ee   : > { %3833 = vst [vmem:[#allocation2 + $0x228] sm:$0xff] %v3801_v58  ;;  %v3771_v57 = vadd.f32 %v8654_v12, %v3693_v61  ;;  %6582 = vmatprep.mubr.f32.mxu1 %v3801_v58  ;;  %v3838_v12 = vld [vmem:[#allocation2 + $0x6e] sm:$0xff]  ;;  %v3855_v58 = vld [vmem:[#allocation2 + $0x186] sm:$0xff] }
 0x4ef   : > { %v3804_v7 = vmax.f32 %v3772_v1, 0.0  ;;  %6583 = vmatmul.mubr.f32.gmra.mrb[68].mxu1 %v3802_v38  ;;  %v3854_v38 = vld [vmem:[#allocation2 + $0x16e] sm:$0xff]  ;;  %v3857_v1 = vld [vmem:[#allocation2 + $0x1a6] sm:$0xff] }
 0x4f0   : > { %v3803_v63 = vmax.f32 %v3771_v57, 0.0  ;;  %v3858_v61 = vld [vmem:[#allocation2 + $0x1ae] sm:$0xff]  ;;  %v3859_v57 = vld [vmem:[#allocation2 + $0x1c6] sm:$0xff] }
 0x4f1   : > { %3836 = vst [vmem:[#allocation2 + $0x250] sm:$0xff] %v3804_v7  ;;  %v3862_v59 = vld [vmem:[#allocation2 + $0x1ee] sm:$0xff]  ;;  %v3863_v15 = vld [vmem:[#allocation2 + $0x206] sm:$0xff] }
 0x4f2   : > { %3835 = vst [vmem:[#allocation2 + $0x248] sm:$0xff] %v3803_v63  ;;  %6585 = vmatprep.mubr.f32.mxu1 %v3803_v63  ;;  %v3861_v63 = vld [vmem:[#allocation2 + $0x1e6] sm:$0xff] }
 0x4f3   : > { %6586 = vmatmul.mubr.f32.gmra.mrb[70].mxu1 %v3804_v7  ;;  %v3860_v7 = vld [vmem:[#allocation2 + $0x1ce] sm:$0xff] }
 0x4f4   : > { %6620 = vmatprep.mubr.f32.mxu1 %v3837_v60  ;;  %v3864_v60 = vld [vmem:[#allocation2 + $0x20e] sm:$0xff] }
 0x4f5   : > { %v4402_v23 = vld [vmem:[#allocation2 + $0x18a] sm:$0xff] }
 0x4f6   : > { %v4408_v54 = vld [vmem:[#allocation2 + $0x1ea] sm:$0xff] }
 0x4f7   : > { %6621 = vmatmul.mubr.f32.vlgmr.msra.gmra.mrb[40].mxu1 %v3838_v12  ;;  %v3866_v12 = vld [vmem:[#allocation2 + $0x22e] sm:$0xff] }
 0x4f8   : > { %6623 = vmatprep.mubr.f32.mxu1 %v3839_v11  ;;  %7103 = vmatpush3.bf16.msra.mxu1 %v8721_v25  ;;  %v5079_v25 = vld [vmem:[%s8899_s7 + $0x140] sm:$0xff]  ;;  %v4384_v11 = vld [vmem:[#allocation2 + $0x6a] sm:$0xff] }
 0x4f9   : > { %7105 = vmatprep.subr.bf16.mxu1 %v7104_v29  ;;  %v7116_v44 = vpack.c.bf16 %v5080_v4, %v5079_v25  ;;  %v3867_v33 = vld [vmem:[#allocation2 + $0x246] sm:$0xff]  ;;  %v3868_v20 = vld [vmem:[#allocation2 + $0x24e] sm:$0xff] }
 0x4fa   : > { %v4392_v25 = vld [vmem:[#allocation2 + $0xea] sm:$0xff]  ;;  %v4393_v4 = vld [vmem:[#allocation2 + $0xf2] sm:$0xff] }
 0x4fb   : > { %6624 = vmatmul.mubr.f32.gmra.mrb[42].mxu1 %v3840_v0  ;;  %v4386_v0 = vld [vmem:[#allocation2 + $0x8a] sm:$0xff] }
 0x4fc   : > { %6626 = vmatprep.mubr.f32.mxu1 %v3841_v62  ;;  %7107 = vmatpush3.bf16.msra.mxu1 %v7104_v29  ;;  %v3865_v29 = vld [vmem:[#allocation2 + $0x226] sm:$0xff]  ;;  %v4389_v62 = vld [vmem:[#allocation2 + $0xb2] sm:$0xff] }
 0x4fd   : > { %7109 = vmatprep.subr.bf16.mxu1 %v7108_v6 }
 0x4ff   : > { %6627 = vmatmul.mubr.f32.gmra.mrb[44].mxu1 %v3842_v14  ;;  %v4391_v14 = vld [vmem:[#allocation2 + $0xd2] sm:$0xff] }
 0x500   : > { %6629 = vmatprep.mubr.f32.mxu1 %v3843_v24  ;;  %7111 = vmatpush3.bf16.msra.mxu1 %v7108_v6  ;;  %v4385_v6 = vld [vmem:[#allocation2 + $0x72] sm:$0xff]  ;;  %v4394_v24 = vld [vmem:[#allocation2 + $0x10a] sm:$0xff] }
 0x501   : > { %7113 = vmatprep.subr.bf16.mxu1 %v7112_v34 }
 0x503   : > { %6630 = vmatmul.mubr.f32.gmra.mrb[46].mxu1 %v3844_v13  ;;  %v4396_v13 = vld [vmem:[#allocation2 + $0x12a] sm:$0xff] }
 0x504   : > { %6632 = vmatprep.mubr.f32.mxu1 %v3845_v46  ;;  %7115 = vmatpush3.bf16.msra.mxu1 %v7112_v34  ;;  %v4390_v34 = vld [vmem:[#allocation2 + $0xca] sm:$0xff]  ;;  %v4399_v46 = vld [vmem:[#allocation2 + $0x152] sm:$0xff] }
 0x505   : > { %7117 = vmatprep.subr.bf16.mxu1 %v7116_v44 }
 0x507   : > { %6633 = vmatmul.mubr.f32.gmra.mrb[48].mxu1 %v3846_v45  ;;  %v4401_v45 = vld [vmem:[#allocation2 + $0x172] sm:$0xff] }
 0x508   : > { %6635 = vmatprep.mubr.f32.mxu1 %v3847_v40  ;;  %7119 = vmatpush3.bf16.msra.mxu1 %v7116_v44  ;;  %v4395_v44 = vld [vmem:[#allocation2 + $0x112] sm:$0xff]  ;;  %v4404_v40 = vld [vmem:[#allocation2 + $0x1aa] sm:$0xff] }
 0x509   : > { %7121 = vmatprep.subr.bf16.mxu1 %v7120_v9 }
 0x50b   : > { %6636 = vmatmul.mubr.f32.gmra.mrb[50].mxu1 %v3848_v35  ;;  %v4406_v35 = vld [vmem:[#allocation2 + $0x1ca] sm:$0xff] }
 0x50c   : > { %6638 = vmatprep.mubr.f32.mxu1 %v3849_v49  ;;  %7123 = vmatpush3.bf16.msra.mxu1 %v7120_v9  ;;  %v4400_v9 = vld [vmem:[#allocation2 + $0x16a] sm:$0xff]  ;;  %v4409_v49 = vld [vmem:[#allocation2 + $0x1f2] sm:$0xff] }
 0x50d   : > { %7125 = vmatprep.subr.bf16.mxu1 %v7124_v43 }
 0x50f   : > { %6639 = vmatmul.mubr.f32.gmra.mrb[52].mxu1 %v3850_v3  ;;  %v4411_v3 = vld [vmem:[#allocation2 + $0x212] sm:$0xff] }
 0x510   : > { %6641 = vmatprep.mubr.f32.mxu1 %v3851_v30  ;;  %7127 = vmatpush3.bf16.msra.mxu1 %v7124_v43  ;;  %v4405_v43 = vld [vmem:[#allocation2 + $0x1b2] sm:$0xff]  ;;  %v4412_v30 = vld [vmem:[#allocation2 + $0x22a] sm:$0xff] }
 0x511   : > { %7129 = vmatprep.subr.bf16.mxu1 %v7128_v5 }
 0x513   : > { %6642 = vmatmul.mubr.f32.gmra.mrb[54].mxu1 %v3852_v56  ;;  %v4413_v56 = vld [vmem:[#allocation2 + $0x232] sm:$0xff] }
 0x514   : > { %6644 = vmatprep.mubr.f32.mxu1 %v3853_v10  ;;  %7131 = vmatpush3.bf16.msra.mxu1 %v7128_v5  ;;  %v4410_v5 = vld [vmem:[#allocation2 + $0x20a] sm:$0xff] }
 0x515   : > { %v4414_v10 = vld [vmem:[#allocation2 + $0x24a] sm:$0xff] }
 0x517   : > { %6645 = vmatmul.mubr.f32.gmra.mrb[56].mxu1 %v3854_v38  ;;  %v4415_v38 = vld [vmem:[#allocation2 + $0x252] sm:$0xff] }
 0x518   : > { %6647 = vmatprep.mubr.f32.mxu1 %v3855_v58  ;;  %v8785_v58 = vld [vmem:[%s8900_s8] ss:$0 sm:$0xff] }
 0x51b   : > { %6648 = vmatmul.mubr.f32.gmra.mrb[58].mxu1 %v3856_v39 }
 0x51c   : > { %6650 = vmatprep.mubr.f32.mxu1 %v3857_v1 }
 0x51f   : > { %6651 = vmatmul.mubr.f32.gmra.mrb[60].mxu1 %v3858_v61 }
 0x520   : > { %6653 = vmatprep.mubr.f32.mxu1 %v3859_v57 }
 0x523   : > { %6654 = vmatmul.mubr.f32.gmra.mrb[62].mxu1 %v3860_v7 }
 0x524   : > { %6656 = vmatprep.mubr.f32.mxu1 %v3861_v63 }
 0x527   : > { %6657 = vmatmul.mubr.f32.gmra.mrb[64].mxu1 %v3862_v59 }
 0x528   : > { %6659 = vmatprep.mubr.f32.mxu1 %v3863_v15 }
 0x52b   : > { %6660 = vmatmul.mubr.f32.gmra.mrb[66].mxu1 %v3864_v60 }
 0x52c   : > { %6662 = vmatprep.mubr.f32.mxu1 %v3865_v29 }
 0x52f   : > { %6663 = vmatmul.mubr.f32.gmra.mrb[68].mxu1 %v3866_v12 }
 0x530   : > { %6665 = vmatprep.mubr.f32.mxu1 %v3867_v33 }
 0x533   : > { %6666 = vmatmul.mubr.f32.gmra.mrb[70].mxu1 %v3868_v20 }
 0x534   : > { %6700 = vmatprep.mubr.f32.mxu1 %v4384_v11 }
 0x537   : > { %6701 = vmatmul.mubr.f32.vlgmr.msra.gmra.mrb[40].mxu1 %v4385_v6 }
 0x538   : > { %6703 = vmatprep.mubr.f32.mxu1 %v4386_v0 }
 0x53b   : > { %6704 = vmatmul.mubr.f32.gmra.mrb[42].mxu1 %v4387_v2 }
 0x53c   : > { %6706 = vmatprep.mubr.f32.mxu1 %v4388_v16 }
 0x53f   : > { %6707 = vmatmul.mubr.f32.gmra.mrb[44].mxu1 %v4389_v62 }
 0x540   : > { %6709 = vmatprep.mubr.f32.mxu1 %v4390_v34 }
 0x543   : > { %6710 = vmatmul.mubr.f32.gmra.mrb[46].mxu1 %v4391_v14 }
 0x544   : > { %6712 = vmatprep.mubr.f32.mxu1 %v4392_v25 }
 0x547   : > { %6713 = vmatmul.mubr.f32.gmra.mrb[48].mxu1 %v4393_v4 }
 0x548   : > { %6715 = vmatprep.mubr.f32.mxu1 %v4394_v24 }
 0x54b   : > { %6716 = vmatmul.mubr.f32.gmra.mrb[50].mxu1 %v4395_v44 }
 0x54c   : > { %6718 = vmatprep.mubr.f32.mxu1 %v4396_v13 }
 0x54f   : > { %6719 = vmatmul.mubr.f32.gmra.mrb[52].mxu1 %v4397_v8 }
 0x550   : > { %6721 = vmatprep.mubr.f32.mxu1 %v4398_v18 }
 0x553   : > { %6722 = vmatmul.mubr.f32.gmra.mrb[54].mxu1 %v4399_v46 }
 0x554   : > { %6724 = vmatprep.mubr.f32.mxu1 %v4400_v9 }
 0x557   : > { %6725 = vmatmul.mubr.f32.gmra.mrb[56].mxu1 %v4401_v45 }
 0x558   : > { %6727 = vmatprep.mubr.f32.mxu1 %v4402_v23 }
 0x55b   : > { %6728 = vmatmul.mubr.f32.gmra.mrb[58].mxu1 %v4403_v28 }
 0x55c   : > { %6730 = vmatprep.mubr.f32.mxu1 %v4404_v40 }
 0x55f   : > { %6731 = vmatmul.mubr.f32.gmra.mrb[60].mxu1 %v4405_v43 }
 0x560   : > { %6733 = vmatprep.mubr.f32.mxu1 %v4406_v35 }
 0x563   : > { %6734 = vmatmul.mubr.f32.gmra.mrb[62].mxu1 %v4407_v19 }
 0x564   : > { %6736 = vmatprep.mubr.f32.mxu1 %v4408_v54 }
 0x567   : > { %6737 = vmatmul.mubr.f32.gmra.mrb[64].mxu1 %v4409_v49 }
 0x568   : > { %6739 = vmatprep.mubr.f32.mxu1 %v4410_v5 }
 0x56b   : > { %6740 = vmatmul.mubr.f32.gmra.mrb[66].mxu1 %v4411_v3 }
 0x56c   : > { %6742 = vmatprep.mubr.f32.mxu1 %v4412_v30 }
 0x56f   : > { %6743 = vmatmul.mubr.f32.gmra.mrb[68].mxu1 %v4413_v56 }
 0x570   : > { %6745 = vmatprep.mubr.f32.mxu1 %v4414_v10 }
 0x573   : > { %6746 = vmatmul.mubr.f32.gmra.mrb[70].mxu1 %v4415_v38 }
 0x60a   : > { %v6702_v39 = vpop.f32.mrb[40].mxu1 }
 0x60b   : > { %v4698_v1 = vadd.f32 %v6702_v39, %v8785_v58  ;;  %v4499_v61 = vpop.f32.mrb[41].mxu1 }
 0x60c   : > { %v4697_v57 = vadd.f32 %v8785_v58, %v4499_v61 }
 0x60d   : > { %v4762_v7 = vadd.f32 %v4698_v1, %v7722_v21 }
 0x60e   : > { %v4761_v63 = vadd.f32 %v4697_v57, %v7712_v17  ;;  %v6705_v59 = vpop.f32.mrb[42].mxu1 }
 0x60f   : > { %v4794_v15 = vmax.f32 %v4762_v7, 0.0  ;;  %v4700_v60 = vadd.f32 %v6705_v59, %v8785_v58  ;;  %v4509_v29 = vpop.f32.mrb[43].mxu1 }
 0x610   : > { %v4793_v12 = vmax.f32 %v4761_v63, 0.0  ;;  %v4699_v33 = vadd.f32 %v8785_v58, %v4509_v29 }
 0x611   : > { %4826 = vst [vmem:[%s7552_s20 + $0x8] sm:$0xff] %v4794_v15  ;;  %v4764_v20 = vadd.f32 %v4700_v60, %v7734_v26 }
 0x612   : > { %4825 = vst [vmem:[%s7552_s20] sm:$0xff] %v4793_v12  ;;  %v4763_v11 = vadd.f32 %v4699_v33, %v7724_v22  ;;  %v6708_v6 = vpop.f32.mrb[44].mxu1 }
 0x613   : > { %v4796_v21 = vmax.f32 %v4764_v20, 0.0  ;;  %v4702_v17 = vadd.f32 %v6708_v6, %v8785_v58  ;;  %v4519_v0 = vpop.f32.mrb[45].mxu1 }
 0x614   : > { %v4795_v2 = vmax.f32 %v4763_v11, 0.0  ;;  %v4701_v16 = vadd.f32 %v8785_v58, %v4519_v0  ;;  %v8946_v0 = vld [vmem:[#allocation7_spill] sm:$0xff] }
 0x615   : > { %4828 = vst [vmem:[%s7552_s20 + $0x18] sm:$0xff] %v4796_v21  ;;  %v4766_v62 = vadd.f32 %v4702_v17, %v7746_v31  ;;  %v8945_v21 = vld [vmem:[#allocation8_spill] sm:$0xff] }
 0x616   : > { %4827 = vst [vmem:[%s7552_s20 + $0x10] sm:$0xff] %v4795_v2  ;;  %v4765_v34 = vadd.f32 %v4701_v16, %v7736_v27  ;;  %v6711_v26 = vpop.f32.mrb[46].mxu1 }
 0x617   : > { %v4798_v14 = vmax.f32 %v4766_v62, 0.0  ;;  %v4704_v22 = vadd.f32 %v6711_v26, %v8785_v58  ;;  %v4529_v25 = vpop.f32.mrb[47].mxu1 }
 0x618   : > { %v4797_v4 = vmax.f32 %v4765_v34, 0.0  ;;  %v4703_v24 = vadd.f32 %v8785_v58, %v4529_v25  ;;  %v8948_v25 = vld [vmem:[#allocation9_spill] sm:$0xff] }
 0x619   : > { %4830 = vst [vmem:[%s7552_s20 + $0x28] sm:$0xff] %v4798_v14  ;;  %v4768_v44 = vadd.f32 %v4704_v22, %v7758_v36  ;;  %v8947_v14 = vld [vmem:[#allocation10_spill] sm:$0xff] }
 0x61a   : > { %4829 = vst [vmem:[%s7552_s20 + $0x20] sm:$0xff] %v4797_v4  ;;  %v4767_v13 = vadd.f32 %v4703_v24, %v7748_v32  ;;  %v6714_v31 = vpop.f32.mrb[48].mxu1 }
 0x61b   : > { %v4800_v8 = vmax.f32 %v4768_v44, 0.0  ;;  %v4706_v27 = vadd.f32 %v6714_v31, %v8785_v58  ;;  %v4539_v18 = vpop.f32.mrb[49].mxu1 }
 0x61c   : > { %v4799_v46 = vmax.f32 %v4767_v13, 0.0  ;;  %v4705_v9 = vadd.f32 %v8785_v58, %v4539_v18  ;;  %v8949_v18 = vld [vmem:[#allocation12_spill] sm:$0xff] }
 0x61d   : > { %4832 = vst [vmem:[%s7552_s20 + $0x38] sm:$0xff] %v4800_v8  ;;  %v4770_v45 = vadd.f32 %v4706_v27, %v7770_v41 }
 0x61e   : > { %4831 = vst [vmem:[%s7552_s20 + $0x30] sm:$0xff] %v4799_v46  ;;  %v4769_v23 = vadd.f32 %v4705_v9, %v7760_v37  ;;  %v6717_v36 = vpop.f32.mrb[50].mxu1  ;;  %v8950_v9 = vld [vmem:[#allocation11_spill] sm:$0xff] }
 0x61f   : > { %v4802_v28 = vmax.f32 %v4770_v45, 0.0  ;;  %v4708_v32 = vadd.f32 %v6717_v36, %v8785_v58  ;;  %v4549_v40 = vpop.f32.mrb[51].mxu1 }
 0x620   : > { %v4801_v43 = vmax.f32 %v4769_v23, 0.0  ;;  %v4707_v35 = vadd.f32 %v8785_v58, %v4549_v40 }
 0x621   : > { %4834 = vst [vmem:[%s7552_s20 + $0x48] sm:$0xff] %v4802_v28  ;;  %v4772_v19 = vadd.f32 %v4708_v32, %v7782_v47 }
 0x622   : > { %4833 = vst [vmem:[%s7552_s20 + $0x40] sm:$0xff] %v4801_v43  ;;  %v4771_v54 = vadd.f32 %v4707_v35, %v7772_v42  ;;  %v6720_v41 = vpop.f32.mrb[52].mxu1  ;;  %v8951_v35 = vld [vmem:[#allocation14_spill] sm:$0xff] }
 0x623   : > { %v4804_v49 = vmax.f32 %v4772_v19, 0.0  ;;  %v4710_v37 = vadd.f32 %v6720_v41, %v8785_v58  ;;  %v4559_v5 = vpop.f32.mrb[53].mxu1 }
 0x624   : > { %v4803_v3 = vmax.f32 %v4771_v54, 0.0  ;;  %v4709_v30 = vadd.f32 %v8785_v58, %v4559_v5  ;;  %v8952_v54 = vld [vmem:[#allocation13_spill] sm:$0xff] }
 0x625   : > { %4836 = vst [vmem:[%s7552_s20 + $0x58] sm:$0xff] %v4804_v49  ;;  %v4774_v56 = vadd.f32 %v4710_v37, %v7788_v50 }
 0x626   : > { %4835 = vst [vmem:[%s7552_s20 + $0x50] sm:$0xff] %v4803_v3  ;;  %v4773_v10 = vadd.f32 %v4709_v30, %v7784_v48  ;;  %v6723_v47 = vpop.f32.mrb[54].mxu1 }
 0x627   : > { %v4806_v38 = vmax.f32 %v4774_v56, 0.0  ;;  %v4712_v42 = vadd.f32 %v6723_v47, %v8785_v58  ;;  %v4569_v39 = vpop.f32.mrb[55].mxu1 }
 0x628   : > { %v4805_v1 = vmax.f32 %v4773_v10, 0.0  ;;  %v4711_v61 = vadd.f32 %v8785_v58, %v4569_v39  ;;  %v8953_v10 = vld [vmem:[#allocation16_spill] sm:$0xff] }
 0x629   : > { %4838 = vst [vmem:[%s7552_s20 + $0x68] sm:$0xff] %v4806_v38  ;;  %v4776_v57 = vadd.f32 %v4712_v42, %v7794_v52  ;;  %v8954_v38 = vld [vmem:[#allocation15_spill] sm:$0xff] }
 0x62a   : > { %4837 = vst [vmem:[%s7552_s20 + $0x60] sm:$0xff] %v4805_v1  ;;  %v4775_v7 = vadd.f32 %v4711_v61, %v7790_v51  ;;  %v6726_v50 = vpop.f32.mrb[56].mxu1 }
 0x62b   : > { %v4808_v63 = vmax.f32 %v4776_v57, 0.0  ;;  %v4714_v48 = vadd.f32 %v6726_v50, %v8785_v58  ;;  %v4579_v59 = vpop.f32.mrb[57].mxu1 }
 0x62c   : > { %v4807_v15 = vmax.f32 %v4775_v7, 0.0  ;;  %v4713_v60 = vadd.f32 %v8785_v58, %v4579_v59  ;;  %v8956_v59 = vld [vmem:[#allocation17_spill] sm:$0xff] }
 0x62d   : > { %4840 = vst [vmem:[%s7552_s20 + $0x78] sm:$0xff] %v4808_v63  ;;  %v4778_v29 = vadd.f32 %v4714_v48, %v7800_v55  ;;  %v8955_v63 = vld [vmem:[#allocation18_spill] sm:$0xff] }
 0x62e   : > { %4839 = vst [vmem:[%s7552_s20 + $0x70] sm:$0xff] %v4807_v15  ;;  %v4777_v12 = vadd.f32 %v4713_v60, %v7796_v53  ;;  %v6729_v52 = vpop.f32.mrb[58].mxu1 }
 0x62f   : > { %v4810_v33 = vmax.f32 %v4778_v29, 0.0  ;;  %v4716_v51 = vadd.f32 %v6729_v52, %v8785_v58  ;;  %v4589_v20 = vpop.f32.mrb[59].mxu1 }
 0x630   : > { %v4809_v11 = vmax.f32 %v4777_v12, 0.0  ;;  %v4715_v6 = vadd.f32 %v8785_v58, %v4589_v20  ;;  %v8957_v20 = vld [vmem:[#allocation19_spill] sm:$0xff] }
 0x631   : > { %4842 = vst [vmem:[%s7552_s20 + $0x88] sm:$0xff] %v4810_v33  ;;  %v4780_v17 = vadd.f32 %v4716_v51, %v8945_v21 }
 0x632   : > { %4841 = vst [vmem:[%s7552_s20 + $0x80] sm:$0xff] %v4809_v11  ;;  %v4779_v2 = vadd.f32 %v4715_v6, %v8946_v0  ;;  %v6732_v55 = vpop.f32.mrb[60].mxu1  ;;  %v8958_v6 = vld [vmem:[#allocation20_spill] sm:$0xff] }
 0x633   : > { %v4812_v16 = vmax.f32 %v4780_v17, 0.0  ;;  %v4718_v53 = vadd.f32 %v6732_v55, %v8785_v58  ;;  %v4599_v62 = vpop.f32.mrb[61].mxu1 }
 0x634   : > { %v4811_v34 = vmax.f32 %v4779_v2, 0.0  ;;  %v4717_v26 = vadd.f32 %v8785_v58, %v4599_v62 }
 0x635   : > { %4844 = vst [vmem:[%s7552_s20 + $0x98] sm:$0xff] %v4812_v16  ;;  %v4782_v22 = vadd.f32 %v4718_v53, %v8947_v14 }
 0x636   : > { %4843 = vst [vmem:[%s7552_s20 + $0x90] sm:$0xff] %v4811_v34  ;;  %v4781_v4 = vadd.f32 %v4717_v26, %v8948_v25  ;;  %v6735_v24 = vpop.f32.mrb[62].mxu1 }
 0x637   : > { %v4814_v44 = vmax.f32 %v4782_v22, 0.0  ;;  %v4720_v13 = vadd.f32 %v6735_v24, %v8785_v58  ;;  %v4609_v31 = vpop.f32.mrb[63].mxu1 }
 0x638   : > { %v4813_v8 = vmax.f32 %v4781_v4, 0.0  ;;  %v4719_v27 = vadd.f32 %v8785_v58, %v4609_v31 }
 0x639   : > { %4846 = vst [vmem:[%s7552_s20 + $0xa8] sm:$0xff] %v4814_v44  ;;  %v4784_v46 = vadd.f32 %v4720_v13, %v8949_v18 }
 0x63a   : > { %4845 = vst [vmem:[%s7552_s20 + $0xa0] sm:$0xff] %v4813_v8  ;;  %v4783_v45 = vadd.f32 %v4719_v27, %v8950_v9  ;;  %v6738_v23 = vpop.f32.mrb[64].mxu1 }
 0x63b   : > { %v4816_v36 = vmax.f32 %v4784_v46, 0.0  ;;  %v4722_v28 = vadd.f32 %v6738_v23, %v8785_v58  ;;  %v4619_v32 = vpop.f32.mrb[65].mxu1 }
 0x63c   : > { %v4815_v40 = vmax.f32 %v4783_v45, 0.0  ;;  %v4721_v43 = vadd.f32 %v8785_v58, %v4619_v32 }
 0x63d   : > { %4848 = vst [vmem:[%s7552_s20 + $0xb8] sm:$0xff] %v4816_v36  ;;  %v4786_v19 = vadd.f32 %v4722_v28, %v8951_v35 }
 0x63e   : > { %4847 = vst [vmem:[%s7552_s20 + $0xb0] sm:$0xff] %v4815_v40  ;;  %v4785_v41 = vadd.f32 %v4721_v43, %v8952_v54  ;;  %v6741_v49 = vpop.f32.mrb[66].mxu1 }
 0x63f   : > { %v4818_v37 = vmax.f32 %v4786_v19, 0.0  ;;  %v4724_v5 = vadd.f32 %v6741_v49, %v8785_v58  ;;  %v4629_v3 = vpop.f32.mrb[67].mxu1 }
 0x640   : > { %v4817_v30 = vmax.f32 %v4785_v41, 0.0  ;;  %v4723_v56 = vadd.f32 %v8785_v58, %v4629_v3 }
 0x641   : > { %4850 = vst [vmem:[%s7552_s20 + $0xc8] sm:$0xff] %v4818_v37  ;;  %v4788_v47 = vadd.f32 %v4724_v5, %v8953_v10 }
 0x642   : > { %4849 = vst [vmem:[%s7552_s20 + $0xc0] sm:$0xff] %v4817_v30  ;;  %v4787_v42 = vadd.f32 %v4723_v56, %v8954_v38  ;;  %v6744_v39 = vpop.f32.mrb[68].mxu1 }
 0x643   : > { %v4820_v1 = vmax.f32 %v4788_v47, 0.0  ;;  %v4726_v61 = vadd.f32 %v6744_v39, %v8785_v58  ;;  %v4639_v57 = vpop.f32.mrb[69].mxu1 }
 0x644   : > { %v4819_v7 = vmax.f32 %v4787_v42, 0.0  ;;  %v4725_v50 = vadd.f32 %v8785_v58, %v4639_v57 }
 0x645   : > { %4852 = vst [vmem:[%s7552_s20 + $0xd8] sm:$0xff] %v4820_v1  ;;  %v4790_v48 = vadd.f32 %v4726_v61, %v8955_v63 }
 0x646   : > { %4851 = vst [vmem:[%s7552_s20 + $0xd0] sm:$0xff] %v4819_v7  ;;  %v4789_v15 = vadd.f32 %v4725_v50, %v8956_v59  ;;  %v6747_v60 = vpop.f32.mrb[70].mxu1 }
 0x647   : > { %v4822_v29 = vmax.f32 %v4790_v48, 0.0  ;;  %v4728_v12 = vadd.f32 %v6747_v60, %v8785_v58  ;;  %v4649_v52 = vpop.f32.mrb[71].mxu1 }
 0x648   : > { %v4821_v33 = vmax.f32 %v4789_v15, 0.0  ;;  %v4727_v51 = vadd.f32 %v8785_v58, %v4649_v52 }
 0x649   : > { %4854 = vst [vmem:[%s7552_s20 + $0xe8] sm:$0xff] %v4822_v29  ;;  %v4792_v11 = vadd.f32 %v4728_v12, %v8957_v20 }
 0x64a   : > { %4853 = vst [vmem:[%s7552_s20 + $0xe0] sm:$0xff] %v4821_v33  ;;  %v4791_v21 = vadd.f32 %v4727_v51, %v8958_v6 }
 0x64b   : > { %v4824_v17 = vmax.f32 %v4792_v11, 0.0 }
 0x64c   : > { %v4823_v0 = vmax.f32 %v4791_v21, 0.0 }
 0x64d   : > { %4856 = vst [vmem:[%s7552_s20 + $0xf8] sm:$0xff] %v4824_v17 }
 0x64e   : > { %4855 = vst [vmem:[%s7552_s20 + $0xf0] sm:$0xff] %v4823_v0 }
 0x64f PF: > { %s19_s11 = sadd.s32 1, %s7470_s11   ;;  %s8959_s30 = smov %s7466_s10 }
 0x650   : > { %p16_p5 = scmp.ge.s32.totalorder %s19_s11, 4   ;;  %s8960_s10 = smov %s8962_s12 }
 0x652   :  { %18 = sbr.rel (!%p16_p5) target bundleno = 2 (0x2), region = 140 }
 0x659   :  { %4889 = vsyncmov [#allocation4] }
 0x65c   :  { %s4890_s22 = vpop.sfrf %4889 }
 0x65d   :  { %p5090_p6 = scmp.ne.s32.totalorder %s4890_s22, 0 }
 0x65f   :  { %4894 = shalt.err (%p5090_p6)  }

</bundles_post_ra>
